<compile_context>
chip_gen: v7x
topology: tpu7x:2x2x1
jax: 0.10.0
libtpu: 0.0.40
codegen_flags: <defaults>
</compile_context>

<pallas_src>
import jax
import jax.numpy as jnp
import numpy as np
from jax.experimental import pallas as pl
from jax.experimental.pallas import tpu as pltpu

F32 = jnp.float32
BF16 = jnp.bfloat16
VMEM_SPEC = pl.BlockSpec(memory_space=pltpu.MemorySpace.VMEM)

PAD = 128          # hidden/out dim 70 zero-padded to one full lane width
L_LAYERS = 4
N_CLASSES = 10


# ------------------------------ fused kernel ------------------------------- #

def _gated_gcn_net_kernel(nf_ref, ef_ref, sn_ref, se_ref, srcdst_ref, dst_ref, mm_ref,
                          weh_ref, beh_ref, wee_ref, bee_ref,
                          wabde_ref, babde_ref, wcx_ref, bcx_ref,
                          gh_ref, bh_ref, ge_ref, be_ref,
                          w1_ref, b1_ref, w2_ref, b2_ref, w3_ref, b3_ref,
                          out_ref):
    H = PAD
    srcdst = srcdst_ref[...]          # (E, 2N) bf16 one-hot: [edge->src | edge->dst]
    dst = dst_ref[...]                # (E, N)  bf16 one-hot: edge -> destination node
    sn = sn_ref[...]                  # (N, 1) graph-size norm for nodes
    se = se_ref[...]                  # (E, 1) graph-size norm for edges
    n_nodes = nf_ref.shape[0]
    n_edges = ef_ref.shape[0]
    inv_n = 1.0 / n_nodes
    inv_e = 1.0 / n_edges

    # ---- input embeddings ----
    h = jnp.dot(nf_ref[...].astype(BF16), weh_ref[...],
                preferred_element_type=F32) + beh_ref[...]
    # edge feature dim == 1: VPU broadcast FMA instead of a K=1 MXU matmul
    e = ef_ref[...] * wee_ref[...] + bee_ref[...]

    def batch_norm(x, gamma, beta, inv_cnt):
        # one-pass stats: var = E[x^2] - E[x]^2 (halves reduction traffic)
        s = jnp.sum(x, axis=0, keepdims=True)
        ss = jnp.sum(x * x, axis=0, keepdims=True)
        mu = s * inv_cnt
        var = ss * inv_cnt - mu * mu
        return (x - mu) * jax.lax.rsqrt(var + 1e-5) * gamma + beta

    contract_e = (((0,), (0,)), ((), ()))   # contract the edge axis of both operands

    for l in range(L_LAYERS):
        # one wide MXU pass for the four node projections A,B,D,E (bf16 x bf16)
        proj = jnp.dot(h.astype(BF16), wabde_ref[l],
                       preferred_element_type=F32) + babde_ref[l]
        Ah = proj[:, 0 * H:1 * H]
        Bh = proj[:, 1 * H:2 * H]
        Dh = proj[:, 2 * H:3 * H]
        Eh = proj[:, 3 * H:4 * H]

        # ---- fused edge pass (Ce + gather of Dh/Eh/Bh onto edges) ----
        #   [e | src | dst] (E, H+2N)  @  [[Wc|0],[Dh|Bh],[Eh|0]] (H+2N, 2H)
        #   -> cols 0:H  = Ce + Dh[src] + Eh[dst]  (plus bias)
        #      cols H:2H = Bh[src]
        edge_rhs = jnp.concatenate([
            wcx_ref[l],                                                  # (H, 2H) bf16
            jnp.concatenate([Dh, Bh], axis=1).astype(BF16),              # (N, 2H)
            jnp.concatenate([Eh, jnp.zeros_like(Eh)], axis=1).astype(BF16),  # (N, 2H)
        ], axis=0)
        edge_lhs = jnp.concatenate([e.astype(BF16), srcdst], axis=1)     # (E, H+2N)
        edge_out = jnp.dot(edge_lhs, edge_rhs,
                           preferred_element_type=F32) + bcx_ref[l]
        e_new = edge_out[:, :H]            # edges.data['e']
        Bh_src = edge_out[:, H:]

        sigma = jax.nn.sigmoid(e_new)

        # ---- fused scatter: num and den in one 256-wide segment-sum ----
        #   dst_onehot^T (N, E) @ [sigma*Bh_src | sigma] (E, 2H)
        agg = jax.lax.dot_general(
            dst, jnp.concatenate([sigma * Bh_src, sigma], axis=1).astype(BF16),
            contract_e, preferred_element_type=F32)
        num = agg[:, :H]
        den = agg[:, H:]
        h_new = Ah + num * pl.reciprocal(den + 1e-6, approx=True)

        # graph-size normalization
        h_new = h_new * sn
        e_gn = e_new * se

        # BatchNorm1d (training-mode batch statistics), ReLU, residual
        h_new = jnp.maximum(batch_norm(h_new, gh_ref[l], bh_ref[l], inv_n), 0.0)
        e_bn = jnp.maximum(batch_norm(e_gn, ge_ref[l], be_ref[l], inv_e), 0.0)
        h = h + h_new
        e = e + e_bn

    # ---- readout: dgl.mean_nodes == per-graph mean matrix @ h, then MLP ----
    hg = jnp.dot(mm_ref[...], h, preferred_element_type=F32)
    y = jnp.maximum(jnp.dot(hg.astype(BF16), w1_ref[...],
                            preferred_element_type=F32) + b1_ref[...], 0.0)
    y = jnp.maximum(jnp.dot(y.astype(BF16), w2_ref[...],
                            preferred_element_type=F32) + b2_ref[...], 0.0)
    out_ref[...] = jnp.dot(y.astype(BF16), w3_ref[...],
                           preferred_element_type=F32) + b3_ref[...]


def gated_gcn_net_forward(params, nodes_feat_pad, edges_feat, snorm_n, snorm_e,
                          srcdst_inc, dst_inc, mean_mat):
    args = [nodes_feat_pad, edges_feat, snorm_n, snorm_e,
            srcdst_inc, dst_inc, mean_mat] + params
    n_graphs = mean_mat.shape[0]
    N = nodes_feat_pad.shape[0]
    E = edges_feat.shape[0]
    G = n_graphs
    H = PAD

    # VMEM limit sized to the actual resident footprint (with generous headroom),
    # capped conservatively below the smallest physical VMEM (v7x: 64 MiB/TC).
    out_bytes = G * H * 4
    resident = sum(int(a.size) * int(a.dtype.itemsize) for a in args) + out_bytes
    vmem_limit = int(min(max(2 * resident, 16 << 20), 64 << 20))

    # rough FLOP / transcendental counts for XLA scheduling
    flops = 2 * N * H * H                                           # embedding_h
    flops += L_LAYERS * (2 * N * H * (4 * H)                        # A|B|D|E proj
                         + 2 * E * (H + 2 * N) * (2 * H)            # fused edge pass
                         + 2 * E * N * (2 * H))                     # fused scatter
    flops += 2 * G * N * H + 3 * (2 * G * H * H)                    # readout
    transcendentals = L_LAYERS * (E * H + N * H + 4 * H) + 3 * G * H

    out = pl.pallas_call(
        _gated_gcn_net_kernel,
        out_shape=jax.ShapeDtypeStruct((n_graphs, PAD), F32),
        in_specs=[VMEM_SPEC] * len(args),
        out_specs=VMEM_SPEC,
        compiler_params=pltpu.CompilerParams(vmem_limit_bytes=vmem_limit),
        cost_estimate=pl.CostEstimate(flops=flops,
                                      transcendentals=transcendentals,
                                      bytes_accessed=resident),
    )(*args)
    return out[:, :N_CLASSES]


# ------------------------------- parameters -------------------------------- #

def init_linear(key, fan_in, fan_out):
    kw, kb = jax.random.split(key)
    bound = 1.0 / np.sqrt(fan_in)
    w = jax.random.uniform(kw, (fan_in, fan_out), F32, -bound, bound)
    b = jax.random.uniform(kb, (fan_out,), F32, -bound, bound)
    return w, b


def pad_w(w, rows=PAD, cols=PAD):
    return jnp.zeros((rows, cols), F32).at[:w.shape[0], :w.shape[1]].set(w)


def pad_b(b, cols=PAD):
    return jnp.zeros((1, cols), F32).at[0, :b.shape[0]].set(b)


def init_params(key):
    in_dim, in_dim_edge = 33, 1
    hidden_dim, out_dim = 70, 70
    keys = jax.random.split(key, 32)
    ki = iter(range(32))

    w_eh, b_eh = init_linear(keys[next(ki)], in_dim, hidden_dim)
    w_ee, b_ee = init_linear(keys[next(ki)], in_dim_edge, hidden_dim)

    wabde_l, babde_l, wcx_l, bcx_l = [], [], [], []
    gh_l, bh_l, ge_l, be_l = [], [], [], []
    zeros_pp = jnp.zeros((PAD, PAD), F32)
    zeros_1p = jnp.zeros((1, PAD), F32)
    for _ in range(L_LAYERS):
        ws, bs = {}, {}
        for name in 'ABCDE':
            ws[name], bs[name] = init_linear(keys[next(ki)], hidden_dim, hidden_dim)
        # concatenate A|B|D|E -> one (128, 512) weight, one (1, 512) bias
        wabde_l.append(jnp.concatenate([pad_w(ws[n]) for n in 'ABDE'], axis=1))
        babde_l.append(jnp.concatenate([pad_b(bs[n]) for n in 'ABDE'], axis=1))
        # [Wc | 0] so the fused edge matmul also produces Bh_src in cols 128:256
        wcx_l.append(jnp.concatenate([pad_w(ws['C']), zeros_pp], axis=1))
        bcx_l.append(jnp.concatenate([pad_b(bs['C']), zeros_1p], axis=1))
        # BN gamma padded with ZERO so padded feature columns stay identically 0
        gh_l.append(pad_b(jnp.ones((out_dim,), F32)))
        bh_l.append(pad_b(jnp.zeros((out_dim,), F32)))
        ge_l.append(pad_b(jnp.ones((out_dim,), F32)))
        be_l.append(pad_b(jnp.zeros((out_dim,), F32)))

    # MLPReadout: 70 -> 35 -> 17 -> 10, zero-padded to 128-wide lanes
    w1, b1 = init_linear(keys[next(ki)], out_dim, out_dim // 2)
    w2, b2 = init_linear(keys[next(ki)], out_dim // 2, out_dim // 4)
    w3, b3 = init_linear(keys[next(ki)], out_dim // 4, N_CLASSES)

    return [
        pad_w(w_eh).astype(BF16), pad_b(b_eh),        # embedding_h (33->70, padded)
        pad_b(w_ee.reshape(-1)), pad_b(b_ee),         # embedding_e row + bias (1,128)
        jnp.stack(wabde_l).astype(BF16), jnp.stack(babde_l),   # (L,128,512) bf16, (L,1,512) f32
        jnp.stack(wcx_l).astype(BF16), jnp.stack(bcx_l),       # (L,128,256) bf16, (L,1,256) f32
        jnp.stack(gh_l), jnp.stack(bh_l),             # BN(h) gamma/beta
        jnp.stack(ge_l), jnp.stack(be_l),             # BN(e) gamma/beta
        pad_w(w1).astype(BF16), pad_b(b1),
        pad_w(w2).astype(BF16), pad_b(b2),
        pad_w(w3).astype(BF16), pad_b(b3),
    ]


# ---------------------------------- main ------------------------------------ #

if __name__ == "__main__":
    key = jax.random.PRNGKey(0)
    k_param, k_nodes, k_edges = jax.random.split(key, 3)

    # Batch of 2 graphs, 8 nodes each; bidirectional ring edges (in-degree 2).
    n_graphs, n_per_graph = 2, 8
    N = n_graphs * n_per_graph
    src_list, dst_list, graph_id = [], [], []
    for g in range(n_graphs):
        base = g * n_per_graph
        for i in range(n_per_graph):
            j = (i + 1) % n_per_graph
            src_list += [base + i, base + j]
            dst_list += [base + j, base + i]
        graph_id += [g] * n_per_graph
    E = len(src_list)
    e_per_graph = E // n_graphs

    # TODO(synk): for realistic graph sizes the dense (E, N) incidence matmuls
    # should become index-based gather / segment-sum with scalar prefetch and
    # an edge-tiled grid (with a "parallel" axis so v7x uses both TensorCores);
    # Pallas TPU has no clean in-kernel dynamic scatter-add, so the one-hot MXU
    # formulation is kept at this toy scale.
    src_inc = np.zeros((E, N), np.float32)
    dst_inc = np.zeros((E, N), np.float32)
    src_inc[np.arange(E), np.array(src_list)] = 1.0
    dst_inc[np.arange(E), np.array(dst_list)] = 1.0
    srcdst_inc = np.concatenate([src_inc, dst_inc], axis=1)   # (E, 2N)

    mean_mat = np.zeros((n_graphs, N), np.float32)
    for i, g in enumerate(graph_id):
        mean_mat[g, i] = 1.0 / n_per_graph

    snorm_n = np.full((N, 1), 1.0 / np.sqrt(n_per_graph), np.float32)
    snorm_e = np.full((E, 1), 1.0 / np.sqrt(e_per_graph), np.float32)

    nodes_feat = jax.random.normal(k_nodes, (N, 33), F32)
    nodes_feat_pad = jnp.zeros((N, PAD), F32).at[:, :33].set(nodes_feat)
    edges_feat = jax.random.normal(k_edges, (E, 1), F32)

    params = init_params(k_param)

    logits = gated_gcn_net_forward(
        params, nodes_feat_pad, edges_feat,
        jnp.asarray(snorm_n), jnp.asarray(snorm_e),
        jnp.asarray(srcdst_inc, BF16), jnp.asarray(dst_inc, BF16),
        jnp.asarray(mean_mat))
    logits = jax.block_until_ready(logits)

    assert logits.shape == (n_graphs, N_CLASSES)
    assert bool(jnp.all(jnp.isfinite(logits)))
    print("KERNEL_OK")
</pallas_src>

<mosaic_0001>
module attributes {stable_mosaic.version = 11 : i64} {
  func.func @_gated_gcn_net_kernel(%arg0: memref<16x128xf32, #tpu.memory_space<vmem>>, %arg1: memref<32x1xf32, #tpu.memory_space<vmem>>, %arg2: memref<16x1xf32, #tpu.memory_space<vmem>>, %arg3: memref<32x1xf32, #tpu.memory_space<vmem>>, %arg4: memref<32x32xbf16, #tpu.memory_space<vmem>>, %arg5: memref<32x16xbf16, #tpu.memory_space<vmem>>, %arg6: memref<2x16xf32, #tpu.memory_space<vmem>>, %arg7: memref<128x128xbf16, #tpu.memory_space<vmem>>, %arg8: memref<1x128xf32, #tpu.memory_space<vmem>>, %arg9: memref<1x128xf32, #tpu.memory_space<vmem>>, %arg10: memref<1x128xf32, #tpu.memory_space<vmem>>, %arg11: memref<4x128x512xbf16, #tpu.memory_space<vmem>>, %arg12: memref<4x1x512xf32, #tpu.memory_space<vmem>>, %arg13: memref<4x128x256xbf16, #tpu.memory_space<vmem>>, %arg14: memref<4x1x256xf32, #tpu.memory_space<vmem>>, %arg15: memref<4x1x128xf32, #tpu.memory_space<vmem>>, %arg16: memref<4x1x128xf32, #tpu.memory_space<vmem>>, %arg17: memref<4x1x128xf32, #tpu.memory_space<vmem>>, %arg18: memref<4x1x128xf32, #tpu.memory_space<vmem>>, %arg19: memref<128x128xbf16, #tpu.memory_space<vmem>>, %arg20: memref<1x128xf32, #tpu.memory_space<vmem>>, %arg21: memref<128x128xbf16, #tpu.memory_space<vmem>>, %arg22: memref<1x128xf32, #tpu.memory_space<vmem>>, %arg23: memref<128x128xbf16, #tpu.memory_space<vmem>>, %arg24: memref<1x128xf32, #tpu.memory_space<vmem>>, %arg25: memref<2x128xf32, #tpu.memory_space<vmem>>) attributes {dimension_semantics = [], scalar_prefetch = 0 : i64, scratch_operands = 0 : i64, tpu.core_type = #tpu.core_type<tc>} {
    %c0 = arith.constant 0 : index
    %c0_0 = arith.constant 0 : index
    %0 = vector.load %arg4[%c0, %c0_0] : memref<32x32xbf16, #tpu.memory_space<vmem>>, vector<32x32xbf16>
    %c0_1 = arith.constant 0 : index
    %c0_2 = arith.constant 0 : index
    %1 = vector.load %arg5[%c0_1, %c0_2] : memref<32x16xbf16, #tpu.memory_space<vmem>>, vector<32x16xbf16>
    %c0_3 = arith.constant 0 : index
    %c0_4 = arith.constant 0 : index
    %2 = vector.load %arg2[%c0_3, %c0_4] : memref<16x1xf32, #tpu.memory_space<vmem>>, vector<16x1xf32>
    %c0_5 = arith.constant 0 : index
    %c0_6 = arith.constant 0 : index
    %3 = vector.load %arg3[%c0_5, %c0_6] : memref<32x1xf32, #tpu.memory_space<vmem>>, vector<32x1xf32>
    %c0_7 = arith.constant 0 : index
    %c0_8 = arith.constant 0 : index
    %4 = vector.load %arg0[%c0_7, %c0_8] : memref<16x128xf32, #tpu.memory_space<vmem>>, vector<16x128xf32>
    %5 = arith.truncf %4 : vector<16x128xf32> to vector<16x128xbf16>
    %c0_9 = arith.constant 0 : index
    %c0_10 = arith.constant 0 : index
    %6 = vector.load %arg7[%c0_9, %c0_10] : memref<128x128xbf16, #tpu.memory_space<vmem>>, vector<128x128xbf16>
    %cst = arith.constant dense<0.000000e+00> : vector<16x128xf32>
    %7 = tpu.matmul %5, %6, %cst {dimension_numbers = #tpu.dot_dimension_numbers<[1], [0], [0], [1], [0, 0, 1, 1], [], []>} : vector<16x128xbf16>, vector<128x128xbf16>, vector<16x128xf32> -> vector<16x128xf32>
    %c0_11 = arith.constant 0 : index
    %c0_12 = arith.constant 0 : index
    %8 = vector.load %arg8[%c0_11, %c0_12] : memref<1x128xf32, #tpu.memory_space<vmem>>, vector<1x128xf32>
    %9 = vector.broadcast %8 : vector<1x128xf32> to vector<16x128xf32>
    %10 = arith.addf %7, %9 : vector<16x128xf32>
    %c0_13 = arith.constant 0 : index
    %c0_14 = arith.constant 0 : index
    %11 = vector.load %arg1[%c0_13, %c0_14] : memref<32x1xf32, #tpu.memory_space<vmem>>, vector<32x1xf32>
    %c0_15 = arith.constant 0 : index
    %c0_16 = arith.constant 0 : index
    %12 = vector.load %arg9[%c0_15, %c0_16] : memref<1x128xf32, #tpu.memory_space<vmem>>, vector<1x128xf32>
    %13 = vector.broadcast %11 : vector<32x1xf32> to vector<32x128xf32>
    %14 = vector.broadcast %12 : vector<1x128xf32> to vector<32x128xf32>
    %15 = arith.mulf %13, %14 : vector<32x128xf32>
    %c0_17 = arith.constant 0 : index
    %c0_18 = arith.constant 0 : index
    %16 = vector.load %arg10[%c0_17, %c0_18] : memref<1x128xf32, #tpu.memory_space<vmem>>, vector<1x128xf32>
    %17 = vector.broadcast %16 : vector<1x128xf32> to vector<32x128xf32>
    %18 = arith.addf %15, %17 : vector<32x128xf32>
    %19 = arith.truncf %10 : vector<16x128xf32> to vector<16x128xbf16>
    %c0_19 = arith.constant 0 : index
    %c0_20 = arith.constant 0 : index
    %c0_21 = arith.constant 0 : index
    %20 = vector.load %arg11[%c0_19, %c0_20, %c0_21] : memref<4x128x512xbf16, #tpu.memory_space<vmem>>, vector<1x128x512xbf16>
    %21 = vector.shape_cast %20 : vector<1x128x512xbf16> to vector<128x512xbf16>
    %cst_22 = arith.constant dense<0.000000e+00> : vector<16x512xf32>
    %22 = tpu.matmul %19, %21, %cst_22 {dimension_numbers = #tpu.dot_dimension_numbers<[1], [0], [0], [1], [0, 0, 1, 1], [], []>} : vector<16x128xbf16>, vector<128x512xbf16>, vector<16x512xf32> -> vector<16x512xf32>
    %c0_23 = arith.constant 0 : index
    %c0_24 = arith.constant 0 : index
    %c0_25 = arith.constant 0 : index
    %23 = vector.load %arg12[%c0_23, %c0_24, %c0_25] : memref<4x1x512xf32, #tpu.memory_space<vmem>>, vector<1x1x512xf32>
    %24 = vector.shape_cast %23 : vector<1x1x512xf32> to vector<1x512xf32>
    %25 = vector.broadcast %24 : vector<1x512xf32> to vector<16x512xf32>
    %26 = arith.addf %22, %25 : vector<16x512xf32>
    %27 = vector.extract_strided_slice %26 {offsets = [0, 0], sizes = [16, 128], strides = [1, 1]} : vector<16x512xf32> to vector<16x128xf32>
    %28 = vector.extract_strided_slice %26 {offsets = [0, 128], sizes = [16, 128], strides = [1, 1]} : vector<16x512xf32> to vector<16x128xf32>
    %29 = vector.extract_strided_slice %26 {offsets = [0, 256], sizes = [16, 128], strides = [1, 1]} : vector<16x512xf32> to vector<16x128xf32>
    %30 = vector.extract_strided_slice %26 {offsets = [0, 384], sizes = [16, 128], strides = [1, 1]} : vector<16x512xf32> to vector<16x128xf32>
    %c0_26 = arith.constant 0 : index
    %c0_27 = arith.constant 0 : index
    %c0_28 = arith.constant 0 : index
    %31 = vector.load %arg13[%c0_26, %c0_27, %c0_28] : memref<4x128x256xbf16, #tpu.memory_space<vmem>>, vector<1x128x256xbf16>
    %32 = vector.shape_cast %31 : vector<1x128x256xbf16> to vector<128x256xbf16>
    %33 = tpu.concatenate %29, %28 in 1 : vector<16x128xf32>, vector<16x128xf32> -> vector<16x256xf32>
    %34 = arith.truncf %33 : vector<16x256xf32> to vector<16x256xbf16>
    %cst_29 = arith.constant 0.000000e+00 : f32
    %35 = vector.broadcast %cst_29 : f32 to vector<16x128xf32>
    %36 = tpu.concatenate %30, %35 in 1 : vector<16x128xf32>, vector<16x128xf32> -> vector<16x256xf32>
    %37 = arith.truncf %36 : vector<16x256xf32> to vector<16x256xbf16>
    %38 = tpu.concatenate %32, %34, %37 in 0 : vector<128x256xbf16>, vector<16x256xbf16>, vector<16x256xbf16> -> vector<160x256xbf16>
    %39 = arith.truncf %18 : vector<32x128xf32> to vector<32x128xbf16>
    %40 = tpu.concatenate %39, %0 in 1 : vector<32x128xbf16>, vector<32x32xbf16> -> vector<32x160xbf16>
    %cst_30 = arith.constant dense<0.000000e+00> : vector<32x256xf32>
    %41 = tpu.matmul %40, %38, %cst_30 {dimension_numbers = #tpu.dot_dimension_numbers<[1], [0], [0], [1], [0, 0, 1, 1], [], []>} : vector<32x160xbf16>, vector<160x256xbf16>, vector<32x256xf32> -> vector<32x256xf32>
    %c0_31 = arith.constant 0 : index
    %c0_32 = arith.constant 0 : index
    %c0_33 = arith.constant 0 : index
    %42 = vector.load %arg14[%c0_31, %c0_32, %c0_33] : memref<4x1x256xf32, #tpu.memory_space<vmem>>, vector<1x1x256xf32>
    %43 = vector.shape_cast %42 : vector<1x1x256xf32> to vector<1x256xf32>
    %44 = vector.broadcast %43 : vector<1x256xf32> to vector<32x256xf32>
    %45 = arith.addf %41, %44 : vector<32x256xf32>
    %46 = vector.extract_strided_slice %45 {offsets = [0, 0], sizes = [32, 128], strides = [1, 1]} : vector<32x256xf32> to vector<32x128xf32>
    %47 = vector.extract_strided_slice %45 {offsets = [0, 128], sizes = [32, 128], strides = [1, 1]} : vector<32x256xf32> to vector<32x128xf32>
    %48 = arith.negf %46 : vector<32x128xf32>
    %49 = math.exp %48 : vector<32x128xf32>
    %cst_34 = arith.constant 1.000000e+00 : f32
    %50 = vector.broadcast %cst_34 : f32 to vector<32x128xf32>
    %51 = arith.addf %50, %49 : vector<32x128xf32>
    %52 = arith.divf %50, %51 : vector<32x128xf32>
    %53 = arith.mulf %52, %47 : vector<32x128xf32>
    %54 = tpu.concatenate %53, %52 in 1 : vector<32x128xf32>, vector<32x128xf32> -> vector<32x256xf32>
    %55 = arith.truncf %54 : vector<32x256xf32> to vector<32x256xbf16>
    %cst_35 = arith.constant dense<0.000000e+00> : vector<16x256xf32>
    %56 = tpu.matmul %1, %55, %cst_35 {dimension_numbers = #tpu.dot_dimension_numbers<[0], [0], [1], [1], [0, 1, 1, 1], [], []>} : vector<32x16xbf16>, vector<32x256xbf16>, vector<16x256xf32> -> vector<16x256xf32>
    %57 = vector.extract_strided_slice %56 {offsets = [0, 0], sizes = [16, 128], strides = [1, 1]} : vector<16x256xf32> to vector<16x128xf32>
    %58 = vector.extract_strided_slice %56 {offsets = [0, 128], sizes = [16, 128], strides = [1, 1]} : vector<16x256xf32> to vector<16x128xf32>
    %cst_36 = arith.constant 9.99999997E-7 : f32
    %59 = vector.broadcast %cst_36 : f32 to vector<16x128xf32>
    %60 = arith.addf %58, %59 : vector<16x128xf32>
    %61 = tpu.reciprocal %60 {approx = true} : vector<16x128xf32> -> vector<16x128xf32>
    %62 = arith.mulf %57, %61 : vector<16x128xf32>
    %63 = arith.addf %27, %62 : vector<16x128xf32>
    %64 = vector.broadcast %2 : vector<16x1xf32> to vector<16x128xf32>
    %65 = arith.mulf %63, %64 : vector<16x128xf32>
    %66 = vector.broadcast %3 : vector<32x1xf32> to vector<32x128xf32>
    %67 = arith.mulf %46, %66 : vector<32x128xf32>
    %c0_37 = arith.constant 0 : index
    %c0_38 = arith.constant 0 : index
    %c0_39 = arith.constant 0 : index
    %68 = vector.load %arg15[%c0_37, %c0_38, %c0_39] : memref<4x1x128xf32, #tpu.memory_space<vmem>>, vector<1x1x128xf32>
    %69 = vector.shape_cast %68 : vector<1x1x128xf32> to vector<1x128xf32>
    %c0_40 = arith.constant 0 : index
    %c0_41 = arith.constant 0 : index
    %c0_42 = arith.constant 0 : index
    %70 = vector.load %arg16[%c0_40, %c0_41, %c0_42] : memref<4x1x128xf32, #tpu.memory_space<vmem>>, vector<1x1x128xf32>
    %71 = vector.shape_cast %70 : vector<1x1x128xf32> to vector<1x128xf32>
    %cst_43 = arith.constant dense<0.000000e+00> : vector<128xf32>
    %72 = vector.multi_reduction <add>, %65, %cst_43 [0] : vector<16x128xf32> to vector<128xf32>
    %73 = vector.shape_cast %72 : vector<128xf32> to vector<1x128xf32>
    %74 = arith.mulf %65, %65 : vector<16x128xf32>
    %cst_44 = arith.constant dense<0.000000e+00> : vector<128xf32>
    %75 = vector.multi_reduction <add>, %74, %cst_44 [0] : vector<16x128xf32> to vector<128xf32>
    %76 = vector.shape_cast %75 : vector<128xf32> to vector<1x128xf32>
    %cst_45 = arith.constant 6.250000e-02 : f32
    %77 = vector.broadcast %cst_45 : f32 to vector<1x128xf32>
    %78 = arith.mulf %73, %77 : vector<1x128xf32>
    %cst_46 = arith.constant 6.250000e-02 : f32
    %79 = vector.broadcast %cst_46 : f32 to vector<1x128xf32>
    %80 = arith.mulf %76, %79 : vector<1x128xf32>
    %81 = arith.mulf %78, %78 : vector<1x128xf32>
    %82 = arith.subf %80, %81 : vector<1x128xf32>
    %83 = vector.broadcast %78 : vector<1x128xf32> to vector<16x128xf32>
    %84 = arith.subf %65, %83 : vector<16x128xf32>
    %cst_47 = arith.constant 9.99999974E-6 : f32
    %85 = vector.broadcast %cst_47 : f32 to vector<1x128xf32>
    %86 = arith.addf %82, %85 : vector<1x128xf32>
    %87 = math.rsqrt %86 : vector<1x128xf32>
    %88 = vector.broadcast %87 : vector<1x128xf32> to vector<16x128xf32>
    %89 = arith.mulf %84, %88 : vector<16x128xf32>
    %90 = vector.broadcast %69 : vector<1x128xf32> to vector<16x128xf32>
    %91 = arith.mulf %89, %90 : vector<16x128xf32>
    %92 = vector.broadcast %71 : vector<1x128xf32> to vector<16x128xf32>
    %93 = arith.addf %91, %92 : vector<16x128xf32>
    %cst_48 = arith.constant 0.000000e+00 : f32
    %94 = vector.broadcast %cst_48 : f32 to vector<16x128xf32>
    %95 = arith.maximumf %93, %94 : vector<16x128xf32>
    %c0_49 = arith.constant 0 : index
    %c0_50 = arith.constant 0 : index
    %c0_51 = arith.constant 0 : index
    %96 = vector.load %arg17[%c0_49, %c0_50, %c0_51] : memref<4x1x128xf32, #tpu.memory_space<vmem>>, vector<1x1x128xf32>
    %97 = vector.shape_cast %96 : vector<1x1x128xf32> to vector<1x128xf32>
    %c0_52 = arith.constant 0 : index
    %c0_53 = arith.constant 0 : index
    %c0_54 = arith.constant 0 : index
    %98 = vector.load %arg18[%c0_52, %c0_53, %c0_54] : memref<4x1x128xf32, #tpu.memory_space<vmem>>, vector<1x1x128xf32>
    %99 = vector.shape_cast %98 : vector<1x1x128xf32> to vector<1x128xf32>
    %cst_55 = arith.constant dense<0.000000e+00> : vector<128xf32>
    %100 = vector.multi_reduction <add>, %67, %cst_55 [0] : vector<32x128xf32> to vector<128xf32>
    %101 = vector.shape_cast %100 : vector<128xf32> to vector<1x128xf32>
    %102 = arith.mulf %67, %67 : vector<32x128xf32>
    %cst_56 = arith.constant dense<0.000000e+00> : vector<128xf32>
    %103 = vector.multi_reduction <add>, %102, %cst_56 [0] : vector<32x128xf32> to vector<128xf32>
    %104 = vector.shape_cast %103 : vector<128xf32> to vector<1x128xf32>
    %cst_57 = arith.constant 3.125000e-02 : f32
    %105 = vector.broadcast %cst_57 : f32 to vector<1x128xf32>
    %106 = arith.mulf %101, %105 : vector<1x128xf32>
    %cst_58 = arith.constant 3.125000e-02 : f32
    %107 = vector.broadcast %cst_58 : f32 to vector<1x128xf32>
    %108 = arith.mulf %104, %107 : vector<1x128xf32>
    %109 = arith.mulf %106, %106 : vector<1x128xf32>
    %110 = arith.subf %108, %109 : vector<1x128xf32>
    %111 = vector.broadcast %106 : vector<1x128xf32> to vector<32x128xf32>
    %112 = arith.subf %67, %111 : vector<32x128xf32>
    %cst_59 = arith.constant 9.99999974E-6 : f32
    %113 = vector.broadcast %cst_59 : f32 to vector<1x128xf32>
    %114 = arith.addf %110, %113 : vector<1x128xf32>
    %115 = math.rsqrt %114 : vector<1x128xf32>
    %116 = vector.broadcast %115 : vector<1x128xf32> to vector<32x128xf32>
    %117 = arith.mulf %112, %116 : vector<32x128xf32>
    %118 = vector.broadcast %97 : vector<1x128xf32> to vector<32x128xf32>
    %119 = arith.mulf %117, %118 : vector<32x128xf32>
    %120 = vector.broadcast %99 : vector<1x128xf32> to vector<32x128xf32>
    %121 = arith.addf %119, %120 : vector<32x128xf32>
    %cst_60 = arith.constant 0.000000e+00 : f32
    %122 = vector.broadcast %cst_60 : f32 to vector<32x128xf32>
    %123 = arith.maximumf %121, %122 : vector<32x128xf32>
    %124 = arith.addf %10, %95 : vector<16x128xf32>
    %125 = arith.addf %18, %123 : vector<32x128xf32>
    %126 = arith.truncf %124 : vector<16x128xf32> to vector<16x128xbf16>
    %c1 = arith.constant 1 : index
    %c0_61 = arith.constant 0 : index
    %c0_62 = arith.constant 0 : index
    %127 = vector.load %arg11[%c1, %c0_61, %c0_62] : memref<4x128x512xbf16, #tpu.memory_space<vmem>>, vector<1x128x512xbf16>
    %128 = vector.shape_cast %127 : vector<1x128x512xbf16> to vector<128x512xbf16>
    %cst_63 = arith.constant dense<0.000000e+00> : vector<16x512xf32>
    %129 = tpu.matmul %126, %128, %cst_63 {dimension_numbers = #tpu.dot_dimension_numbers<[1], [0], [0], [1], [0, 0, 1, 1], [], []>} : vector<16x128xbf16>, vector<128x512xbf16>, vector<16x512xf32> -> vector<16x512xf32>
    %c1_64 = arith.constant 1 : index
    %c0_65 = arith.constant 0 : index
    %c0_66 = arith.constant 0 : index
    %130 = vector.load %arg12[%c1_64, %c0_65, %c0_66] : memref<4x1x512xf32, #tpu.memory_space<vmem>>, vector<1x1x512xf32>
    %131 = vector.shape_cast %130 : vector<1x1x512xf32> to vector<1x512xf32>
    %132 = vector.broadcast %131 : vector<1x512xf32> to vector<16x512xf32>
    %133 = arith.addf %129, %132 : vector<16x512xf32>
    %134 = vector.extract_strided_slice %133 {offsets = [0, 0], sizes = [16, 128], strides = [1, 1]} : vector<16x512xf32> to vector<16x128xf32>
    %135 = vector.extract_strided_slice %133 {offsets = [0, 128], sizes = [16, 128], strides = [1, 1]} : vector<16x512xf32> to vector<16x128xf32>
    %136 = vector.extract_strided_slice %133 {offsets = [0, 256], sizes = [16, 128], strides = [1, 1]} : vector<16x512xf32> to vector<16x128xf32>
    %137 = vector.extract_strided_slice %133 {offsets = [0, 384], sizes = [16, 128], strides = [1, 1]} : vector<16x512xf32> to vector<16x128xf32>
    %c1_67 = arith.constant 1 : index
    %c0_68 = arith.constant 0 : index
    %c0_69 = arith.constant 0 : index
    %138 = vector.load %arg13[%c1_67, %c0_68, %c0_69] : memref<4x128x256xbf16, #tpu.memory_space<vmem>>, vector<1x128x256xbf16>
    %139 = vector.shape_cast %138 : vector<1x128x256xbf16> to vector<128x256xbf16>
    %140 = tpu.concatenate %136, %135 in 1 : vector<16x128xf32>, vector<16x128xf32> -> vector<16x256xf32>
    %141 = arith.truncf %140 : vector<16x256xf32> to vector<16x256xbf16>
    %cst_70 = arith.constant 0.000000e+00 : f32
    %142 = vector.broadcast %cst_70 : f32 to vector<16x128xf32>
    %143 = tpu.concatenate %137, %142 in 1 : vector<16x128xf32>, vector<16x128xf32> -> vector<16x256xf32>
    %144 = arith.truncf %143 : vector<16x256xf32> to vector<16x256xbf16>
    %145 = tpu.concatenate %139, %141, %144 in 0 : vector<128x256xbf16>, vector<16x256xbf16>, vector<16x256xbf16> -> vector<160x256xbf16>
    %146 = arith.truncf %125 : vector<32x128xf32> to vector<32x128xbf16>
    %147 = tpu.concatenate %146, %0 in 1 : vector<32x128xbf16>, vector<32x32xbf16> -> vector<32x160xbf16>
    %cst_71 = arith.constant dense<0.000000e+00> : vector<32x256xf32>
    %148 = tpu.matmul %147, %145, %cst_71 {dimension_numbers = #tpu.dot_dimension_numbers<[1], [0], [0], [1], [0, 0, 1, 1], [], []>} : vector<32x160xbf16>, vector<160x256xbf16>, vector<32x256xf32> -> vector<32x256xf32>
    %c1_72 = arith.constant 1 : index
    %c0_73 = arith.constant 0 : index
    %c0_74 = arith.constant 0 : index
    %149 = vector.load %arg14[%c1_72, %c0_73, %c0_74] : memref<4x1x256xf32, #tpu.memory_space<vmem>>, vector<1x1x256xf32>
    %150 = vector.shape_cast %149 : vector<1x1x256xf32> to vector<1x256xf32>
    %151 = vector.broadcast %150 : vector<1x256xf32> to vector<32x256xf32>
    %152 = arith.addf %148, %151 : vector<32x256xf32>
    %153 = vector.extract_strided_slice %152 {offsets = [0, 0], sizes = [32, 128], strides = [1, 1]} : vector<32x256xf32> to vector<32x128xf32>
    %154 = vector.extract_strided_slice %152 {offsets = [0, 128], sizes = [32, 128], strides = [1, 1]} : vector<32x256xf32> to vector<32x128xf32>
    %155 = arith.negf %153 : vector<32x128xf32>
    %156 = math.exp %155 : vector<32x128xf32>
    %cst_75 = arith.constant 1.000000e+00 : f32
    %157 = vector.broadcast %cst_75 : f32 to vector<32x128xf32>
    %158 = arith.addf %157, %156 : vector<32x128xf32>
    %159 = arith.divf %157, %158 : vector<32x128xf32>
    %160 = arith.mulf %159, %154 : vector<32x128xf32>
    %161 = tpu.concatenate %160, %159 in 1 : vector<32x128xf32>, vector<32x128xf32> -> vector<32x256xf32>
    %162 = arith.truncf %161 : vector<32x256xf32> to vector<32x256xbf16>
    %cst_76 = arith.constant dense<0.000000e+00> : vector<16x256xf32>
    %163 = tpu.matmul %1, %162, %cst_76 {dimension_numbers = #tpu.dot_dimension_numbers<[0], [0], [1], [1], [0, 1, 1, 1], [], []>} : vector<32x16xbf16>, vector<32x256xbf16>, vector<16x256xf32> -> vector<16x256xf32>
    %164 = vector.extract_strided_slice %163 {offsets = [0, 0], sizes = [16, 128], strides = [1, 1]} : vector<16x256xf32> to vector<16x128xf32>
    %165 = vector.extract_strided_slice %163 {offsets = [0, 128], sizes = [16, 128], strides = [1, 1]} : vector<16x256xf32> to vector<16x128xf32>
    %cst_77 = arith.constant 9.99999997E-7 : f32
    %166 = vector.broadcast %cst_77 : f32 to vector<16x128xf32>
    %167 = arith.addf %165, %166 : vector<16x128xf32>
    %168 = tpu.reciprocal %167 {approx = true} : vector<16x128xf32> -> vector<16x128xf32>
    %169 = arith.mulf %164, %168 : vector<16x128xf32>
    %170 = arith.addf %134, %169 : vector<16x128xf32>
    %171 = vector.broadcast %2 : vector<16x1xf32> to vector<16x128xf32>
    %172 = arith.mulf %170, %171 : vector<16x128xf32>
    %173 = vector.broadcast %3 : vector<32x1xf32> to vector<32x128xf32>
    %174 = arith.mulf %153, %173 : vector<32x128xf32>
    %c1_78 = arith.constant 1 : index
    %c0_79 = arith.constant 0 : index
    %c0_80 = arith.constant 0 : index
    %175 = vector.load %arg15[%c1_78, %c0_79, %c0_80] : memref<4x1x128xf32, #tpu.memory_space<vmem>>, vector<1x1x128xf32>
    %176 = vector.shape_cast %175 : vector<1x1x128xf32> to vector<1x128xf32>
    %c1_81 = arith.constant 1 : index
    %c0_82 = arith.constant 0 : index
    %c0_83 = arith.constant 0 : index
    %177 = vector.load %arg16[%c1_81, %c0_82, %c0_83] : memref<4x1x128xf32, #tpu.memory_space<vmem>>, vector<1x1x128xf32>
    %178 = vector.shape_cast %177 : vector<1x1x128xf32> to vector<1x128xf32>
    %cst_84 = arith.constant dense<0.000000e+00> : vector<128xf32>
    %179 = vector.multi_reduction <add>, %172, %cst_84 [0] : vector<16x128xf32> to vector<128xf32>
    %180 = vector.shape_cast %179 : vector<128xf32> to vector<1x128xf32>
    %181 = arith.mulf %172, %172 : vector<16x128xf32>
    %cst_85 = arith.constant dense<0.000000e+00> : vector<128xf32>
    %182 = vector.multi_reduction <add>, %181, %cst_85 [0] : vector<16x128xf32> to vector<128xf32>
    %183 = vector.shape_cast %182 : vector<128xf32> to vector<1x128xf32>
    %cst_86 = arith.constant 6.250000e-02 : f32
    %184 = vector.broadcast %cst_86 : f32 to vector<1x128xf32>
    %185 = arith.mulf %180, %184 : vector<1x128xf32>
    %cst_87 = arith.constant 6.250000e-02 : f32
    %186 = vector.broadcast %cst_87 : f32 to vector<1x128xf32>
    %187 = arith.mulf %183, %186 : vector<1x128xf32>
    %188 = arith.mulf %185, %185 : vector<1x128xf32>
    %189 = arith.subf %187, %188 : vector<1x128xf32>
    %190 = vector.broadcast %185 : vector<1x128xf32> to vector<16x128xf32>
    %191 = arith.subf %172, %190 : vector<16x128xf32>
    %cst_88 = arith.constant 9.99999974E-6 : f32
    %192 = vector.broadcast %cst_88 : f32 to vector<1x128xf32>
    %193 = arith.addf %189, %192 : vector<1x128xf32>
    %194 = math.rsqrt %193 : vector<1x128xf32>
    %195 = vector.broadcast %194 : vector<1x128xf32> to vector<16x128xf32>
    %196 = arith.mulf %191, %195 : vector<16x128xf32>
    %197 = vector.broadcast %176 : vector<1x128xf32> to vector<16x128xf32>
    %198 = arith.mulf %196, %197 : vector<16x128xf32>
    %199 = vector.broadcast %178 : vector<1x128xf32> to vector<16x128xf32>
    %200 = arith.addf %198, %199 : vector<16x128xf32>
    %cst_89 = arith.constant 0.000000e+00 : f32
    %201 = vector.broadcast %cst_89 : f32 to vector<16x128xf32>
    %202 = arith.maximumf %200, %201 : vector<16x128xf32>
    %c1_90 = arith.constant 1 : index
    %c0_91 = arith.constant 0 : index
    %c0_92 = arith.constant 0 : index
    %203 = vector.load %arg17[%c1_90, %c0_91, %c0_92] : memref<4x1x128xf32, #tpu.memory_space<vmem>>, vector<1x1x128xf32>
    %204 = vector.shape_cast %203 : vector<1x1x128xf32> to vector<1x128xf32>
    %c1_93 = arith.constant 1 : index
    %c0_94 = arith.constant 0 : index
    %c0_95 = arith.constant 0 : index
    %205 = vector.load %arg18[%c1_93, %c0_94, %c0_95] : memref<4x1x128xf32, #tpu.memory_space<vmem>>, vector<1x1x128xf32>
    %206 = vector.shape_cast %205 : vector<1x1x128xf32> to vector<1x128xf32>
    %cst_96 = arith.constant dense<0.000000e+00> : vector<128xf32>
    %207 = vector.multi_reduction <add>, %174, %cst_96 [0] : vector<32x128xf32> to vector<128xf32>
    %208 = vector.shape_cast %207 : vector<128xf32> to vector<1x128xf32>
    %209 = arith.mulf %174, %174 : vector<32x128xf32>
    %cst_97 = arith.constant dense<0.000000e+00> : vector<128xf32>
    %210 = vector.multi_reduction <add>, %209, %cst_97 [0] : vector<32x128xf32> to vector<128xf32>
    %211 = vector.shape_cast %210 : vector<128xf32> to vector<1x128xf32>
    %cst_98 = arith.constant 3.125000e-02 : f32
    %212 = vector.broadcast %cst_98 : f32 to vector<1x128xf32>
    %213 = arith.mulf %208, %212 : vector<1x128xf32>
    %cst_99 = arith.constant 3.125000e-02 : f32
    %214 = vector.broadcast %cst_99 : f32 to vector<1x128xf32>
    %215 = arith.mulf %211, %214 : vector<1x128xf32>
    %216 = arith.mulf %213, %213 : vector<1x128xf32>
    %217 = arith.subf %215, %216 : vector<1x128xf32>
    %218 = vector.broadcast %213 : vector<1x128xf32> to vector<32x128xf32>
    %219 = arith.subf %174, %218 : vector<32x128xf32>
    %cst_100 = arith.constant 9.99999974E-6 : f32
    %220 = vector.broadcast %cst_100 : f32 to vector<1x128xf32>
    %221 = arith.addf %217, %220 : vector<1x128xf32>
    %222 = math.rsqrt %221 : vector<1x128xf32>
    %223 = vector.broadcast %222 : vector<1x128xf32> to vector<32x128xf32>
    %224 = arith.mulf %219, %223 : vector<32x128xf32>
    %225 = vector.broadcast %204 : vector<1x128xf32> to vector<32x128xf32>
    %226 = arith.mulf %224, %225 : vector<32x128xf32>
    %227 = vector.broadcast %206 : vector<1x128xf32> to vector<32x128xf32>
    %228 = arith.addf %226, %227 : vector<32x128xf32>
    %cst_101 = arith.constant 0.000000e+00 : f32
    %229 = vector.broadcast %cst_101 : f32 to vector<32x128xf32>
    %230 = arith.maximumf %228, %229 : vector<32x128xf32>
    %231 = arith.addf %124, %202 : vector<16x128xf32>
    %232 = arith.addf %125, %230 : vector<32x128xf32>
    %233 = arith.truncf %231 : vector<16x128xf32> to vector<16x128xbf16>
    %c2 = arith.constant 2 : index
    %c0_102 = arith.constant 0 : index
    %c0_103 = arith.constant 0 : index
    %234 = vector.load %arg11[%c2, %c0_102, %c0_103] : memref<4x128x512xbf16, #tpu.memory_space<vmem>>, vector<1x128x512xbf16>
    %235 = vector.shape_cast %234 : vector<1x128x512xbf16> to vector<128x512xbf16>
    %cst_104 = arith.constant dense<0.000000e+00> : vector<16x512xf32>
    %236 = tpu.matmul %233, %235, %cst_104 {dimension_numbers = #tpu.dot_dimension_numbers<[1], [0], [0], [1], [0, 0, 1, 1], [], []>} : vector<16x128xbf16>, vector<128x512xbf16>, vector<16x512xf32> -> vector<16x512xf32>
    %c2_105 = arith.constant 2 : index
    %c0_106 = arith.constant 0 : index
    %c0_107 = arith.constant 0 : index
    %237 = vector.load %arg12[%c2_105, %c0_106, %c0_107] : memref<4x1x512xf32, #tpu.memory_space<vmem>>, vector<1x1x512xf32>
    %238 = vector.shape_cast %237 : vector<1x1x512xf32> to vector<1x512xf32>
    %239 = vector.broadcast %238 : vector<1x512xf32> to vector<16x512xf32>
    %240 = arith.addf %236, %239 : vector<16x512xf32>
    %241 = vector.extract_strided_slice %240 {offsets = [0, 0], sizes = [16, 128], strides = [1, 1]} : vector<16x512xf32> to vector<16x128xf32>
    %242 = vector.extract_strided_slice %240 {offsets = [0, 128], sizes = [16, 128], strides = [1, 1]} : vector<16x512xf32> to vector<16x128xf32>
    %243 = vector.extract_strided_slice %240 {offsets = [0, 256], sizes = [16, 128], strides = [1, 1]} : vector<16x512xf32> to vector<16x128xf32>
    %244 = vector.extract_strided_slice %240 {offsets = [0, 384], sizes = [16, 128], strides = [1, 1]} : vector<16x512xf32> to vector<16x128xf32>
    %c2_108 = arith.constant 2 : index
    %c0_109 = arith.constant 0 : index
    %c0_110 = arith.constant 0 : index
    %245 = vector.load %arg13[%c2_108, %c0_109, %c0_110] : memref<4x128x256xbf16, #tpu.memory_space<vmem>>, vector<1x128x256xbf16>
    %246 = vector.shape_cast %245 : vector<1x128x256xbf16> to vector<128x256xbf16>
    %247 = tpu.concatenate %243, %242 in 1 : vector<16x128xf32>, vector<16x128xf32> -> vector<16x256xf32>
    %248 = arith.truncf %247 : vector<16x256xf32> to vector<16x256xbf16>
    %cst_111 = arith.constant 0.000000e+00 : f32
    %249 = vector.broadcast %cst_111 : f32 to vector<16x128xf32>
    %250 = tpu.concatenate %244, %249 in 1 : vector<16x128xf32>, vector<16x128xf32> -> vector<16x256xf32>
    %251 = arith.truncf %250 : vector<16x256xf32> to vector<16x256xbf16>
    %252 = tpu.concatenate %246, %248, %251 in 0 : vector<128x256xbf16>, vector<16x256xbf16>, vector<16x256xbf16> -> vector<160x256xbf16>
    %253 = arith.truncf %232 : vector<32x128xf32> to vector<32x128xbf16>
    %254 = tpu.concatenate %253, %0 in 1 : vector<32x128xbf16>, vector<32x32xbf16> -> vector<32x160xbf16>
    %cst_112 = arith.constant dense<0.000000e+00> : vector<32x256xf32>
    %255 = tpu.matmul %254, %252, %cst_112 {dimension_numbers = #tpu.dot_dimension_numbers<[1], [0], [0], [1], [0, 0, 1, 1], [], []>} : vector<32x160xbf16>, vector<160x256xbf16>, vector<32x256xf32> -> vector<32x256xf32>
    %c2_113 = arith.constant 2 : index
    %c0_114 = arith.constant 0 : index
    %c0_115 = arith.constant 0 : index
    %256 = vector.load %arg14[%c2_113, %c0_114, %c0_115] : memref<4x1x256xf32, #tpu.memory_space<vmem>>, vector<1x1x256xf32>
    %257 = vector.shape_cast %256 : vector<1x1x256xf32> to vector<1x256xf32>
    %258 = vector.broadcast %257 : vector<1x256xf32> to vector<32x256xf32>
    %259 = arith.addf %255, %258 : vector<32x256xf32>
    %260 = vector.extract_strided_slice %259 {offsets = [0, 0], sizes = [32, 128], strides = [1, 1]} : vector<32x256xf32> to vector<32x128xf32>
    %261 = vector.extract_strided_slice %259 {offsets = [0, 128], sizes = [32, 128], strides = [1, 1]} : vector<32x256xf32> to vector<32x128xf32>
    %262 = arith.negf %260 : vector<32x128xf32>
    %263 = math.exp %262 : vector<32x128xf32>
    %cst_116 = arith.constant 1.000000e+00 : f32
    %264 = vector.broadcast %cst_116 : f32 to vector<32x128xf32>
    %265 = arith.addf %264, %263 : vector<32x128xf32>
    %266 = arith.divf %264, %265 : vector<32x128xf32>
    %267 = arith.mulf %266, %261 : vector<32x128xf32>
    %268 = tpu.concatenate %267, %266 in 1 : vector<32x128xf32>, vector<32x128xf32> -> vector<32x256xf32>
    %269 = arith.truncf %268 : vector<32x256xf32> to vector<32x256xbf16>
    %cst_117 = arith.constant dense<0.000000e+00> : vector<16x256xf32>
    %270 = tpu.matmul %1, %269, %cst_117 {dimension_numbers = #tpu.dot_dimension_numbers<[0], [0], [1], [1], [0, 1, 1, 1], [], []>} : vector<32x16xbf16>, vector<32x256xbf16>, vector<16x256xf32> -> vector<16x256xf32>
    %271 = vector.extract_strided_slice %270 {offsets = [0, 0], sizes = [16, 128], strides = [1, 1]} : vector<16x256xf32> to vector<16x128xf32>
    %272 = vector.extract_strided_slice %270 {offsets = [0, 128], sizes = [16, 128], strides = [1, 1]} : vector<16x256xf32> to vector<16x128xf32>
    %cst_118 = arith.constant 9.99999997E-7 : f32
    %273 = vector.broadcast %cst_118 : f32 to vector<16x128xf32>
    %274 = arith.addf %272, %273 : vector<16x128xf32>
    %275 = tpu.reciprocal %274 {approx = true} : vector<16x128xf32> -> vector<16x128xf32>
    %276 = arith.mulf %271, %275 : vector<16x128xf32>
    %277 = arith.addf %241, %276 : vector<16x128xf32>
    %278 = vector.broadcast %2 : vector<16x1xf32> to vector<16x128xf32>
    %279 = arith.mulf %277, %278 : vector<16x128xf32>
    %280 = vector.broadcast %3 : vector<32x1xf32> to vector<32x128xf32>
    %281 = arith.mulf %260, %280 : vector<32x128xf32>
    %c2_119 = arith.constant 2 : index
    %c0_120 = arith.constant 0 : index
    %c0_121 = arith.constant 0 : index
    %282 = vector.load %arg15[%c2_119, %c0_120, %c0_121] : memref<4x1x128xf32, #tpu.memory_space<vmem>>, vector<1x1x128xf32>
    %283 = vector.shape_cast %282 : vector<1x1x128xf32> to vector<1x128xf32>
    %c2_122 = arith.constant 2 : index
    %c0_123 = arith.constant 0 : index
    %c0_124 = arith.constant 0 : index
    %284 = vector.load %arg16[%c2_122, %c0_123, %c0_124] : memref<4x1x128xf32, #tpu.memory_space<vmem>>, vector<1x1x128xf32>
    %285 = vector.shape_cast %284 : vector<1x1x128xf32> to vector<1x128xf32>
    %cst_125 = arith.constant dense<0.000000e+00> : vector<128xf32>
    %286 = vector.multi_reduction <add>, %279, %cst_125 [0] : vector<16x128xf32> to vector<128xf32>
    %287 = vector.shape_cast %286 : vector<128xf32> to vector<1x128xf32>
    %288 = arith.mulf %279, %279 : vector<16x128xf32>
    %cst_126 = arith.constant dense<0.000000e+00> : vector<128xf32>
    %289 = vector.multi_reduction <add>, %288, %cst_126 [0] : vector<16x128xf32> to vector<128xf32>
    %290 = vector.shape_cast %289 : vector<128xf32> to vector<1x128xf32>
    %cst_127 = arith.constant 6.250000e-02 : f32
    %291 = vector.broadcast %cst_127 : f32 to vector<1x128xf32>
    %292 = arith.mulf %287, %291 : vector<1x128xf32>
    %cst_128 = arith.constant 6.250000e-02 : f32
    %293 = vector.broadcast %cst_128 : f32 to vector<1x128xf32>
    %294 = arith.mulf %290, %293 : vector<1x128xf32>
    %295 = arith.mulf %292, %292 : vector<1x128xf32>
    %296 = arith.subf %294, %295 : vector<1x128xf32>
    %297 = vector.broadcast %292 : vector<1x128xf32> to vector<16x128xf32>
    %298 = arith.subf %279, %297 : vector<16x128xf32>
    %cst_129 = arith.constant 9.99999974E-6 : f32
    %299 = vector.broadcast %cst_129 : f32 to vector<1x128xf32>
    %300 = arith.addf %296, %299 : vector<1x128xf32>
    %301 = math.rsqrt %300 : vector<1x128xf32>
    %302 = vector.broadcast %301 : vector<1x128xf32> to vector<16x128xf32>
    %303 = arith.mulf %298, %302 : vector<16x128xf32>
    %304 = vector.broadcast %283 : vector<1x128xf32> to vector<16x128xf32>
    %305 = arith.mulf %303, %304 : vector<16x128xf32>
    %306 = vector.broadcast %285 : vector<1x128xf32> to vector<16x128xf32>
    %307 = arith.addf %305, %306 : vector<16x128xf32>
    %cst_130 = arith.constant 0.000000e+00 : f32
    %308 = vector.broadcast %cst_130 : f32 to vector<16x128xf32>
    %309 = arith.maximumf %307, %308 : vector<16x128xf32>
    %c2_131 = arith.constant 2 : index
    %c0_132 = arith.constant 0 : index
    %c0_133 = arith.constant 0 : index
    %310 = vector.load %arg17[%c2_131, %c0_132, %c0_133] : memref<4x1x128xf32, #tpu.memory_space<vmem>>, vector<1x1x128xf32>
    %311 = vector.shape_cast %310 : vector<1x1x128xf32> to vector<1x128xf32>
    %c2_134 = arith.constant 2 : index
    %c0_135 = arith.constant 0 : index
    %c0_136 = arith.constant 0 : index
    %312 = vector.load %arg18[%c2_134, %c0_135, %c0_136] : memref<4x1x128xf32, #tpu.memory_space<vmem>>, vector<1x1x128xf32>
    %313 = vector.shape_cast %312 : vector<1x1x128xf32> to vector<1x128xf32>
    %cst_137 = arith.constant dense<0.000000e+00> : vector<128xf32>
    %314 = vector.multi_reduction <add>, %281, %cst_137 [0] : vector<32x128xf32> to vector<128xf32>
    %315 = vector.shape_cast %314 : vector<128xf32> to vector<1x128xf32>
    %316 = arith.mulf %281, %281 : vector<32x128xf32>
    %cst_138 = arith.constant dense<0.000000e+00> : vector<128xf32>
    %317 = vector.multi_reduction <add>, %316, %cst_138 [0] : vector<32x128xf32> to vector<128xf32>
    %318 = vector.shape_cast %317 : vector<128xf32> to vector<1x128xf32>
    %cst_139 = arith.constant 3.125000e-02 : f32
    %319 = vector.broadcast %cst_139 : f32 to vector<1x128xf32>
    %320 = arith.mulf %315, %319 : vector<1x128xf32>
    %cst_140 = arith.constant 3.125000e-02 : f32
    %321 = vector.broadcast %cst_140 : f32 to vector<1x128xf32>
    %322 = arith.mulf %318, %321 : vector<1x128xf32>
    %323 = arith.mulf %320, %320 : vector<1x128xf32>
    %324 = arith.subf %322, %323 : vector<1x128xf32>
    %325 = vector.broadcast %320 : vector<1x128xf32> to vector<32x128xf32>
    %326 = arith.subf %281, %325 : vector<32x128xf32>
    %cst_141 = arith.constant 9.99999974E-6 : f32
    %327 = vector.broadcast %cst_141 : f32 to vector<1x128xf32>
    %328 = arith.addf %324, %327 : vector<1x128xf32>
    %329 = math.rsqrt %328 : vector<1x128xf32>
    %330 = vector.broadcast %329 : vector<1x128xf32> to vector<32x128xf32>
    %331 = arith.mulf %326, %330 : vector<32x128xf32>
    %332 = vector.broadcast %311 : vector<1x128xf32> to vector<32x128xf32>
    %333 = arith.mulf %331, %332 : vector<32x128xf32>
    %334 = vector.broadcast %313 : vector<1x128xf32> to vector<32x128xf32>
    %335 = arith.addf %333, %334 : vector<32x128xf32>
    %cst_142 = arith.constant 0.000000e+00 : f32
    %336 = vector.broadcast %cst_142 : f32 to vector<32x128xf32>
    %337 = arith.maximumf %335, %336 : vector<32x128xf32>
    %338 = arith.addf %231, %309 : vector<16x128xf32>
    %339 = arith.addf %232, %337 : vector<32x128xf32>
    %340 = arith.truncf %338 : vector<16x128xf32> to vector<16x128xbf16>
    %c3 = arith.constant 3 : index
    %c0_143 = arith.constant 0 : index
    %c0_144 = arith.constant 0 : index
    %341 = vector.load %arg11[%c3, %c0_143, %c0_144] : memref<4x128x512xbf16, #tpu.memory_space<vmem>>, vector<1x128x512xbf16>
    %342 = vector.shape_cast %341 : vector<1x128x512xbf16> to vector<128x512xbf16>
    %cst_145 = arith.constant dense<0.000000e+00> : vector<16x512xf32>
    %343 = tpu.matmul %340, %342, %cst_145 {dimension_numbers = #tpu.dot_dimension_numbers<[1], [0], [0], [1], [0, 0, 1, 1], [], []>} : vector<16x128xbf16>, vector<128x512xbf16>, vector<16x512xf32> -> vector<16x512xf32>
    %c3_146 = arith.constant 3 : index
    %c0_147 = arith.constant 0 : index
    %c0_148 = arith.constant 0 : index
    %344 = vector.load %arg12[%c3_146, %c0_147, %c0_148] : memref<4x1x512xf32, #tpu.memory_space<vmem>>, vector<1x1x512xf32>
    %345 = vector.shape_cast %344 : vector<1x1x512xf32> to vector<1x512xf32>
    %346 = vector.broadcast %345 : vector<1x512xf32> to vector<16x512xf32>
    %347 = arith.addf %343, %346 : vector<16x512xf32>
    %348 = vector.extract_strided_slice %347 {offsets = [0, 0], sizes = [16, 128], strides = [1, 1]} : vector<16x512xf32> to vector<16x128xf32>
    %349 = vector.extract_strided_slice %347 {offsets = [0, 128], sizes = [16, 128], strides = [1, 1]} : vector<16x512xf32> to vector<16x128xf32>
    %350 = vector.extract_strided_slice %347 {offsets = [0, 256], sizes = [16, 128], strides = [1, 1]} : vector<16x512xf32> to vector<16x128xf32>
    %351 = vector.extract_strided_slice %347 {offsets = [0, 384], sizes = [16, 128], strides = [1, 1]} : vector<16x512xf32> to vector<16x128xf32>
    %c3_149 = arith.constant 3 : index
    %c0_150 = arith.constant 0 : index
    %c0_151 = arith.constant 0 : index
    %352 = vector.load %arg13[%c3_149, %c0_150, %c0_151] : memref<4x128x256xbf16, #tpu.memory_space<vmem>>, vector<1x128x256xbf16>
    %353 = vector.shape_cast %352 : vector<1x128x256xbf16> to vector<128x256xbf16>
    %354 = tpu.concatenate %350, %349 in 1 : vector<16x128xf32>, vector<16x128xf32> -> vector<16x256xf32>
    %355 = arith.truncf %354 : vector<16x256xf32> to vector<16x256xbf16>
    %cst_152 = arith.constant 0.000000e+00 : f32
    %356 = vector.broadcast %cst_152 : f32 to vector<16x128xf32>
    %357 = tpu.concatenate %351, %356 in 1 : vector<16x128xf32>, vector<16x128xf32> -> vector<16x256xf32>
    %358 = arith.truncf %357 : vector<16x256xf32> to vector<16x256xbf16>
    %359 = tpu.concatenate %353, %355, %358 in 0 : vector<128x256xbf16>, vector<16x256xbf16>, vector<16x256xbf16> -> vector<160x256xbf16>
    %360 = arith.truncf %339 : vector<32x128xf32> to vector<32x128xbf16>
    %361 = tpu.concatenate %360, %0 in 1 : vector<32x128xbf16>, vector<32x32xbf16> -> vector<32x160xbf16>
    %cst_153 = arith.constant dense<0.000000e+00> : vector<32x256xf32>
    %362 = tpu.matmul %361, %359, %cst_153 {dimension_numbers = #tpu.dot_dimension_numbers<[1], [0], [0], [1], [0, 0, 1, 1], [], []>} : vector<32x160xbf16>, vector<160x256xbf16>, vector<32x256xf32> -> vector<32x256xf32>
    %c3_154 = arith.constant 3 : index
    %c0_155 = arith.constant 0 : index
    %c0_156 = arith.constant 0 : index
    %363 = vector.load %arg14[%c3_154, %c0_155, %c0_156] : memref<4x1x256xf32, #tpu.memory_space<vmem>>, vector<1x1x256xf32>
    %364 = vector.shape_cast %363 : vector<1x1x256xf32> to vector<1x256xf32>
    %365 = vector.broadcast %364 : vector<1x256xf32> to vector<32x256xf32>
    %366 = arith.addf %362, %365 : vector<32x256xf32>
    %367 = vector.extract_strided_slice %366 {offsets = [0, 0], sizes = [32, 128], strides = [1, 1]} : vector<32x256xf32> to vector<32x128xf32>
    %368 = vector.extract_strided_slice %366 {offsets = [0, 128], sizes = [32, 128], strides = [1, 1]} : vector<32x256xf32> to vector<32x128xf32>
    %369 = arith.negf %367 : vector<32x128xf32>
    %370 = math.exp %369 : vector<32x128xf32>
    %cst_157 = arith.constant 1.000000e+00 : f32
    %371 = vector.broadcast %cst_157 : f32 to vector<32x128xf32>
    %372 = arith.addf %371, %370 : vector<32x128xf32>
    %373 = arith.divf %371, %372 : vector<32x128xf32>
    %374 = arith.mulf %373, %368 : vector<32x128xf32>
    %375 = tpu.concatenate %374, %373 in 1 : vector<32x128xf32>, vector<32x128xf32> -> vector<32x256xf32>
    %376 = arith.truncf %375 : vector<32x256xf32> to vector<32x256xbf16>
    %cst_158 = arith.constant dense<0.000000e+00> : vector<16x256xf32>
    %377 = tpu.matmul %1, %376, %cst_158 {dimension_numbers = #tpu.dot_dimension_numbers<[0], [0], [1], [1], [0, 1, 1, 1], [], []>} : vector<32x16xbf16>, vector<32x256xbf16>, vector<16x256xf32> -> vector<16x256xf32>
    %378 = vector.extract_strided_slice %377 {offsets = [0, 0], sizes = [16, 128], strides = [1, 1]} : vector<16x256xf32> to vector<16x128xf32>
    %379 = vector.extract_strided_slice %377 {offsets = [0, 128], sizes = [16, 128], strides = [1, 1]} : vector<16x256xf32> to vector<16x128xf32>
    %cst_159 = arith.constant 9.99999997E-7 : f32
    %380 = vector.broadcast %cst_159 : f32 to vector<16x128xf32>
    %381 = arith.addf %379, %380 : vector<16x128xf32>
    %382 = tpu.reciprocal %381 {approx = true} : vector<16x128xf32> -> vector<16x128xf32>
    %383 = arith.mulf %378, %382 : vector<16x128xf32>
    %384 = arith.addf %348, %383 : vector<16x128xf32>
    %385 = vector.broadcast %2 : vector<16x1xf32> to vector<16x128xf32>
    %386 = arith.mulf %384, %385 : vector<16x128xf32>
    %c3_160 = arith.constant 3 : index
    %c0_161 = arith.constant 0 : index
    %c0_162 = arith.constant 0 : index
    %387 = vector.load %arg15[%c3_160, %c0_161, %c0_162] : memref<4x1x128xf32, #tpu.memory_space<vmem>>, vector<1x1x128xf32>
    %388 = vector.shape_cast %387 : vector<1x1x128xf32> to vector<1x128xf32>
    %c3_163 = arith.constant 3 : index
    %c0_164 = arith.constant 0 : index
    %c0_165 = arith.constant 0 : index
    %389 = vector.load %arg16[%c3_163, %c0_164, %c0_165] : memref<4x1x128xf32, #tpu.memory_space<vmem>>, vector<1x1x128xf32>
    %390 = vector.shape_cast %389 : vector<1x1x128xf32> to vector<1x128xf32>
    %cst_166 = arith.constant dense<0.000000e+00> : vector<128xf32>
    %391 = vector.multi_reduction <add>, %386, %cst_166 [0] : vector<16x128xf32> to vector<128xf32>
    %392 = vector.shape_cast %391 : vector<128xf32> to vector<1x128xf32>
    %393 = arith.mulf %386, %386 : vector<16x128xf32>
    %cst_167 = arith.constant dense<0.000000e+00> : vector<128xf32>
    %394 = vector.multi_reduction <add>, %393, %cst_167 [0] : vector<16x128xf32> to vector<128xf32>
    %395 = vector.shape_cast %394 : vector<128xf32> to vector<1x128xf32>
    %cst_168 = arith.constant 6.250000e-02 : f32
    %396 = vector.broadcast %cst_168 : f32 to vector<1x128xf32>
    %397 = arith.mulf %392, %396 : vector<1x128xf32>
    %cst_169 = arith.constant 6.250000e-02 : f32
    %398 = vector.broadcast %cst_169 : f32 to vector<1x128xf32>
    %399 = arith.mulf %395, %398 : vector<1x128xf32>
    %400 = arith.mulf %397, %397 : vector<1x128xf32>
    %401 = arith.subf %399, %400 : vector<1x128xf32>
    %402 = vector.broadcast %397 : vector<1x128xf32> to vector<16x128xf32>
    %403 = arith.subf %386, %402 : vector<16x128xf32>
    %cst_170 = arith.constant 9.99999974E-6 : f32
    %404 = vector.broadcast %cst_170 : f32 to vector<1x128xf32>
    %405 = arith.addf %401, %404 : vector<1x128xf32>
    %406 = math.rsqrt %405 : vector<1x128xf32>
    %407 = vector.broadcast %406 : vector<1x128xf32> to vector<16x128xf32>
    %408 = arith.mulf %403, %407 : vector<16x128xf32>
    %409 = vector.broadcast %388 : vector<1x128xf32> to vector<16x128xf32>
    %410 = arith.mulf %408, %409 : vector<16x128xf32>
    %411 = vector.broadcast %390 : vector<1x128xf32> to vector<16x128xf32>
    %412 = arith.addf %410, %411 : vector<16x128xf32>
    %cst_171 = arith.constant 0.000000e+00 : f32
    %413 = vector.broadcast %cst_171 : f32 to vector<16x128xf32>
    %414 = arith.maximumf %412, %413 : vector<16x128xf32>
    %415 = arith.addf %338, %414 : vector<16x128xf32>
    %c0_172 = arith.constant 0 : index
    %c0_173 = arith.constant 0 : index
    %416 = vector.load %arg6[%c0_172, %c0_173] : memref<2x16xf32, #tpu.memory_space<vmem>>, vector<2x16xf32>
    %cst_174 = arith.constant dense<0.000000e+00> : vector<2x128xf32>
    %417 = tpu.matmul %416, %415, %cst_174 {dimension_numbers = #tpu.dot_dimension_numbers<[1], [0], [0], [1], [0, 0, 1, 1], [], []>} : vector<2x16xf32>, vector<16x128xf32>, vector<2x128xf32> -> vector<2x128xf32>
    %418 = arith.truncf %417 : vector<2x128xf32> to vector<2x128xbf16>
    %c0_175 = arith.constant 0 : index
    %c0_176 = arith.constant 0 : index
    %419 = vector.load %arg19[%c0_175, %c0_176] : memref<128x128xbf16, #tpu.memory_space<vmem>>, vector<128x128xbf16>
    %cst_177 = arith.constant dense<0.000000e+00> : vector<2x128xf32>
    %420 = tpu.matmul %418, %419, %cst_177 {dimension_numbers = #tpu.dot_dimension_numbers<[1], [0], [0], [1], [0, 0, 1, 1], [], []>} : vector<2x128xbf16>, vector<128x128xbf16>, vector<2x128xf32> -> vector<2x128xf32>
    %c0_178 = arith.constant 0 : index
    %c0_179 = arith.constant 0 : index
    %421 = vector.load %arg20[%c0_178, %c0_179] : memref<1x128xf32, #tpu.memory_space<vmem>>, vector<1x128xf32>
    %422 = vector.broadcast %421 : vector<1x128xf32> to vector<2x128xf32>
    %423 = arith.addf %420, %422 : vector<2x128xf32>
    %cst_180 = arith.constant 0.000000e+00 : f32
    %424 = vector.broadcast %cst_180 : f32 to vector<2x128xf32>
    %425 = arith.maximumf %423, %424 : vector<2x128xf32>
    %426 = arith.truncf %425 : vector<2x128xf32> to vector<2x128xbf16>
    %c0_181 = arith.constant 0 : index
    %c0_182 = arith.constant 0 : index
    %427 = vector.load %arg21[%c0_181, %c0_182] : memref<128x128xbf16, #tpu.memory_space<vmem>>, vector<128x128xbf16>
    %cst_183 = arith.constant dense<0.000000e+00> : vector<2x128xf32>
    %428 = tpu.matmul %426, %427, %cst_183 {dimension_numbers = #tpu.dot_dimension_numbers<[1], [0], [0], [1], [0, 0, 1, 1], [], []>} : vector<2x128xbf16>, vector<128x128xbf16>, vector<2x128xf32> -> vector<2x128xf32>
    %c0_184 = arith.constant 0 : index
    %c0_185 = arith.constant 0 : index
    %429 = vector.load %arg22[%c0_184, %c0_185] : memref<1x128xf32, #tpu.memory_space<vmem>>, vector<1x128xf32>
    %430 = vector.broadcast %429 : vector<1x128xf32> to vector<2x128xf32>
    %431 = arith.addf %428, %430 : vector<2x128xf32>
    %cst_186 = arith.constant 0.000000e+00 : f32
    %432 = vector.broadcast %cst_186 : f32 to vector<2x128xf32>
    %433 = arith.maximumf %431, %432 : vector<2x128xf32>
    %434 = arith.truncf %433 : vector<2x128xf32> to vector<2x128xbf16>
    %c0_187 = arith.constant 0 : index
    %c0_188 = arith.constant 0 : index
    %435 = vector.load %arg23[%c0_187, %c0_188] : memref<128x128xbf16, #tpu.memory_space<vmem>>, vector<128x128xbf16>
    %cst_189 = arith.constant dense<0.000000e+00> : vector<2x128xf32>
    %436 = tpu.matmul %434, %435, %cst_189 {dimension_numbers = #tpu.dot_dimension_numbers<[1], [0], [0], [1], [0, 0, 1, 1], [], []>} : vector<2x128xbf16>, vector<128x128xbf16>, vector<2x128xf32> -> vector<2x128xf32>
    %c0_190 = arith.constant 0 : index
    %c0_191 = arith.constant 0 : index
    %437 = vector.load %arg24[%c0_190, %c0_191] : memref<1x128xf32, #tpu.memory_space<vmem>>, vector<1x128xf32>
    %438 = vector.broadcast %437 : vector<1x128xf32> to vector<2x128xf32>
    %439 = arith.addf %436, %438 : vector<2x128xf32>
    %c0_192 = arith.constant 0 : index
    %c0_193 = arith.constant 0 : index
    %440 = vector.load %arg25[%c0_192, %c0_193] : memref<2x128xf32, #tpu.memory_space<vmem>>, vector<2x128xf32>
    tpu.vector_store %arg25[%c0_192, %c0_193], %439 {strides = array<i32>} : memref<2x128xf32, #tpu.memory_space<vmem>>, vector<2x128xf32>,
    return
  }
}

</mosaic_0001>

<bundles_post_ra>
// kernel: tpu_custom_call.1
= control target key start
LH: loop header
LB: loop body
LE: loop exit
PB: predicated region body
PF: predicated region fallthrough
CT: control target
= control target key end

     0   :  { %s5744_s0 = inlined_call_operand.hbm [shape: f32[16,128], index: 0, kind: input, shape index: {}]   ;;  %s5745_s1 = inlined_call_operand.vmem [shape: f32[32,1], index: 1, kind: input, shape index: {}]   ;;  %s5746_s2 = inlined_call_operand.vmem [shape: f32[16,1], index: 2, kind: input, shape index: {}]   ;;  %s5747_s3 = inlined_call_operand.vmem [shape: f32[32,1], index: 3, kind: input, shape index: {}]   ;;  %s5748_s4 = inlined_call_operand.hbm [shape: bf16[32,32], index: 4, kind: input, shape index: {}]   ;;  %s5749_s5 = inlined_call_operand.vmem [shape: bf16[32,16], index: 5, kind: input, shape index: {}]   ;;  %s5750_s6 = inlined_call_operand.hbm [shape: f32[2,16], index: 6, kind: input, shape index: {}]   ;;  %s5751_s7 = inlined_call_operand.vmem [shape: bf16[128,128], index: 7, kind: input, shape index: {}]   ;;  %s5752_s8 = inlined_call_operand.vmem [shape: f32[1,128], index: 8, kind: input, shape index: {}]   ;;  %s5753_s9 = inlined_call_operand.vmem [shape: f32[1,128], index: 9, kind: input, shape index: {}]   ;;  %s5754_s10 = inlined_call_operand.hbm [shape: f32[1,128], index: 10, kind: input, shape index: {}]   ;;  %s5755_s11 = inlined_call_operand.hbm [shape: bf16[4,128,512], index: 11, kind: input, shape index: {}]   ;;  %s5756_s12 = inlined_call_operand.hbm [shape: f32[4,1,512], index: 12, kind: input, shape index: {}]   ;;  %s5757_s13 = inlined_call_operand.hbm [shape: bf16[4,128,256], index: 13, kind: input, shape index: {}]   ;;  %s5758_s14 = inlined_call_operand.hbm [shape: f32[4,1,256], index: 14, kind: input, shape index: {}]   ;;  %s5759_s15 = inlined_call_operand.hbm [shape: f32[4,1,128], index: 15, kind: input, shape index: {}]   ;;  %s5760_s16 = inlined_call_operand.hbm [shape: f32[4,1,128], index: 16, kind: input, shape index: {}]   ;;  %s5761_s17 = inlined_call_operand.hbm [shape: f32[4,1,128], index: 17, kind: input, shape index: {}]   ;;  %s5762_s18 = inlined_call_operand.hbm [shape: f32[4,1,128], index: 18, kind: input, shape index: {}]   ;;  %s5763_s19 = inlined_call_operand.vmem [shape: bf16[128,128], index: 19, kind: input, shape index: {}]   ;;  %s5764_s20 = inlined_call_operand.hbm [shape: f32[1,128], index: 20, kind: input, shape index: {}]   ;;  %s5765_s21 = inlined_call_operand.hbm [shape: bf16[128,128], index: 21, kind: input, shape index: {}]   ;;  %s5766_s22 = inlined_call_operand.hbm [shape: f32[1,128], index: 22, kind: input, shape index: {}]   ;;  %s5767_s23 = inlined_call_operand.vmem [shape: bf16[128,128], index: 23, kind: input, shape index: {}]   ;;  %s5768_s24 = inlined_call_operand.vmem [shape: f32[1,128], index: 24, kind: input, shape index: {}]   ;;  %s5769_s25 = inlined_call_operand.hbm [shape: f32[2,128], index: 25, kind: output, shape index: {}]  }
   0x1   :  { %5779 = sst [smem:[#allocation36_spill]] %s5744_s0 }
   0x2   :  { %5780 = sst [smem:[#allocation37_spill]] %s5745_s1 }
   0x3   :  { %5781 = sst [smem:[#allocation38_spill]] %s5746_s2 }
   0x4   :  { %5782 = sst [smem:[#allocation39_spill]] %s5747_s3 }
   0x5   :  { %5783 = sst [smem:[#allocation40_spill]] %s5748_s4 }
   0x6   :  { %5784 = sst [smem:[#allocation41_spill]] %s5749_s5 }
   0x7   :  { %5785 = sst [smem:[#allocation42_spill]] %s5750_s6 }
   0x8   :  { %5786 = sst [smem:[#allocation43_spill]] %s5751_s7 }
   0x9   :  { %5787 = sst [smem:[#allocation44_spill]] %s5752_s8 }
   0xa   :  { %5788 = sst [smem:[#allocation45_spill]] %s5753_s9 }
   0xb   :  { %5789 = sst [smem:[#allocation46_spill]] %s5768_s24 }
   0xc   :  { %5790 = sst [smem:[#allocation47_spill]] %s5769_s25 }
   0xd   :  { %30 = vsyncpa [#allocation3], 0 }
   0xe   :  { %31 = vsyncpa [#allocation6], 0 }
   0xf   :  { %32 = vsyncpa [#allocation9], 0 }
  0x10   :  { %33 = vsyncpa [#allocation12], 0 }
  0x11   :  { %34 = vsyncpa [#allocation15], 0 }
  0x12   :  { %35 = vsyncpa [#allocation18], 0 }
  0x13   :  { %36 = vsyncpa [#allocation21], 0 }
  0x14   :  { %37 = vsyncpa [#allocation24], 0 }
  0x15   :  { %38 = vsyncpa [#allocation4], 0  ;;  %s4826_s29 = smov [#allocation5]   ;;  %s5791_s7 = sld [smem:[#allocation40_spill]] }
  0x16   :  { %s62_s2 = sshll.u32 %s4826_s29, 4  ;;  %s63_s2 = int_to_ptr.vmem [resolvable:$true] %s62_s2 }
  0x1b   :  { %s4456_s3 = scalar_lea.hbm %s5791_s7, 256 }
  0x1c   :  { %p4457_p0 = scmp.ne.s32.totalorder %s5791_s7, %s4456_s3  ;;  %p4460_p1 = scmp.lt.u32.totalorder %s4456_s3, %s5791_s7 }
  0x1e   :  { %p4462_p2 = pnand %p4460_p1, %p4457_p0 }
  0x20   :  { %4465 = shalt.err (!%p4462_p2)
}
  0x21   :  { %s4466_s4 = scalar_lea.vmem %s63_s2, 256  ;;  %p4471_p4 = scmp.lt.s32.totalorder %s63_s2, %s63_s2 }
  0x22   :  { %p4467_p3 = scmp.ne.s32.totalorder %s63_s2, %s4466_s4  ;;  %p4472_p5 = scmp.lt.s32.totalorder %s4466_s4, %s4466_s4 }
  0x24   :  { %p4473_p6 = por %p4472_p5, %p4471_p4 }
  0x26   :  { %p4474_p7 = pnand %p4473_p6, %p4467_p3 }
  0x28   :  { %4477 = shalt.err (!%p4474_p7)
}
  0x29   :  { %s4827_s28 = smov 64   ;;  %s4828_s9 = smov 4  }
  0x2a   :  { %68 = dma.hbm_to_vmem [thread:$0]  %s5791_s7, 256, %s63_s2, [#allocation6], %s4827_s28, %s4827_s28, %s4828_s9  }
  0x2b   :  { %s4829_s29 = smov [#allocation8]   ;;  %s4830_s30 = smov [#allocation11]  }
  0x2c   :  { %s93_s6 = sshll.u32 %s4829_s29, 4  ;;  %s114_s3 = sshll.u32 %s4830_s30, 4  ;;  %s94_s6 = int_to_ptr.vmem [resolvable:$true] %s93_s6  ;;  %s115_s3 = int_to_ptr.vmem [resolvable:$true] %s114_s3 }
  0x2d   :  { %s4478_s8 = scalar_lea.hbm %s5754_s10, 16 }
  0x2e   :  { %p4479_p8 = scmp.ne.s32.totalorder %s5754_s10, %s4478_s8  ;;  %p4482_p9 = scmp.lt.u32.totalorder %s4478_s8, %s5754_s10 }
  0x30   :  { %p4484_p10 = pnand %p4482_p9, %p4479_p8 }
  0x32   :  { %4487 = shalt.err (!%p4484_p10)
}
  0x33   :  { %s4488_s2 = scalar_lea.vmem %s94_s6, 16  ;;  %s4492_s7 = scalar_lea.vmem %s94_s6, 32 }
  0x34   :  { %p4489_p11 = scmp.ne.s32.totalorder %s94_s6, %s4488_s2  ;;  %p4493_p12 = scmp.lt.s32.totalorder %s94_s6, %s94_s6 }
  0x35   :  { %p4494_p13 = scmp.lt.s32.totalorder %s4492_s7, %s4488_s2 }
  0x37   :  { %p4495_p0 = por %p4494_p13, %p4493_p12 }
  0x39   :  { %p4496_p1 = pnand %p4495_p0, %p4489_p11 }
  0x3b   :  { %4499 = shalt.err (!%p4496_p1)
}
  0x3c   :  { %96 = dma.hbm_to_vmem [thread:$0]  %s5754_s10, 16, %s94_s6, [#allocation9]  }
  0x3d   :  { %s4500_s24 = scalar_lea.hbm %s5756_s12, 256 }
  0x3e   :  { %p4501_p2 = scmp.ne.s32.totalorder %s5756_s12, %s4500_s24  ;;  %p4504_p3 = scmp.lt.u32.totalorder %s4500_s24, %s5756_s12 }
  0x40   :  { %p4506_p4 = pnand %p4504_p3, %p4501_p2 }
  0x42   :  { %4509 = shalt.err (!%p4506_p4)
}
  0x43   :  { %s4510_s27 = scalar_lea.vmem %s115_s3, 256  ;;  %p4515_p6 = scmp.lt.s32.totalorder %s115_s3, %s115_s3 }
  0x44   :  { %p4511_p5 = scmp.ne.s32.totalorder %s115_s3, %s4510_s27  ;;  %p4516_p7 = scmp.lt.s32.totalorder %s4510_s27, %s4510_s27 }
  0x46   :  { %p4517_p8 = por %p4516_p7, %p4515_p6 }
  0x48   :  { %p4518_p9 = pnand %p4517_p8, %p4511_p5 }
  0x4a   :  { %4521 = shalt.err (!%p4518_p9)
}
  0x4b   :  { %120 = dma.hbm_to_vmem [thread:$0]  %s5756_s12, 256, %s115_s3, [#allocation12], %s4827_s28, %s4827_s28, %s4828_s9  }
  0x4c   :  { %s4831_s4 = smov [#allocation14]   ;;  %s4522_s0 = scalar_lea.hbm %s5758_s14, 128 }
  0x4d   :  { %s138_s2 = sshll.u32 %s4831_s4, 4  ;;  %p4523_p10 = scmp.ne.s32.totalorder %s5758_s14, %s4522_s0  ;;  %s139_s2 = int_to_ptr.vmem [resolvable:$true] %s138_s2 }
  0x4e   :  { %p4526_p11 = scmp.lt.u32.totalorder %s4522_s0, %s5758_s14 }
  0x50   :  { %p4528_p12 = pnand %p4526_p11, %p4523_p10 }
  0x52   :  { %4531 = shalt.err (!%p4528_p12)
}
  0x53   :  { %s4532_s26 = scalar_lea.vmem %s139_s2, 128  ;;  %p4537_p0 = scmp.lt.s32.totalorder %s139_s2, %s139_s2 }
  0x54   :  { %p4533_p13 = scmp.ne.s32.totalorder %s139_s2, %s4532_s26  ;;  %p4538_p1 = scmp.lt.s32.totalorder %s4532_s26, %s4532_s26 }
  0x56   :  { %p4539_p2 = por %p4538_p1, %p4537_p0 }
  0x58   :  { %p4540_p3 = pnand %p4539_p2, %p4533_p13 }
  0x5a   :  { %4543 = shalt.err (!%p4540_p3)
}
  0x5b   :  { %s4832_s12 = smov 32   ;;  %s4833_s3 = smov 2  }
  0x5c   :  { %144 = dma.hbm_to_vmem [thread:$0]  %s5758_s14, 128, %s139_s2, [#allocation15], %s4832_s12, %s4832_s12, %s4833_s3  }
  0x5d   :  { %s4834_s27 = smov [#allocation17]   ;;  %s4835_s6 = smov [#allocation20]  }
  0x5e   :  { %s162_s10 = sshll.u32 %s4834_s27, 4  ;;  %s186_s4 = sshll.u32 %s4835_s6, 4  ;;  %s163_s10 = int_to_ptr.vmem [resolvable:$true] %s162_s10  ;;  %s5039_s4 = int_to_ptr.vmem [resolvable:$true] %s186_s4 }
  0x5f   :  { %s4544_s0 = scalar_lea.hbm %s5760_s16, 64 }
  0x60   :  { %p4545_p4 = scmp.ne.s32.totalorder %s5760_s16, %s4544_s0  ;;  %p4548_p5 = scmp.lt.u32.totalorder %s4544_s0, %s5760_s16 }
  0x62   :  { %p4550_p6 = pnand %p4548_p5, %p4545_p4 }
  0x64   :  { %4553 = shalt.err (!%p4550_p6)
}
  0x65   :  { %s4554_s14 = scalar_lea.vmem %s163_s10, 64  ;;  %p4559_p8 = scmp.lt.s32.totalorder %s163_s10, %s163_s10 }
  0x66   :  { %p4555_p7 = scmp.ne.s32.totalorder %s163_s10, %s4554_s14  ;;  %p4560_p9 = scmp.lt.s32.totalorder %s4554_s14, %s4554_s14 }
  0x68   :  { %p4561_p10 = por %p4560_p9, %p4559_p8 }
  0x6a   :  { %p4562_p11 = pnand %p4561_p10, %p4555_p7 }
  0x6c   :  { %4565 = shalt.err (!%p4562_p11)
}
  0x6d   :  { %s4836_s2 = smov 16   ;;  %s4837_s26 = smov 1  }
  0x6e   :  { %168 = dma.hbm_to_vmem [thread:$0]  %s5760_s16, 64, %s163_s10, [#allocation18], %s4836_s2, %s4836_s2, %s4837_s26  }
  0x6f   :  { %s4566_s27 = scalar_lea.hbm %s5762_s18, 64 }
  0x70   :  { %p4567_p12 = scmp.ne.s32.totalorder %s5762_s18, %s4566_s27  ;;  %p4570_p13 = scmp.lt.u32.totalorder %s4566_s27, %s5762_s18 }
  0x72   :  { %p4572_p0 = pnand %p4570_p13, %p4567_p12 }
  0x74   :  { %4575 = shalt.err (!%p4572_p0)
}
  0x75   :  { %s4576_s29 = scalar_lea.vmem %s5039_s4, 64  ;;  %p4581_p2 = scmp.lt.s32.totalorder %s5039_s4, %s5039_s4 }
  0x76   :  { %p4577_p1 = scmp.ne.s32.totalorder %s5039_s4, %s4576_s29  ;;  %p4582_p3 = scmp.lt.s32.totalorder %s4576_s29, %s4576_s29 }
  0x78   :  { %p4583_p4 = por %p4582_p3, %p4581_p2 }
  0x7a   :  { %p4584_p5 = pnand %p4583_p4, %p4577_p1 }
  0x7c   :  { %4587 = shalt.err (!%p4584_p5)
}
  0x7d   :  { %192 = dma.hbm_to_vmem [thread:$0]  %s5762_s18, 64, %s5039_s4, [#allocation21], %s4836_s2, %s4836_s2, %s4837_s26  }
  0x7e   :  { %s4838_s30 = smov [#allocation23]   ;;  %s4839_s25 = smov [#allocation2]  }
  0x7f   :  { %s210_s24 = sshll.u32 %s4838_s30, 4  ;;  %s44_s14 = sshll.u32 %s4839_s25, 4  ;;  %s211_s24 = int_to_ptr.vmem [resolvable:$true] %s210_s24  ;;  %s5076_s14 = int_to_ptr.vmem [resolvable:$true] %s44_s14 }
  0x80   :  { %s4588_s1 = scalar_lea.hbm %s5765_s21, 1024 }
  0x81   :  { %p4589_p6 = scmp.ne.s32.totalorder %s5765_s21, %s4588_s1  ;;  %p4592_p7 = scmp.lt.u32.totalorder %s4588_s1, %s5765_s21 }
  0x83   :  { %p4594_p8 = pnand %p4592_p7, %p4589_p6 }
  0x85   :  { %4597 = shalt.err (!%p4594_p8)
}
  0x86   :  { %s4598_s18 = scalar_lea.vmem %s211_s24, 1024  ;;  %p4603_p10 = scmp.lt.s32.totalorder %s211_s24, %s211_s24 }
  0x87   :  { %p4599_p9 = scmp.ne.s32.totalorder %s211_s24, %s4598_s18  ;;  %p4604_p11 = scmp.lt.s32.totalorder %s4598_s18, %s4598_s18 }
  0x89   :  { %p4605_p12 = por %p4604_p11, %p4603_p10 }
  0x8b   :  { %p4606_p13 = pnand %p4605_p12, %p4599_p9 }
  0x8d   :  { %4609 = shalt.err (!%p4606_p13)
}
  0x8e   :  { %216 = dma.hbm_to_vmem [thread:$0]  %s5765_s21, 1024, %s211_s24, [#allocation24], %s4827_s28, %s4827_s28, %s4828_s9  }
  0x8f   :  { %s5792_s16 = sld [smem:[#allocation36_spill]] }
  0x95   :  { %s4610_s10 = scalar_lea.hbm %s5792_s16, 256 }
  0x96   :  { %p4611_p0 = scmp.ne.s32.totalorder %s5792_s16, %s4610_s10  ;;  %p4614_p1 = scmp.lt.u32.totalorder %s4610_s10, %s5792_s16 }
  0x98   :  { %p4616_p2 = pnand %p4614_p1, %p4611_p0 }
  0x9a   :  { %4619 = shalt.err (!%p4616_p2)
}
  0x9b   :  { %s4620_s1 = scalar_lea.vmem %s5076_s14, 256  ;;  %p4625_p4 = scmp.lt.s32.totalorder %s5076_s14, %s5076_s14 }
  0x9c   :  { %p4621_p3 = scmp.ne.s32.totalorder %s5076_s14, %s4620_s1  ;;  %p4626_p5 = scmp.lt.s32.totalorder %s4620_s1, %s4620_s1 }
  0x9e   :  { %p4627_p6 = por %p4626_p5, %p4625_p4 }
  0xa0   :  { %p4628_p7 = pnand %p4627_p6, %p4621_p3 }
  0xa2   :  { %4631 = shalt.err (!%p4628_p7)
}
  0xa3   :  { %s4840_s21 = smov 128   ;;  %s4841_s28 = smov 8  }
  0xa4   :  { %50 = dma.hbm_to_vmem [thread:$0]  %s5792_s16, 256, %s5076_s14, [#allocation3], %s4840_s21, %s4840_s21, %s4841_s28  }
  0xa5   :  { %s4842_s8 = smov [#allocation7]   ;;  %s4843_s6 = smov [#allocation10]  }
  0xa6   :  { %s77_s27 = sshll.u32 %s4842_s8, 4  ;;  %s102_s7 = sshll.u32 %s4843_s6, 4  ;;  %s78_s27 = int_to_ptr.vmem [resolvable:$true] %s77_s27  ;;  %s5113_s7 = int_to_ptr.vmem [resolvable:$true] %s102_s7 }
  0xa7   :  { %s5793_s5 = sld [smem:[#allocation42_spill]] }
  0xad   :  { %s4632_s0 = scalar_lea.hbm %s5793_s5, 32 }
  0xae   :  { %p4633_p8 = scmp.ne.s32.totalorder %s5793_s5, %s4632_s0  ;;  %p4636_p9 = scmp.lt.u32.totalorder %s4632_s0, %s5793_s5 }
  0xb0   :  { %p4638_p10 = pnand %p4636_p9, %p4633_p8 }
  0xb2   :  { %4641 = shalt.err (!%p4638_p10)
}
  0xb3   :  { %s4642_s14 = scalar_lea.vmem %s78_s27, 32  ;;  %p4647_p12 = scmp.lt.s32.totalorder %s78_s27, %s78_s27 }
  0xb4   :  { %p4643_p11 = scmp.ne.s32.totalorder %s78_s27, %s4642_s14  ;;  %p4648_p13 = scmp.lt.s32.totalorder %s4642_s14, %s4642_s14 }
  0xb6   :  { %p4649_p0 = por %p4648_p13, %p4647_p12 }
  0xb8   :  { %p4650_p1 = pnand %p4649_p0, %p4643_p11 }
  0xba   :  { %4653 = shalt.err (!%p4650_p1)
}
  0xbb   :  { %80 = dma.hbm_to_vmem [thread:$0]  %s5793_s5, 32, %s78_s27, [#allocation6]  }
  0xbc   :  { %s4654_s9 = scalar_lea.hbm %s5755_s11, 16384 }
  0xbd   :  { %p4655_p2 = scmp.ne.s32.totalorder %s5755_s11, %s4654_s9  ;;  %p4658_p3 = scmp.lt.u32.totalorder %s4654_s9, %s5755_s11 }
  0xbf   :  { %p4660_p4 = pnand %p4658_p3, %p4655_p2 }
  0xc1   :  { %4663 = shalt.err (!%p4660_p4)
}
  0xc2   :  { %s4664_s4 = scalar_lea.vmem %s5113_s7, 16384  ;;  %p4669_p6 = scmp.lt.s32.totalorder %s5113_s7, %s5113_s7 }
  0xc3   :  { %p4665_p5 = scmp.ne.s32.totalorder %s5113_s7, %s4664_s4  ;;  %p4670_p7 = scmp.lt.s32.totalorder %s4664_s4, %s4664_s4 }
  0xc5   :  { %p4671_p8 = por %p4670_p7, %p4669_p6 }
  0xc7   :  { %p4672_p9 = pnand %p4671_p8, %p4665_p5 }
  0xc9   :  { %4675 = shalt.err (!%p4672_p9)
}
  0xca   :  { %s4844_s27 = smov 256   ;;  %s4845_s29 = smov [#allocation13]  }
  0xcb   :  { %108 = dma.hbm_to_vmem [thread:$0]  %s5755_s11, 16384, %s5113_s7, [#allocation9], %s4844_s27, %s4844_s27, %s4836_s2  }
  0xcc   :  { %s126_s10 = sshll.u32 %s4845_s29, 4  ;;  %s4846_s30 = smov [#allocation16]   ;;  %s127_s10 = int_to_ptr.vmem [resolvable:$true] %s126_s10 }
  0xcd   :  { %s150_s25 = sshll.u32 %s4846_s30, 4  ;;  %s4676_s12 = scalar_lea.hbm %s5757_s13, 8192  ;;  %s151_s25 = int_to_ptr.vmem [resolvable:$true] %s150_s25 }
  0xce   :  { %p4677_p10 = scmp.ne.s32.totalorder %s5757_s13, %s4676_s12  ;;  %p4680_p11 = scmp.lt.u32.totalorder %s4676_s12, %s5757_s13 }
  0xd0   :  { %p4682_p12 = pnand %p4680_p11, %p4677_p10 }
  0xd2   :  { %4685 = shalt.err (!%p4682_p12)
}
  0xd3   :  { %s4686_s11 = scalar_lea.vmem %s127_s10, 8192  ;;  %p4691_p0 = scmp.lt.s32.totalorder %s127_s10, %s127_s10 }
  0xd4   :  { %p4687_p13 = scmp.ne.s32.totalorder %s127_s10, %s4686_s11  ;;  %p4692_p1 = scmp.lt.s32.totalorder %s4686_s11, %s4686_s11 }
  0xd6   :  { %p4693_p2 = por %p4692_p1, %p4691_p0 }
  0xd8   :  { %p4694_p3 = pnand %p4693_p2, %p4687_p13 }
  0xda   :  { %4697 = shalt.err (!%p4694_p3)
}
  0xdb   :  { %132 = dma.hbm_to_vmem [thread:$0]  %s5757_s13, 8192, %s127_s10, [#allocation12], %s4840_s21, %s4840_s21, %s4841_s28  }
  0xdc   :  { %s4698_s4 = scalar_lea.hbm %s5759_s15, 64 }
  0xdd   :  { %p4699_p4 = scmp.ne.s32.totalorder %s5759_s15, %s4698_s4  ;;  %p4702_p5 = scmp.lt.u32.totalorder %s4698_s4, %s5759_s15 }
  0xdf   :  { %p4704_p6 = pnand %p4702_p5, %p4699_p4 }
  0xe1   :  { %4707 = shalt.err (!%p4704_p6)
}
  0xe2   :  { %s4708_s30 = scalar_lea.vmem %s151_s25, 64  ;;  %p4713_p8 = scmp.lt.s32.totalorder %s151_s25, %s151_s25 }
  0xe3   :  { %p4709_p7 = scmp.ne.s32.totalorder %s151_s25, %s4708_s30  ;;  %p4714_p9 = scmp.lt.s32.totalorder %s4708_s30, %s4708_s30 }
  0xe5   :  { %p4715_p10 = por %p4714_p9, %p4713_p8 }
  0xe7   :  { %p4716_p11 = pnand %p4715_p10, %p4709_p7 }
  0xe9   :  { %4719 = shalt.err (!%p4716_p11)
}
  0xea   :  { %156 = dma.hbm_to_vmem [thread:$0]  %s5759_s15, 64, %s151_s25, [#allocation15], %s4836_s2, %s4836_s2, %s4837_s26  }
  0xeb   :  { %s4847_s28 = smov [#allocation19]   ;;  %s4848_s14 = smov [#allocation22]  }
  0xec   :  { %s174_s10 = sshll.u32 %s4847_s28, 4  ;;  %s201_s16 = sshll.u32 %s4848_s14, 4  ;;  %s175_s10 = int_to_ptr.vmem [resolvable:$true] %s174_s10  ;;  %s202_s16 = int_to_ptr.vmem [resolvable:$true] %s201_s16 }
  0xed   :  { %s4720_s1 = scalar_lea.hbm %s5761_s17, 64 }
  0xee   :  { %p4721_p12 = scmp.ne.s32.totalorder %s5761_s17, %s4720_s1  ;;  %p4724_p13 = scmp.lt.u32.totalorder %s4720_s1, %s5761_s17 }
  0xf0   :  { %p4726_p0 = pnand %p4724_p13, %p4721_p12 }
  0xf2   :  { %4729 = shalt.err (!%p4726_p0)
}
  0xf3   :  { %s4730_s15 = scalar_lea.vmem %s175_s10, 64  ;;  %p4735_p2 = scmp.lt.s32.totalorder %s175_s10, %s175_s10 }
  0xf4   :  { %p4731_p1 = scmp.ne.s32.totalorder %s175_s10, %s4730_s15  ;;  %p4736_p3 = scmp.lt.s32.totalorder %s4730_s15, %s4730_s15 }
  0xf6   :  { %p4737_p4 = por %p4736_p3, %p4735_p2 }
  0xf8   :  { %p4738_p5 = pnand %p4737_p4, %p4731_p1 }
  0xfa   :  { %4741 = shalt.err (!%p4738_p5)
}
  0xfb   :  { %180 = dma.hbm_to_vmem [thread:$0]  %s5761_s17, 64, %s175_s10, [#allocation18], %s4836_s2, %s4836_s2, %s4837_s26  }
  0xfc   :  { %s4742_s4 = scalar_lea.hbm %s5764_s20, 16 }
  0xfd   :  { %p4743_p6 = scmp.ne.s32.totalorder %s5764_s20, %s4742_s4  ;;  %p4746_p7 = scmp.lt.u32.totalorder %s4742_s4, %s5764_s20 }
  0xff   :  { %p4748_p8 = pnand %p4746_p7, %p4743_p6 }
 0x101   :  { %4751 = shalt.err (!%p4748_p8)
}
 0x102   :  { %s4752_s30 = scalar_lea.vmem %s202_s16, 16  ;;  %s4756_s13 = scalar_lea.vmem %s202_s16, 32 }
 0x103   :  { %p4753_p9 = scmp.ne.s32.totalorder %s202_s16, %s4752_s30  ;;  %p4757_p10 = scmp.lt.s32.totalorder %s202_s16, %s202_s16 }
 0x104   :  { %p4758_p11 = scmp.lt.s32.totalorder %s4756_s13, %s4752_s30 }
 0x106   :  { %p4759_p12 = por %p4758_p11, %p4757_p10 }
 0x108   :  { %p4760_p13 = pnand %p4759_p12, %p4753_p9 }
 0x10a   :  { %4763 = shalt.err (!%p4760_p13)
}
 0x10b   :  { %204 = dma.hbm_to_vmem [thread:$0]  %s5764_s20, 16, %s202_s16, [#allocation21]  }
 0x10c   :  { %s4849_s26 = smov [#allocation25]   ;;  %s4764_s14 = scalar_lea.hbm %s5766_s22, 16 }
 0x10d   :  { %s223_s21 = sshll.u32 %s4849_s26, 4  ;;  %p4765_p0 = scmp.ne.s32.totalorder %s5766_s22, %s4764_s14  ;;  %s224_s21 = int_to_ptr.vmem [resolvable:$true] %s223_s21 }
 0x10e   :  { %p4768_p1 = scmp.lt.u32.totalorder %s4764_s14, %s5766_s22 }
 0x110   :  { %p4770_p2 = pnand %p4768_p1, %p4765_p0 }
 0x112   :  { %4773 = shalt.err (!%p4770_p2)
}
 0x113   :  { %s4774_s24 = scalar_lea.vmem %s224_s21, 16  ;;  %s4778_s20 = scalar_lea.vmem %s224_s21, 32 }
 0x114   :  { %p4775_p3 = scmp.ne.s32.totalorder %s224_s21, %s4774_s24  ;;  %p4779_p4 = scmp.lt.s32.totalorder %s224_s21, %s224_s21 }
 0x115   :  { %p4780_p5 = scmp.lt.s32.totalorder %s4778_s20, %s4774_s24 }
 0x117   :  { %p4781_p6 = por %p4780_p5, %p4779_p4 }
 0x119   :  { %p4782_p7 = pnand %p4781_p6, %p4775_p3 }
 0x11b   :  { %4785 = shalt.err (!%p4782_p7)
}
 0x11c   :  { %226 = dma.hbm_to_vmem [thread:$0]  %s5766_s22, 16, %s224_s21, [#allocation24]  }
 0x11d   :  { %4808 = dma.done.wait [#allocation3], 256  }
 0x11e   :  { %4809 = vsyncadd [#allocation3], 4294967040 }
 0x11f   :  { %4810 = dma.done.wait [#allocation6], 288  }
 0x120   :  { %4811 = vsyncadd [#allocation6], 4294967008 }
 0x121   :  { %4812 = dma.done.wait [#allocation9], 16400  }
 0x122   :  { %4813 = vsyncadd [#allocation9], 4294950896 }
 0x123   :  { %4814 = dma.done.wait [#allocation12], 8448  }
 0x124   :  { %4815 = vsyncadd [#allocation12], 4294958848 }
 0x125   :  { %4816 = dma.done.wait [#allocation15], 192  }
 0x126   :  { %4817 = vsyncadd [#allocation15], 4294967104 }
 0x127   :  { %4818 = dma.done.wait [#allocation18], 128  }
 0x128   :  { %4819 = vsyncadd [#allocation18], 4294967168 }
 0x129   :  { %4820 = dma.done.wait [#allocation21], 80  }
 0x12a   :  { %4821 = vsyncadd [#allocation21], 4294967216 }
 0x12b   :  { %4822 = dma.done.wait [#allocation24], 1040  }
 0x12c   :  { %4823 = vsyncadd [#allocation24], 4294966256  ;;  %v4850_v0 = vmov 0.0   ;;  %vm4851_vm0 = vmmov 0   ;;  %s5794_s15 = sld [smem:[#allocation43_spill]]  ;;  %v291_v18 = vld [vmem:[#allocation2] sm:$0xff] }
 0x12d   :  { %3915 = vmatprep.subr.bf16.mxu0 %v4850_v0  ;;  %3931 = vmatprep.mubr.msk.bf16.mxu0 %vm4851_vm0, %v4850_v0  ;;  %v4044_v4 = vld [vmem:[#allocation10 + $0x4] ss:$16 sps:$4 sm:$0xff]   ;;  %v4049_v6 = vld [vmem:[#allocation10] ss:$16 sps:$4 sm:$0xff]   ;;  %v4048_v21 = vld [vmem:[#allocation10 + $0xc] ss:$16 sps:$4 sm:$0xff]  }
 0x12e   :  { %667 = vmatprep.subr.bf16.mxu1 %v4044_v4  ;;  %v4050_v7 = vld [vmem:[#allocation10 + $0x24] ss:$16 sps:$4 sm:$0xff]   ;;  %v4055_v9 = vld [vmem:[#allocation10 + $0x20] ss:$16 sps:$4 sm:$0xff]   ;;  %v4046_v24 = vld [vmem:[#allocation10 + $0x8] ss:$16 sps:$4 sm:$0xff]  }
 0x12f   :  { %668 = vmatpush1.bf16.msra.mxu1 %v4049_v6  ;;  %v4056_v10 = vld [vmem:[#allocation10 + $0x44] ss:$16 sps:$4 sm:$0xff]   ;;  %v4061_v11 = vld [vmem:[#allocation10 + $0x40] ss:$16 sps:$4 sm:$0xff]   ;;  %v4054_v27 = vld [vmem:[#allocation10 + $0x2c] ss:$16 sps:$4 sm:$0xff]  }
 0x130   :  { %669 = vmatprep.subr.bf16.mxu1 %v4050_v7  ;;  %v4062_v13 = vld [vmem:[#allocation10 + $0x64] ss:$16 sps:$4 sm:$0xff]   ;;  %v4067_v15 = vld [vmem:[#allocation10 + $0x60] ss:$16 sps:$4 sm:$0xff]   ;;  %v4052_v28 = vld [vmem:[#allocation10 + $0x28] ss:$16 sps:$4 sm:$0xff]  }
 0x131   :  { %v4068_v16 = vld [vmem:[#allocation10 + $0x84] ss:$16 sps:$4 sm:$0xff]   ;;  %v4073_v20 = vld [vmem:[#allocation10 + $0x80] ss:$16 sps:$4 sm:$0xff]   ;;  %v4060_v29 = vld [vmem:[#allocation10 + $0x4c] ss:$16 sps:$4 sm:$0xff]  }
 0x132   :  { %v4036_v1 = vld [vmem:[%s5794_s15] sm:$0xff]   ;;  %v4037_v2 = vld [vmem:[%s5794_s15 + $0x8] sm:$0xff]   ;;  %v4038_v3 = vld [vmem:[%s5794_s15 + $0x10] sm:$0xff]   ;;  %v4852_v44 = vmov 0   ;;  %s5795_s10 = sld [smem:[#allocation37_spill]]  ;;  %s5796_s11 = sld [smem:[#allocation38_spill]] }
 0x133   :  { %3916 = vmatpush3.bf16.msra.mxu0 %v4036_v1  ;;  %v4039_v5 = vld [vmem:[%s5794_s15 + $0x18] sm:$0xff]   ;;  %v4040_v8 = vld [vmem:[%s5794_s15 + $0x20] sm:$0xff]   ;;  %670 = vmatpush1.bf16.msra.mxu1 %v4055_v9  ;;  %v4041_v12 = vld [vmem:[%s5794_s15 + $0x28] sm:$0xff]   ;;  %s5797_s8 = sld [smem:[#allocation39_spill]]  ;;  %s5798_s13 = sld [smem:[#allocation44_spill]]  ;;  %vm877_vm1 = vcmask 261120  }
 0x134   :  { %3917 = vmatprep.subr.bf16.mxu0 %v4850_v0  ;;  %671 = vmatprep.subr.bf16.mxu1 %v4056_v10  ;;  %v4042_v14 = vld [vmem:[%s5794_s15 + $0x30] sm:$0xff]   ;;  %v4043_v17 = vld [vmem:[%s5794_s15 + $0x38] sm:$0xff]   ;;  %v292_v19 = vld [vmem:[#allocation2 + $0x8] sm:$0xff]  ;;  %s5799_s26 = sld [smem:[#allocation41_spill]]  ;;  %s5800_s12 = sld [smem:[#allocation45_spill]]  ;;  %vm3164_vm2 = vcmask 130048  }
 0x135   :  { %v4074_v22 = vld [vmem:[#allocation10 + $0xa4] ss:$16 sps:$4 sm:$0xff]   ;;  %v4079_v23 = vld [vmem:[#allocation10 + $0xa0] ss:$16 sps:$4 sm:$0xff]   ;;  %v293_v26 = vpack.c.bf16 %v292_v19, %v291_v18  ;;  %v4058_v30 = vld [vmem:[#allocation10 + $0x48] ss:$16 sps:$4 sm:$0xff]   ;;  %699 = vmatprep.mubr.bf16.mxu1 %v4852_v44  ;;  %4035 = vset.pattern.permute.xlu1 %v4852_v44  ;;  %v487_v19 = vlaneseq }
 0x136   :  { %v4080_v25 = vld [vmem:[#allocation10 + $0xc4] ss:$16 sps:$4 sm:$0xff]   ;;  %v4066_v31 = vld [vmem:[#allocation10 + $0x6c] ss:$16 sps:$4 sm:$0xff]   ;;  %v4064_v32 = vld [vmem:[#allocation10 + $0x68] ss:$16 sps:$4 sm:$0xff]   ;;  %4034 = vset.pattern.permute.xlu0 %v4852_v44 }
 0x137   :  { %3918 = vmatpush3.bf16.msra.mxu0 %v4037_v2  ;;  %672 = vmatpush1.bf16.msra.mxu1 %v4061_v11  ;;  %v4072_v33 = vld [vmem:[#allocation10 + $0x8c] ss:$16 sps:$4 sm:$0xff]   ;;  %v4070_v34 = vld [vmem:[#allocation10 + $0x88] ss:$16 sps:$4 sm:$0xff]   ;;  %v4085_v39 = vld [vmem:[#allocation10 + $0xc0] ss:$16 sps:$4 sm:$0xff]  }
 0x138   :  { %3919 = vmatprep.subr.bf16.mxu0 %v4850_v0  ;;  %673 = vmatprep.subr.bf16.mxu1 %v4062_v13  ;;  %v4078_v35 = vld [vmem:[#allocation10 + $0xac] ss:$16 sps:$4 sm:$0xff]   ;;  %v4076_v36 = vld [vmem:[#allocation10 + $0xa8] ss:$16 sps:$4 sm:$0xff]   ;;  %v4086_v40 = vld [vmem:[#allocation10 + $0xe4] ss:$16 sps:$4 sm:$0xff]  }
 0x139   :  { %v4084_v37 = vld [vmem:[#allocation10 + $0xcc] ss:$16 sps:$4 sm:$0xff]   ;;  %v4082_v38 = vld [vmem:[#allocation10 + $0xc8] ss:$16 sps:$4 sm:$0xff]   ;;  %v4091_v43 = vld [vmem:[#allocation10 + $0xe0] ss:$16 sps:$4 sm:$0xff]  }
 0x13a   :  { %v4090_v41 = vld [vmem:[#allocation10 + $0xec] ss:$16 sps:$4 sm:$0xff]   ;;  %v4088_v42 = vld [vmem:[#allocation10 + $0xe8] ss:$16 sps:$4 sm:$0xff]   ;;  %s5801_s20 = sld [smem:[#allocation46_spill]]  ;;  %s4854_s16 = smov [#allocation26]  }
 0x13b   :  { %3920 = vmatpush3.bf16.msra.mxu0 %v4038_v3  ;;  %674 = vmatpush1.bf16.msra.mxu1 %v4067_v15  ;;  %v408_v45 = vld [vmem:[%s5795_s10 + $0x10] sm:$0xff]  ;;  %v406_v46 = vld [vmem:[%s5795_s10] sm:$0xff]  ;;  %v409_v47 = vld [vmem:[%s5795_s10 + $0x18] sm:$0xff] }
 0x13c   :  { %3921 = vmatprep.subr.bf16.mxu0 %v4850_v0  ;;  %675 = vmatprep.subr.bf16.mxu1 %v4068_v16  ;;  %v407_v48 = vld [vmem:[%s5795_s10 + $0x8] sm:$0xff]  ;;  %v4094_v49 = vld [vmem:[#allocation13 + $0x4] ss:$8 sps:$4 sm:$0xff]   ;;  %v289_v54 = vld [vmem:[%s5797_s8 + $0x10] sm:$0xff] }
 0x13d   :  { %423 = vperm.xlu1 %4035, %v408_v45   ;;  %413 = vperm.xlu0 %4034, %v406_v46   ;;  %v285_v50 = vld [vmem:[%s5796_s11] sm:$0xff]  ;;  %v286_v51 = vld [vmem:[%s5796_s11 + $0x8] sm:$0xff]  ;;  %v290_v55 = vld [vmem:[%s5797_s8 + $0x18] sm:$0xff]  ;;  %s3583_s11 = sshll.u32 %s4854_s16, 4  ;;  %s3584_s11 = int_to_ptr.vmem [resolvable:$true] %s3583_s11 }
 0x13e   :  { %v287_v52 = vld [vmem:[%s5797_s8] sm:$0xff]  ;;  %v288_v53 = vld [vmem:[%s5797_s8 + $0x8] sm:$0xff]  ;;  %v4092_v63 = vld [vmem:[#allocation13] ss:$8 sps:$4 sm:$0xff]   ;;  %p4791_p9 = scmp.lt.s32.totalorder %s3584_s11, %s3584_s11 }
 0x13f   :  { %3922 = vmatpush3.bf16.msra.mxu0 %v4039_v5  ;;  %676 = vmatpush1.bf16.msra.mxu1 %v4073_v20  ;;  %v3599_v56 = vld [vmem:[%s5798_s13] ss:$0 sm:$0xff]  ;;  %v4097_v2 = vld [vmem:[#allocation13 + $0x14] ss:$8 sps:$4 sm:$0xff]   ;;  %v4095_v3 = vld [vmem:[#allocation13 + $0x10] ss:$8 sps:$4 sm:$0xff]  }
 0x140   :  { %3923 = vmatprep.subr.bf16.mxu0 %v4850_v0  ;;  %677 = vmatprep.subr.bf16.mxu1 %v4074_v22  ;;  %v4100_v4 = vld [vmem:[#allocation13 + $0x24] ss:$8 sps:$4 sm:$0xff]   ;;  %v4098_v5 = vld [vmem:[#allocation13 + $0x20] ss:$8 sps:$4 sm:$0xff]   ;;  %v4103_v6 = vld [vmem:[#allocation13 + $0x34] ss:$8 sps:$4 sm:$0xff]  }
 0x141   :  { %428 = vperm.xlu1 %4035, %v409_v47   ;;  %418 = vperm.xlu0 %4034, %v407_v48   ;;  %v4101_v7 = vld [vmem:[#allocation13 + $0x30] ss:$8 sps:$4 sm:$0xff]   ;;  %v4104_v9 = vld [vmem:[#allocation13 + $0x40] ss:$8 sps:$4 sm:$0xff]   ;;  %v4109_v10 = vld [vmem:[#allocation13 + $0x54] ss:$8 sps:$4 sm:$0xff]  }
 0x142   :  { %v4107_v11 = vld [vmem:[#allocation13 + $0x50] ss:$8 sps:$4 sm:$0xff]   ;;  %v4110_v13 = vld [vmem:[#allocation13 + $0x60] ss:$8 sps:$4 sm:$0xff]   ;;  %v488_v20 = vshrl.u32 %v487_v19, 7 }
 0x143   :  { %3924 = vmatpush3.bf16.msra.mxu0 %v4040_v8  ;;  %678 = vmatpush1.bf16.msra.mxu1 %v4079_v23  ;;  %v4106_v8 = vld [vmem:[#allocation13 + $0x44] ss:$8 sps:$4 sm:$0xff]   ;;  %v4113_v15 = vld [vmem:[#allocation13 + $0x70] ss:$8 sps:$4 sm:$0xff]   ;;  %v5292_v16 = vld [vmem:[#allocation5] sm:$0xff]  }
 0x144   :  { %3925 = vmatprep.subr.bf16.mxu0 %v4850_v0  ;;  %679 = vmatprep.subr.bf16.mxu1 %v4080_v25  ;;  %v4119_v18 = vld [vmem:[%s5799_s26 + $0x8] sm:$0xff]   ;;  %v5302_v22 = vsub.s32 2, %v488_v20  ;;  %v5304_v23 = vld [vmem:[#allocation11] sm:$0xf]  ;;  %v5308_v25 = vsub.s32 3, %v488_v20 }
 0x145   :  { %1053 = vperm.xlu1 %4035, %v285_v50  }
 0x147   :  { %3926 = vmatpush3.bf16.msra.mxu0 %v4041_v12  ;;  %680 = vmatpush1.bf16.msra.mxu1 %v4085_v39  ;;  %v4112_v12 = vld [vmem:[#allocation13 + $0x64] ss:$8 sps:$4 sm:$0xff]  }
 0x148   :  { %3927 = vmatprep.subr.bf16.mxu0 %v4850_v0  ;;  %681 = vmatprep.subr.bf16.mxu1 %v4086_v40 }
 0x149   :  { %1058 = vperm.xlu1 %4035, %v286_v51   ;;  %v3609_v51 = vld [vmem:[#allocation8] ss:$0 sm:$0xff] }
 0x14b   :  { %3928 = vmatpush3.bf16.msra.mxu0 %v4042_v14  ;;  %682 = vmatpush1.bf16.msra.mxu1 %v4091_v43  ;;  %v4115_v14 = vld [vmem:[#allocation13 + $0x74] ss:$8 sps:$4 sm:$0xff]  }
 0x14c   :  { %3929 = vmatprep.subr.bf16.mxu0 %v4850_v0  ;;  %884 = vmatprep.subr.bf16.mxu1 %v4094_v49 }
 0x14d   :  { %1065 = vperm.xlu1 %4035, %v287_v52  }
 0x14f   :  { %3930 = vmatpush3.bf16.msra.mxu0 %v4043_v17  ;;  %v4118_v17 = vld [vmem:[%s5799_s26] sm:$0xff]  }
 0x150   :  { %710 = vmatprep.subr.bf16.mxu0 %v4048_v21 }
 0x151   :  { %1070 = vperm.xlu1 %4035, %v288_v53  }
 0x152   :  { %3932 = vmatmul.mubr.bf16.vlgmr.msra.gmra.mrb[0].mxu0 %v293_v26  ;;  %v498_v26 = vrot.slane %v5304_v23, %v5302_v22 }
 0x153   :  { %711 = vmatpush1.bf16.msra.mxu0 %v4046_v24  ;;  %742 = vmatprep.mubr.bf16.mxu0 %v4852_v44  ;;  %v5306_v24 = vsub.s32 1, %v488_v20 }
 0x154   :  { %712 = vmatprep.subr.bf16.mxu0 %v4054_v27 }
 0x155   :  { %1075 = vperm.xlu1 %4035, %v289_v54  }
 0x157   :  { %713 = vmatpush1.bf16.msra.mxu0 %v4052_v28 }
 0x158   :  { %714 = vmatprep.subr.bf16.mxu0 %v4060_v29 }
 0x159   :  { %1080 = vperm.xlu1 %4035, %v290_v55   ;;  %v4853_v55 = vmov 0.0|0.0  }
 0x15b   :  { %715 = vmatpush1.bf16.msra.mxu0 %v4058_v30  ;;  %v494_v30 = vrot.slane %v5304_v23, %v5306_v24 }
 0x15c   :  { %716 = vmatprep.subr.bf16.mxu0 %v4066_v31  ;;  %v502_v31 = vrot.slane %v5304_v23, %v5308_v25 }
 0x15f   :  { %717 = vmatpush1.bf16.msra.mxu0 %v4064_v32  ;;  %981 = vxpose.xlu0.c.b16.start [1/2] (short) (narrow) %v4118_v17, 16 }
 0x160   :  { %718 = vmatprep.subr.bf16.mxu0 %v4072_v33 }
 0x163   :  { %719 = vmatpush1.bf16.msra.mxu0 %v4070_v34  ;;  %982 = vxpose.xlu0.c.b16.end [2/2] (short) (narrow) %v4119_v18, 16 }
 0x164   :  { %720 = vmatprep.subr.bf16.mxu0 %v4078_v35 }
 0x167   :  { %721 = vmatpush1.bf16.msra.mxu0 %v4076_v36  ;;  %v3608_v36 = vld [vmem:[%s5800_s12] ss:$0 sm:$0xff] }
 0x168   :  { %722 = vmatprep.subr.bf16.mxu0 %v4084_v37 }
 0x16b   :  { %723 = vmatpush1.bf16.msra.mxu0 %v4082_v38 }
 0x16c   :  { %724 = vmatprep.subr.bf16.mxu0 %v4090_v41 }
 0x16f   :  { %725 = vmatpush1.bf16.msra.mxu0 %v4088_v42 }
 0x1bc   :  { %v414_v21 = vpop.permute.xlu0 %413  ;;  %v424_v52 = vpop.permute.xlu1 %423 }
 0x1bd   :  { %v437_v47 = vmul.f32 %v3608_v36, %v414_v21 }
 0x1bf   :  { %v5323_v53 = vadd.f32 %v3609_v51, %v437_v47 }
 0x1c0   :  { %v419_v27 = vpop.permute.xlu0 %418 }
 0x1c1   :  { %v438_v50 = vmul.f32 %v3608_v36, %v419_v27 }
 0x1c3   :  { %v5325_v54 = vadd.f32 %v3609_v51, %v438_v50 }
 0x225   :  { %v399_v57 = vpop.f32.mrb[0].mxu0 }
 0x226   :  { %v3933_v58 = vpop.f32.mrb[1].mxu0  ;;  %v5285_v60 = vadd.f32 %v3599_v56, %v399_v57  ;;  %v5328_v57 = vld [vmem:[#allocation5 + $0x8] sm:$0xff]  }
 0x227   :  { %v402_v59 = vpop.f32.mrb[2].mxu0  ;;  %v439_v58 = vmul.f32 %v3608_v36, %v424_v52 }
 0x228   :  { %v5287_v61 = vadd.f32 %v3599_v56, %v402_v59  ;;  %v3934_v62 = vpop.f32.mrb[3].mxu0  ;;  %v429_v56 = vpop.permute.xlu1 %428 }
 0x229   :  { %v440_v59 = vmul.f32 %v3608_v36, %v429_v56  ;;  %v853_v62 = vpack.c.bf16 %v5325_v54, %v5323_v53 }
 0x22a   :  { %v452_v1 = vpack.c.bf16 %v5287_v61, %v5285_v60 }
 0x22c   :  { %700 = vmatmul.mubr.bf16.vlgmr.msra.gmra.mrb[0].mxu1 %v452_v1  ;;  %743 = vmatmul.mubr.bf16.vlgmr.msra.gmra.mrb[4].mxu0 %v452_v1  ;;  %v5336_v1 = vadd.f32 %v3609_v51, %v440_v59 }
 0x22d   :  { %885 = vmatpush1.bf16.msra.mxu1 %v4092_v63  ;;  %1032 = vmatprep.mubr.bf16.mxu0 %v4852_v44  ;;  %v5334_v63 = vadd.f32 %v3609_v51, %v439_v58 }
 0x22e   :  { %886 = vmatprep.subr.bf16.mxu1 %v4097_v2  ;;  %3660 = vmatprep.mubr.msk.bf16.mxu1 %vm877_vm1, %v5292_v16 }
 0x22f   :  { %v854_v2 = vpack.c.bf16 %v5336_v1, %v5334_v63 }
 0x231   :  { %887 = vmatpush1.bf16.msra.mxu1 %v4095_v3  ;;  %v5341_v3 = vpop.permute.xlu1 %1053 }
 0x232   :  { %888 = vmatprep.subr.bf16.mxu1 %v4100_v4 }
 0x235   :  { %889 = vmatpush1.bf16.msra.mxu1 %v4098_v5  ;;  %v5343_v4 = vpop.permute.xlu1 %1058  ;;  %v865_v5 = vld [vmem:[#allocation14] sm:$0x3] }
 0x236   :  { %890 = vmatprep.subr.bf16.mxu1 %v4103_v6  ;;  %v5345_v6 = vsub.s32 0, %v488_v20 }
 0x239   :  { %891 = vmatpush1.bf16.msra.mxu1 %v4101_v7  ;;  %v5347_v7 = vpop.permute.xlu1 %1065 }
 0x23a   :  { %892 = vmatprep.subr.bf16.mxu1 %v4106_v8  ;;  %v870_v8 = vrot.slane %v865_v5, %v5345_v6 }
 0x23d   :  { %893 = vmatpush1.bf16.msra.mxu1 %v4104_v9 }
 0x23e   :  { %894 = vmatprep.subr.bf16.mxu1 %v4109_v10  ;;  %v5350_v10 = vpop.permute.xlu1 %1070 }
 0x241   :  { %895 = vmatpush1.bf16.msra.mxu1 %v4107_v11 }
 0x242   :  { %896 = vmatprep.subr.bf16.mxu1 %v4112_v12  ;;  %v5358_v21 = vpop.permute.xlu1 %1075 }
 0x245   :  { %897 = vmatpush1.bf16.msra.mxu1 %v4110_v13 }
 0x246   :  { %898 = vmatprep.subr.bf16.mxu1 %v4115_v14 }
 0x249   :  { %899 = vmatpush1.bf16.msra.mxu1 %v4113_v15 }
 0x2ff   :  { %v5312_v28 = vpop.f32.mrb[0].mxu1  ;;  %v744_v29 = vpop.f32.mrb[4].mxu0 }
 0x300   :  { %v703_v32 = vpop.f32.mrb[1].mxu1  ;;  %v746_v33 = vpop.f32.mrb[5].mxu0  ;;  %v745_v37 = vadd.f32 %v744_v29, %v498_v26 }
 0x301   :  { %v5318_v34 = vpop.f32.mrb[2].mxu1  ;;  %v748_v35 = vpop.f32.mrb[6].mxu0  ;;  %v704_v41 = vadd.f32 %v703_v32, %v494_v30  ;;  %v747_v42 = vadd.f32 %v746_v33, %v502_v31 }
 0x302   :  { %v749_v38 = vadd.f32 %v748_v35, %v498_v26  ;;  %v707_v39 = vpop.f32.mrb[3].mxu1  ;;  %v750_v40 = vpop.f32.mrb[7].mxu0 }
 0x303   :  { %v708_v43 = vadd.f32 %v707_v39, %v494_v30  ;;  %v751_v45 = vadd.f32 %v750_v40, %v502_v31  ;;  %v5369_v40 = vpop.permute.xlu1 %1080 }
 0x304   :  { %v769_v46 = vpack.c.bf16 %v749_v38, %v745_v37 }
 0x305   :  { %v770_v48 = vpack.c.bf16 %v708_v43, %v704_v41  ;;  %v771_v49 = vpack.c.bf16 %v751_v45, %v747_v42 }
 0x307   :  { %900 = vmatprep.subr.bf16.mxu1 %v770_v48 }
 0x308   :  { %901 = vmatpush1.bf16.msra.mxu1 %v769_v46 }
 0x309   :  { %902 = vmatprep.subr.bf16.mxu1 %v4853_v55 }
 0x30c   :  { %903 = vmatpush1.bf16.msra.mxu1 %v771_v49 }
 0x30f   :  { %917 = vmatmul.mubr.bf16.vlgmr.msra.gmra.mrb[4].mxu1 %v853_v62 }
 0x310   :  { %3661 = vmatprep.mubr.msk.bf16.mxu1 %vm877_vm1, %v5328_v57 }
 0x317   :  { %927 = vmatmul.mubr.bf16.gmra.mrb[8].mxu1 %v854_v2 }
 0x318   :  { %1493 = vmatprep.mubr.bf16.mxu1 %v4852_v44 }
 0x3e2   :  { %v918_v9 = vpop.f32.mrb[4].mxu1 }
 0x3e3   :  { %v919_v11 = vadd.f32 %v918_v9, %v870_v8  ;;  %v920_v12 = vpop.f32.mrb[5].mxu1 }
 0x3e4   :  { %v922_v13 = vpop.f32.mrb[6].mxu1 }
 0x3e5   :  { %v3662_v14 = vmul.f32 -1.442695, %v919_v11  ;;  %v5353_v15 = vmul.f32 %v5347_v7, %v919_v11  ;;  %v923_v17 = vadd.f32 %v922_v13, %v870_v8  ;;  %v924_v18 = vpop.f32.mrb[7].mxu1  ;;  %v874_v11 = vrot.slane %v865_v5, %v5306_v24 }
 0x3e7   :  { %4360 = vpow2.f32 %v3662_v14  ;;  %v3663_v19 = vmul.f32 -1.442695, %v923_v17  ;;  %v5356_v20 = vmul.f32 %v5350_v10, %v923_v17  ;;  %v1144_v26 = vmul.f32 %v5353_v15, %v5353_v15 }
 0x3e9   :  { %4362 = vpow2.f32 %v3663_v19  ;;  %v1135_v27 = vadd.f32 %v5356_v20, %v5353_v15  ;;  %v1145_v29 = vmul.f32 %v5356_v20, %v5356_v20 }
 0x3ea   :  { %v928_v30 = vpop.f32.mrb[8].mxu1 }
 0x3eb   :  { %v1148_v31 = vadd.f32 %v1145_v29, %v1144_v26  ;;  %v929_v32 = vadd.f32 %v928_v30, %v870_v8  ;;  %v930_v33 = vpop.f32.mrb[9].mxu1  ;;  %v921_v30 = vadd.f32 %v920_v12, %v874_v11 }
 0x3ec   :  { %v932_v35 = vpop.f32.mrb[10].mxu1 }
 0x3ed   :  { %v3664_v36 = vmul.f32 -1.442695, %v929_v32  ;;  %v5367_v37 = vmul.f32 %v5358_v21, %v929_v32  ;;  %v933_v38 = vadd.f32 %v932_v35, %v870_v8  ;;  %v934_v39 = vpop.f32.mrb[11].mxu1 }
 0x3ef   :  { %4364 = vpow2.f32 %v3664_v36  ;;  %v1136_v41 = vadd.f32 %v1135_v27, %v5367_v37  ;;  %v1146_v42 = vmul.f32 %v5367_v37, %v5367_v37  ;;  %v3665_v43 = vmul.f32 -1.442695, %v933_v38 }
 0x3f0   :  { %v5375_v45 = vmul.f32 %v5369_v40, %v933_v38  ;;  %v925_v38 = vadd.f32 %v924_v18, %v874_v11 }
 0x3f1   :  { %v4361_v46 = vpop.eup %4360  ;;  %v1149_v47 = vadd.f32 %v1148_v31, %v1146_v42  ;;  %4366 = vpow2.f32 %v3665_v43 }
 0x3f2   :  { %v949_v48 = vadd.f32 1.0, %v4361_v46  ;;  %v1137_v49 = vadd.f32 %v1136_v41, %v5375_v45  ;;  %v1147_v50 = vmul.f32 %v5375_v45, %v5375_v45 }
 0x3f3   :  { %v4363_v51 = vpop.eup %4362 }
 0x3f4   :  { %4368 = vrcp.f32 %v949_v48  ;;  %v950_v52 = vadd.f32 1.0, %v4363_v51  ;;  %v1138_v56 = vrot.slane %v1137_v49, 4  ;;  %v1150_v58 = vadd.f32 %v1149_v47, %v1147_v50 }
 0x3f6   :  { %4370 = vrcp.f32 %v950_v52  ;;  %v1139_v59 = vadd.f32 %v1138_v56, %v1137_v49  ;;  %v1151_v62 = vrot.slane %v1150_v58, 4 }
 0x3f8   :  { %v1140_v2 = vrot.slane %v1139_v59, 2  ;;  %v1152_v8 = vadd.f32 %v1151_v62, %v1150_v58  ;;  %v931_v58 = vadd.f32 %v930_v33, %v874_v11 }
 0x3f9   :  { %v4365_v9 = vpop.eup %4364 }
 0x3fa   :  { %v951_v13 = vadd.f32 1.0, %v4365_v9  ;;  %v1141_v14 = vadd.f32 %v1140_v2, %v1139_v59  ;;  %v1153_v17 = vrot.slane %v1152_v8, 2  ;;  %v935_v2 = vadd.f32 %v934_v39, %v874_v11 }
 0x3fb   :  { %v4367_v19 = vpop.eup %4366 }
 0x3fc   :  { %4372 = vrcp.f32 %v951_v13  ;;  %v952_v26 = vadd.f32 1.0, %v4367_v19  ;;  %v1142_v27 = vrot.slane %v1141_v14, 1  ;;  %v1154_v29 = vadd.f32 %v1153_v17, %v1152_v8  ;;  %v4125_v17 = vld [vmem:[#allocation10 + $0x10c] ss:$16 sps:$4 sm:$0xff]   ;;  %v4120_v19 = vld [vmem:[#allocation10 + $0x100] ss:$16 sps:$4 sm:$0xff]  }
 0x3fd   :  { %1461 = vmatprep.subr.bf16.mxu1 %v4125_v17 }
 0x3fe   :  { %v4369_v31 = vpop.eup %4368  ;;  %4374 = vrcp.f32 %v952_v26  ;;  %v1143_v32 = vadd.f32 %v1142_v27, %v1141_v14  ;;  %v1155_v35 = vrot.slane %v1154_v29, 1  ;;  %v4122_v14 = vld [vmem:[#allocation10 + $0x104] ss:$16 sps:$4 sm:$0xff]   ;;  %v4123_v26 = vld [vmem:[#allocation10 + $0x108] ss:$16 sps:$4 sm:$0xff]  }
 0x3ff   :  { %v961_v36 = vmul.f32 %v4369_v31, %v921_v30  ;;  %1462 = vmatpush1.bf16.msra.mxu1 %v4123_v26  ;;  %v4126_v27 = vld [vmem:[#allocation10 + $0x120] ss:$16 sps:$4 sm:$0xff]   ;;  %v4129_v30 = vld [vmem:[#allocation10 + $0x128] ss:$16 sps:$4 sm:$0xff]  }
 0x400   :  { %v4371_v41 = vpop.eup %4370  ;;  %v1156_v42 = vadd.f32 %v1155_v35, %v1154_v29  ;;  %v1157_v43 = vmul.f32 0.03125, %v1143_v32  ;;  %v4128_v29 = vld [vmem:[#allocation10 + $0x124] ss:$16 sps:$4 sm:$0xff]   ;;  %v4137_v35 = vld [vmem:[#allocation10 + $0x14c] ss:$16 sps:$4 sm:$0xff]  }
 0x401   :  { %v962_v46 = vmul.f32 %v4371_v41, %v925_v38  ;;  %v966_v5 = vpack.c.bf16 %v4371_v41, %v4369_v31  ;;  %v4131_v31 = vld [vmem:[#allocation10 + $0x12c] ss:$16 sps:$4 sm:$0xff]   ;;  %v4134_v32 = vld [vmem:[#allocation10 + $0x144] ss:$16 sps:$4 sm:$0xff]   ;;  %v4135_v38 = vld [vmem:[#allocation10 + $0x148] ss:$16 sps:$4 sm:$0xff]  }
 0x402   :  { %v1158_v47 = vmul.f32 0.03125, %v1156_v42  ;;  %v1159_v48 = vmul.f32 %v1157_v43, %v1157_v43  ;;  %v1164_v49 = vsub.f32 %v5375_v45, %v1157_v43  ;;  %v1161_v50 = vsub.f32 %v5353_v15, %v1157_v43  ;;  %v5385_v15 = vpop.trf.xlu0  ;;  %1463 = vmatprep.subr.bf16.mxu1 %v4131_v31  ;;  %v4140_v41 = vld [vmem:[#allocation10 + $0x164] ss:$16 sps:$4 sm:$0xff]   ;;  %v4143_v42 = vld [vmem:[#allocation10 + $0x16c] ss:$16 sps:$4 sm:$0xff]  }
 0x403   :  { %v965_v51 = vpack.c.bf16 %v962_v46, %v961_v36  ;;  %1000 = vmatprep.subr.bf16.mxu0 %v966_v5  ;;  %v1162_v12 = vsub.f32 %v5356_v20, %v1157_v43  ;;  %v1163_v52 = vsub.f32 %v5367_v37, %v1157_v43  ;;  %v4132_v36 = vld [vmem:[#allocation10 + $0x140] ss:$16 sps:$4 sm:$0xff]   ;;  %1464 = vmatpush1.bf16.msra.mxu1 %v4129_v30  ;;  %v4141_v46 = vld [vmem:[#allocation10 + $0x168] ss:$16 sps:$4 sm:$0xff]   ;;  %v4146_v5 = vld [vmem:[#allocation10 + $0x184] ss:$16 sps:$4 sm:$0xff]  }
 0x404   :  { %v1160_v56 = vsub.f32 %v1158_v47, %v1159_v48  ;;  %1465 = vmatprep.subr.bf16.mxu1 %v4137_v35  ;;  %v4138_v43 = vld [vmem:[#allocation10 + $0x160] ss:$16 sps:$4 sm:$0xff]   ;;  %v4149_v47 = vld [vmem:[#allocation10 + $0x18c] ss:$16 sps:$4 sm:$0xff]  }
 0x405   :  { %1001 = vmatpush1.bf16.msra.mxu0 %v965_v51  ;;  %v4144_v48 = vld [vmem:[#allocation10 + $0x180] ss:$16 sps:$4 sm:$0xff]   ;;  %v4155_v51 = vld [vmem:[#allocation10 + $0x1ac] ss:$16 sps:$4 sm:$0xff]  }
 0x406   :  { %v4373_v18 = vpop.eup %4372  ;;  %v1165_v59 = vadd.f32 1e-05, %v1160_v56  ;;  %v4158_v56 = vld [vmem:[#allocation10 + $0x1c4] ss:$16 sps:$4 sm:$0xff]  }
 0x407   :  { %v963_v62 = vmul.f32 %v4373_v18, %v931_v58  ;;  %1466 = vmatpush1.bf16.msra.mxu1 %v4135_v38  ;;  %v4161_v58 = vld [vmem:[#allocation10 + $0x1cc] ss:$16 sps:$4 sm:$0xff]  }
 0x408   :  { %v4375_v8 = vpop.eup %4374  ;;  %4376 = vrsqrt.f32 %v1165_v59  ;;  %1467 = vmatprep.subr.bf16.mxu1 %v4143_v42  ;;  %v4159_v59 = vld [vmem:[#allocation10 + $0x1c8] ss:$16 sps:$4 sm:$0xff]  }
 0x409   :  { %v964_v9 = vmul.f32 %v4375_v8, %v935_v2  ;;  %v968_v13 = vpack.c.bf16 %v4375_v8, %v4373_v18  ;;  %v4156_v18 = vld [vmem:[#allocation10 + $0x1c0] ss:$16 sps:$4 sm:$0xff]   ;;  %v4167_v2 = vld [vmem:[#allocation10 + $0x1ec] ss:$16 sps:$4 sm:$0xff]  }
 0x40a   :  { %v4162_v8 = vld [vmem:[#allocation10 + $0x1e0] ss:$16 sps:$4 sm:$0xff]  }
 0x40b   :  { %v967_v45 = vpack.c.bf16 %v964_v9, %v963_v62  ;;  %1002 = vmatprep.subr.bf16.mxu0 %v968_v13  ;;  %1468 = vmatpush1.bf16.msra.mxu1 %v4141_v46  ;;  %v4164_v62 = vld [vmem:[#allocation10 + $0x1e4] ss:$16 sps:$4 sm:$0xff]   ;;  %v4165_v9 = vld [vmem:[#allocation10 + $0x1e8] ss:$16 sps:$4 sm:$0xff]  }
 0x40c   :  { %1469 = vmatprep.subr.bf16.mxu1 %v4149_v47  ;;  %v4170_v13 = vld [vmem:[#allocation13 + $0x84] ss:$8 sps:$4 sm:$0xff]  }
 0x40d   :  { %1003 = vmatpush1.bf16.msra.mxu0 %v967_v45 }
 0x40e   :  { %1418 = vmatprep.subr.bf16.mxu0 %v4122_v14 }
 0x410   :  { %3668 = vmatmul.mubr.msk.bf16.vlgmr.msra.gmra.mrb[8].mxu0 %vm877_vm1, %v5385_v15 }
 0x411   :  { %1450 = vmatprep.mubr.bf16.mxu0 %v4852_v44  ;;  %1419 = vmatpush1.bf16.msra.mxu0 %v4120_v19 }
 0x412   :  { %v4377_v20 = vpop.eup %4376  ;;  %1420 = vmatprep.subr.bf16.mxu0 %v4128_v29 }
 0x413   :  { %v5390_v33 = vmul.f32 %v4377_v20, %v1164_v49  ;;  %v5392_v37 = vmul.f32 %v4377_v20, %v1161_v50  ;;  %v5394_v39 = vmul.f32 %v4377_v20, %v1162_v12  ;;  %v5396_v11 = vmul.f32 %v4377_v20, %v1163_v52  ;;  %v4147_v49 = vld [vmem:[#allocation10 + $0x188] ss:$16 sps:$4 sm:$0xff]   ;;  %v4152_v50 = vld [vmem:[#allocation10 + $0x1a4] ss:$16 sps:$4 sm:$0xff]   ;;  %v4150_v12 = vld [vmem:[#allocation10 + $0x1a0] ss:$16 sps:$4 sm:$0xff]  }
 0x414   :  { %1470 = vmatpush1.bf16.msra.mxu1 %v4147_v49  ;;  %v4153_v52 = vld [vmem:[#allocation10 + $0x1a8] ss:$16 sps:$4 sm:$0xff]  }
 0x415   :  { %1421 = vmatpush1.bf16.msra.mxu0 %v4126_v27  ;;  %1471 = vmatprep.subr.bf16.mxu1 %v4155_v51  ;;  %v490_v27 = vrot.slane %v5304_v23, %v5345_v6 }
 0x416   :  { %1422 = vmatprep.subr.bf16.mxu0 %v4134_v32 }
 0x417   :  { %v702_v30 = vadd.f32 %v5312_v28, %v490_v27  ;;  %v706_v35 = vadd.f32 %v5318_v34, %v490_v27  ;;  %v3670_v27 = vld [vmem:[#allocation17] ss:$0 sm:$0xff] }
 0x418   :  { %1472 = vmatpush1.bf16.msra.mxu1 %v4153_v52 }
 0x419   :  { %1423 = vmatpush1.bf16.msra.mxu0 %v4132_v36  ;;  %1473 = vmatprep.subr.bf16.mxu1 %v4161_v58 }
 0x41a   :  { %1424 = vmatprep.subr.bf16.mxu0 %v4140_v41 }
 0x41c   :  { %1474 = vmatpush1.bf16.msra.mxu1 %v4159_v59 }
 0x41d   :  { %1425 = vmatpush1.bf16.msra.mxu0 %v4138_v43  ;;  %1475 = vmatprep.subr.bf16.mxu1 %v4167_v2 }
 0x41e   :  { %1426 = vmatprep.subr.bf16.mxu0 %v4146_v5 }
 0x420   :  { %1476 = vmatpush1.bf16.msra.mxu1 %v4165_v9 }
 0x421   :  { %1427 = vmatpush1.bf16.msra.mxu0 %v4144_v48 }
 0x422   :  { %1428 = vmatprep.subr.bf16.mxu0 %v4152_v50 }
 0x425   :  { %1429 = vmatpush1.bf16.msra.mxu0 %v4150_v12 }
 0x426   :  { %1430 = vmatprep.subr.bf16.mxu0 %v4158_v56 }
 0x429   :  { %1431 = vmatpush1.bf16.msra.mxu0 %v4156_v18 }
 0x42a   :  { %1432 = vmatprep.subr.bf16.mxu0 %v4164_v62 }
 0x42d   :  { %1433 = vmatpush1.bf16.msra.mxu0 %v4162_v8 }
 0x42e   :  { %1619 = vmatprep.subr.bf16.mxu0 %v4170_v13 }
 0x4e3   :  { %v1034_v45 = vpop.f32.mrb[8].mxu0 }
 0x4e4   :  { %v1036_v20 = vpop.f32.mrb[9].mxu0 }
 0x4e5   :  { %v1043_v14 = vadd.f32 1e-06, %v1036_v20  ;;  %v1038_v17 = vpop.f32.mrb[10].mxu0 }
 0x4e6   :  { %v1040_v19 = vpop.f32.mrb[11].mxu0 }
 0x4e7   :  { %4378 = vrcp.f32 %v1043_v14  ;;  %v1044_v26 = vadd.f32 1e-06, %v1040_v19 }
 0x4e9   :  { %4380 = vrcp.f32 %v1044_v26 }
 0x4f1   :  { %v4379_v29 = vpop.eup %4378 }
 0x4f2   :  { %v1047_v31 = vmul.f32 %v4379_v29, %v1034_v45 }
 0x4f3   :  { %v4381_v32 = vpop.eup %4380 }
 0x4f4   :  { %v1049_v36 = vadd.f32 %v1047_v31, %v702_v30  ;;  %v1048_v38 = vmul.f32 %v4381_v32, %v1038_v17  ;;  %v3669_v17 = vld [vmem:[#allocation16] ss:$0 sm:$0xff] }
 0x4f6   :  { %v1061_v41 = vmul.f32 %v5341_v3, %v1049_v36  ;;  %v1050_v42 = vadd.f32 %v1048_v38, %v706_v35 }
 0x4f8   :  { %v1062_v43 = vmul.f32 %v5343_v4, %v1050_v42  ;;  %v1096_v46 = vmul.f32 %v1061_v41, %v1061_v41  ;;  %v4168_v42 = vld [vmem:[#allocation13 + $0x80] ss:$8 sps:$4 sm:$0xff]  }
 0x4fa   :  { %v1089_v5 = vadd.f32 %v1062_v43, %v1061_v41  ;;  %v1097_v47 = vmul.f32 %v1062_v43, %v1062_v43 }
 0x4fc   :  { %v1090_v48 = vrot.slane %v1089_v5, 4  ;;  %v1098_v49 = vadd.f32 %v1097_v47, %v1096_v46  ;;  %v4173_v46 = vld [vmem:[#allocation13 + $0x94] ss:$8 sps:$4 sm:$0xff]   ;;  %v4176_v47 = vld [vmem:[#allocation13 + $0xa4] ss:$8 sps:$4 sm:$0xff]  }
 0x4fe   :  { %v1091_v23 = vadd.f32 %v1090_v48, %v1089_v5  ;;  %v1099_v50 = vrot.slane %v1098_v49, 4  ;;  %v4171_v5 = vld [vmem:[#allocation13 + $0x90] ss:$8 sps:$4 sm:$0xff]  }
 0x4ff   :  { %v4177_v48 = vld [vmem:[#allocation13 + $0xb0] ss:$8 sps:$4 sm:$0xff]  }
 0x500   :  { %v1092_v51 = vrot.slane %v1091_v23, 2  ;;  %v1100_v28 = vadd.f32 %v1099_v50, %v1098_v49  ;;  %v4182_v49 = vld [vmem:[#allocation13 + $0xc4] ss:$8 sps:$4 sm:$0xff]   ;;  %v4185_v50 = vld [vmem:[#allocation13 + $0xd4] ss:$8 sps:$4 sm:$0xff]  }
 0x502   :  { %v1093_v12 = vadd.f32 %v1092_v51, %v1091_v23  ;;  %v1101_v52 = vrot.slane %v1100_v28, 2  ;;  %v4180_v23 = vld [vmem:[#allocation13 + $0xc0] ss:$8 sps:$4 sm:$0xff]   ;;  %v4183_v51 = vld [vmem:[#allocation13 + $0xd0] ss:$8 sps:$4 sm:$0xff]  }
 0x504   :  { %v1102_v56 = vadd.f32 %v1101_v52, %v1100_v28  ;;  %v1094_v34 = vrot.slane %v1093_v12, 1  ;;  %v4186_v28 = vld [vmem:[#allocation13 + $0xe0] ss:$8 sps:$4 sm:$0xff]   ;;  %v4189_v52 = vld [vmem:[#allocation13 + $0xf0] ss:$8 sps:$4 sm:$0xff]  }
 0x506   :  { %v1103_v58 = vrot.slane %v1102_v56, 1  ;;  %v1095_v18 = vadd.f32 %v1094_v34, %v1093_v12  ;;  %v4191_v12 = vld [vmem:[#allocation13 + $0xf4] ss:$8 sps:$4 sm:$0xff]  }
 0x507   :  { %v5415_v34 = vld [vmem:[#allocation11 + $0x4] sm:$0xf] }
 0x508   :  { %v1104_v59 = vadd.f32 %v1103_v58, %v1102_v56  ;;  %v1105_v62 = vmul.f32 0.0625, %v1095_v18  ;;  %v3671_v56 = vld [vmem:[#allocation19] ss:$0 sm:$0xff] }
 0x509   :  { %v1177_v58 = vmul.f32 %v3671_v56, %v5392_v37  ;;  %v1178_v18 = vmul.f32 %v3671_v56, %v5394_v39 }
 0x50a   :  { %v1106_v2 = vmul.f32 0.0625, %v1104_v59  ;;  %v1107_v8 = vmul.f32 %v1105_v62, %v1105_v62  ;;  %v1109_v9 = vsub.f32 %v1061_v41, %v1105_v62  ;;  %v1110_v13 = vsub.f32 %v1062_v43, %v1105_v62  ;;  %v3672_v62 = vld [vmem:[#allocation20] ss:$0 sm:$0xff] }
 0x50b   :  { %v1249_v59 = vrot.slane %v5415_v34, %v5302_v22  ;;  %v1188_v39 = vadd.f32 %v3672_v62, %v1178_v18 }
 0x50c   :  { %v1108_v45 = vsub.f32 %v1106_v2, %v1107_v8 }
 0x50e   :  { %v1111_v20 = vadd.f32 1e-05, %v1108_v45 }
 0x510   :  { %4382 = vrsqrt.f32 %v1111_v20 }
 0x51a   :  { %v4383_v14 = vpop.eup %4382 }
 0x51b   :  { %v1113_v19 = vmul.f32 %v4383_v14, %v1109_v9  ;;  %v1114_v26 = vmul.f32 %v4383_v14, %v1110_v13  ;;  %v1245_v9 = vrot.slane %v5415_v34, %v5306_v24  ;;  %v1253_v13 = vrot.slane %v5415_v34, %v5308_v25 }
 0x51d   :  { %v1121_v29 = vmul.f32 %v3669_v17, %v1113_v19  ;;  %v1122_v30 = vmul.f32 %v3669_v17, %v1114_v26  ;;  %v1187_v17 = vadd.f32 %v3672_v62, %v1177_v58 }
 0x51f   :  { %v1129_v31 = vadd.f32 %v3670_v27, %v1121_v29  ;;  %v1130_v32 = vadd.f32 %v3670_v27, %v1122_v30 }
 0x521   :  { %v1131_v35 = vmax.f32 %v1129_v31, 0.0  ;;  %v1132_v36 = vmax.f32 %v1130_v32, 0.0 }
 0x523   :  { %v5405_v38 = vadd.f32 %v1131_v35, %v5285_v60  ;;  %v5408_v41 = vadd.f32 %v1132_v36, %v5287_v61  ;;  %v4174_v60 = vld [vmem:[#allocation13 + $0xa0] ss:$8 sps:$4 sm:$0xff]   ;;  %v4179_v61 = vld [vmem:[#allocation13 + $0xb4] ss:$8 sps:$4 sm:$0xff]  }
 0x525   :  { %v1201_v43 = vpack.c.bf16 %v5408_v41, %v5405_v38 }
 0x527   :  { %1451 = vmatmul.mubr.bf16.vlgmr.msra.gmra.mrb[12].mxu0 %v1201_v43  ;;  %1494 = vmatmul.mubr.bf16.vlgmr.msra.gmra.mrb[12].mxu1 %v1201_v43  ;;  %v1180_v43 = vmul.f32 %v3671_v56, %v5390_v33 }
 0x528   :  { %1620 = vmatpush1.bf16.msra.mxu0 %v4168_v42  ;;  %3721 = vmatprep.mubr.msk.bf16.mxu0 %vm877_vm1, %v5292_v16  ;;  %v4188_v16 = vld [vmem:[#allocation13 + $0xe4] ss:$8 sps:$4 sm:$0xff]   ;;  %v1179_v42 = vmul.f32 %v3671_v56, %v5396_v11 }
 0x529   :  { %1621 = vmatprep.subr.bf16.mxu0 %v4173_v46  ;;  %1736 = vmatprep.mubr.bf16.mxu1 %v4852_v44 }
 0x52c   :  { %1622 = vmatpush1.bf16.msra.mxu0 %v4171_v5 }
 0x52d   :  { %1623 = vmatprep.subr.bf16.mxu0 %v4176_v47  ;;  %v1191_v47 = vmax.f32 %v1187_v17, 0.0 }
 0x530   :  { %1624 = vmatpush1.bf16.msra.mxu0 %v4174_v60  ;;  %v1192_v60 = vmax.f32 %v1188_v39, 0.0 }
 0x531   :  { %1625 = vmatprep.subr.bf16.mxu0 %v4179_v61  ;;  %v5433_v61 = vadd.f32 %v1191_v47, %v5323_v53 }
 0x534   :  { %1626 = vmatpush1.bf16.msra.mxu0 %v4177_v48  ;;  %v5436_v48 = vadd.f32 %v1192_v60, %v5325_v54 }
 0x535   :  { %1627 = vmatprep.subr.bf16.mxu0 %v4182_v49  ;;  %v1189_v49 = vadd.f32 %v3672_v62, %v1179_v42 }
 0x536   :  { %v1604_v33 = vpack.c.bf16 %v5436_v48, %v5433_v61 }
 0x537   :  { %v1193_v11 = vmax.f32 %v1189_v49, 0.0 }
 0x538   :  { %1628 = vmatpush1.bf16.msra.mxu0 %v4180_v23  ;;  %v1190_v23 = vadd.f32 %v3672_v62, %v1180_v43 }
 0x539   :  { %1629 = vmatprep.subr.bf16.mxu0 %v4185_v50 }
 0x53a   :  { %v1194_v50 = vmax.f32 %v1190_v23, 0.0 }
 0x53c   :  { %1630 = vmatpush1.bf16.msra.mxu0 %v4183_v51  ;;  %v5443_v51 = vadd.f32 %v1193_v11, %v5334_v63  ;;  %v5446_v53 = vadd.f32 %v1194_v50, %v5336_v1 }
 0x53d   :  { %1631 = vmatprep.subr.bf16.mxu0 %v4188_v16  ;;  %v1607_v16 = vld [vmem:[#allocation14 + $0x2] sm:$0x3] }
 0x53e   :  { %v1605_v54 = vpack.c.bf16 %v5446_v53, %v5443_v51 }
 0x540   :  { %1632 = vmatpush1.bf16.msra.mxu0 %v4186_v28  ;;  %v1612_v28 = vrot.slane %v1607_v16, %v5345_v6 }
 0x541   :  { %1633 = vmatprep.subr.bf16.mxu0 %v4191_v12 }
 0x544   :  { %1634 = vmatpush1.bf16.msra.mxu0 %v4189_v52 }
 0x5fa   :  { %v5421_v2 = vpop.f32.mrb[12].mxu0  ;;  %v1495_v8 = vpop.f32.mrb[12].mxu1 }
 0x5fb   :  { %v1454_v45 = vpop.f32.mrb[13].mxu0  ;;  %v1497_v20 = vpop.f32.mrb[13].mxu1  ;;  %v1496_v19 = vadd.f32 %v1495_v8, %v1249_v59 }
 0x5fc   :  { %v5427_v14 = vpop.f32.mrb[14].mxu0  ;;  %v1499_v37 = vpop.f32.mrb[14].mxu1  ;;  %v1455_v30 = vadd.f32 %v1454_v45, %v1245_v9  ;;  %v1498_v31 = vadd.f32 %v1497_v20, %v1253_v13 }
 0x5fd   :  { %v1500_v26 = vadd.f32 %v1499_v37, %v1249_v59  ;;  %v1458_v27 = vpop.f32.mrb[15].mxu0  ;;  %v1501_v29 = vpop.f32.mrb[15].mxu1 }
 0x5fe   :  { %v1459_v32 = vadd.f32 %v1458_v27, %v1245_v9  ;;  %v1502_v35 = vadd.f32 %v1501_v29, %v1253_v13 }
 0x5ff   :  { %v1521_v36 = vpack.c.bf16 %v1500_v26, %v1496_v19 }
 0x600   :  { %v1522_v46 = vpack.c.bf16 %v1459_v32, %v1455_v30  ;;  %v1523_v5 = vpack.c.bf16 %v1502_v35, %v1498_v31 }
 0x602   :  { %1635 = vmatprep.subr.bf16.mxu0 %v1522_v46 }
 0x603   :  { %1636 = vmatpush1.bf16.msra.mxu0 %v1521_v36 }
 0x604   :  { %1637 = vmatprep.subr.bf16.mxu0 %v4853_v55 }
 0x607   :  { %1638 = vmatpush1.bf16.msra.mxu0 %v1523_v5 }
 0x60a   :  { %1652 = vmatmul.mubr.bf16.vlgmr.msra.gmra.mrb[16].mxu0 %v1604_v33 }
 0x60b   :  { %3722 = vmatprep.mubr.msk.bf16.mxu0 %vm877_vm1, %v5328_v57 }
 0x612   :  { %1662 = vmatmul.mubr.bf16.gmra.mrb[20].mxu0 %v1605_v54 }
 0x613   :  { %2171 = vmatprep.mubr.bf16.mxu0 %v4852_v44 }
 0x6dd   :  { %v1653_v12 = vpop.f32.mrb[16].mxu0 }
 0x6de   :  { %v1654_v52 = vadd.f32 %v1653_v12, %v1612_v28  ;;  %v1655_v56 = vpop.f32.mrb[17].mxu0  ;;  %v1616_v12 = vrot.slane %v1607_v16, %v5306_v24 }
 0x6df   :  { %v1657_v58 = vpop.f32.mrb[18].mxu0 }
 0x6e0   :  { %v3723_v57 = vmul.f32 -1.442695, %v1654_v52  ;;  %v5453_v63 = vmul.f32 %v1654_v52, %v5347_v7  ;;  %v1658_v18 = vadd.f32 %v1657_v58, %v1612_v28  ;;  %v1659_v1 = vpop.f32.mrb[19].mxu0 }
 0x6e2   :  { %4384 = vpow2.f32 %v3723_v57  ;;  %v3724_v59 = vmul.f32 -1.442695, %v1658_v18  ;;  %v5456_v62 = vmul.f32 %v1658_v18, %v5350_v10  ;;  %v1822_v8 = vmul.f32 %v5453_v63, %v5453_v63 }
 0x6e4   :  { %4386 = vpow2.f32 %v3724_v59  ;;  %v1813_v9 = vadd.f32 %v5456_v62, %v5453_v63  ;;  %v1823_v13 = vmul.f32 %v5456_v62, %v5456_v62 }
 0x6e5   :  { %v1663_v45 = vpop.f32.mrb[20].mxu0 }
 0x6e6   :  { %v1826_v20 = vadd.f32 %v1823_v13, %v1822_v8  ;;  %v1664_v37 = vadd.f32 %v1663_v45, %v1612_v28  ;;  %v1665_v17 = vpop.f32.mrb[21].mxu0  ;;  %v1656_v13 = vadd.f32 %v1655_v56, %v1616_v12 }
 0x6e7   :  { %v1667_v39 = vpop.f32.mrb[22].mxu0 }
 0x6e8   :  { %v3725_v19 = vmul.f32 -1.442695, %v1664_v37  ;;  %v5465_v26 = vmul.f32 %v1664_v37, %v5358_v21  ;;  %v1668_v27 = vadd.f32 %v1667_v39, %v1612_v28  ;;  %v1669_v29 = vpop.f32.mrb[23].mxu0 }
 0x6ea   :  { %4388 = vpow2.f32 %v3725_v19  ;;  %v1814_v30 = vadd.f32 %v1813_v9, %v5465_v26  ;;  %v1824_v31 = vmul.f32 %v5465_v26, %v5465_v26  ;;  %v3726_v32 = vmul.f32 -1.442695, %v1668_v27 }
 0x6eb   :  { %v5471_v35 = vmul.f32 %v1668_v27, %v5369_v40  ;;  %v1660_v19 = vadd.f32 %v1659_v1, %v1616_v12 }
 0x6ec   :  { %v4385_v36 = vpop.eup %4384  ;;  %v1827_v42 = vadd.f32 %v1826_v20, %v1824_v31  ;;  %4390 = vpow2.f32 %v3726_v32 }
 0x6ed   :  { %v1684_v43 = vadd.f32 1.0, %v4385_v36  ;;  %v1815_v46 = vadd.f32 %v1814_v30, %v5471_v35  ;;  %v1825_v5 = vmul.f32 %v5471_v35, %v5471_v35 }
 0x6ee   :  { %v4387_v47 = vpop.eup %4386 }
 0x6ef   :  { %4392 = vrcp.f32 %v1684_v43  ;;  %v1685_v60 = vadd.f32 1.0, %v4387_v47  ;;  %v1816_v49 = vrot.slane %v1815_v46, 4  ;;  %v1828_v23 = vadd.f32 %v1827_v42, %v1825_v5 }
 0x6f1   :  { %4394 = vrcp.f32 %v1685_v60  ;;  %v1817_v33 = vadd.f32 %v1816_v49, %v1815_v46  ;;  %v1829_v11 = vrot.slane %v1828_v23, 4  ;;  %v1666_v49 = vadd.f32 %v1665_v17, %v1616_v12 }
 0x6f3   :  { %v1818_v50 = vrot.slane %v1817_v33, 2  ;;  %v1830_v54 = vadd.f32 %v1829_v11, %v1828_v23  ;;  %v1670_v11 = vadd.f32 %v1669_v29, %v1616_v12  ;;  %v4194_v12 = vld [vmem:[#allocation10 + $0x204] ss:$16 sps:$4 sm:$0xff]  }
 0x6f4   :  { %v4389_v28 = vpop.eup %4388 }
 0x6f5   :  { %v1686_v52 = vadd.f32 1.0, %v4389_v28  ;;  %v1819_v58 = vadd.f32 %v1818_v50, %v1817_v33  ;;  %v1831_v57 = vrot.slane %v1830_v54, 2 }
 0x6f6   :  { %v4391_v18 = vpop.eup %4390 }
 0x6f7   :  { %4396 = vrcp.f32 %v1686_v52  ;;  %v1687_v59 = vadd.f32 1.0, %v4391_v18  ;;  %v1820_v8 = vrot.slane %v1819_v58, 1  ;;  %v1832_v9 = vadd.f32 %v1831_v57, %v1830_v54  ;;  %v4197_v52 = vld [vmem:[#allocation10 + $0x20c] ss:$16 sps:$4 sm:$0xff]   ;;  %v4195_v57 = vld [vmem:[#allocation10 + $0x208] ss:$16 sps:$4 sm:$0xff]  }
 0x6f8   :  { %2139 = vmatprep.subr.bf16.mxu0 %v4197_v52  ;;  %v4198_v18 = vld [vmem:[#allocation10 + $0x220] ss:$16 sps:$4 sm:$0xff]  }
 0x6f9   :  { %v4393_v45 = vpop.eup %4392  ;;  %4398 = vrcp.f32 %v1687_v59  ;;  %v1821_v20 = vadd.f32 %v1820_v8, %v1819_v58  ;;  %v1833_v37 = vrot.slane %v1832_v9, 1  ;;  %v4192_v58 = vld [vmem:[#allocation10 + $0x200] ss:$16 sps:$4 sm:$0xff]   ;;  %2140 = vmatpush1.bf16.msra.mxu0 %v4195_v57  ;;  %v4200_v59 = vld [vmem:[#allocation10 + $0x224] ss:$16 sps:$4 sm:$0xff]  }
 0x6fa   :  { %v1696_v39 = vmul.f32 %v4393_v45, %v1656_v13  ;;  %v4201_v8 = vld [vmem:[#allocation10 + $0x228] ss:$16 sps:$4 sm:$0xff]   ;;  %v4206_v13 = vld [vmem:[#allocation10 + $0x244] ss:$16 sps:$4 sm:$0xff]  }
 0x6fb   :  { %v4395_v27 = vpop.eup %4394  ;;  %v1834_v30 = vadd.f32 %v1833_v37, %v1832_v9  ;;  %v1835_v31 = vmul.f32 0.03125, %v1821_v20  ;;  %v4203_v9 = vld [vmem:[#allocation10 + $0x22c] ss:$16 sps:$4 sm:$0xff]   ;;  %v4204_v20 = vld [vmem:[#allocation10 + $0x240] ss:$16 sps:$4 sm:$0xff]  }
 0x6fc   :  { %v1697_v32 = vmul.f32 %v4395_v27, %v1660_v19  ;;  %v1701_v16 = vpack.c.bf16 %v4395_v27, %v4393_v45  ;;  %v4209_v45 = vld [vmem:[#allocation10 + $0x24c] ss:$16 sps:$4 sm:$0xff]   ;;  %2141 = vmatprep.subr.bf16.mxu0 %v4203_v9  ;;  %v4207_v37 = vld [vmem:[#allocation10 + $0x248] ss:$16 sps:$4 sm:$0xff]   ;;  %v4210_v27 = vld [vmem:[#allocation10 + $0x260] ss:$16 sps:$4 sm:$0xff]  }
 0x6fd   :  { %v1836_v36 = vmul.f32 0.03125, %v1834_v30  ;;  %v1837_v42 = vmul.f32 %v1835_v31, %v1835_v31  ;;  %v1842_v43 = vsub.f32 %v5471_v35, %v1835_v31  ;;  %v1839_v46 = vsub.f32 %v5453_v63, %v1835_v31  ;;  %2142 = vmatpush1.bf16.msra.mxu0 %v4201_v8  ;;  %v4215_v19 = vld [vmem:[#allocation10 + $0x26c] ss:$16 sps:$4 sm:$0xff]   ;;  %v4213_v30 = vld [vmem:[#allocation10 + $0x268] ss:$16 sps:$4 sm:$0xff]  }
 0x6fe   :  { %v1700_v5 = vpack.c.bf16 %v1697_v32, %v1696_v39  ;;  %1704 = vmatprep.subr.bf16.mxu1 %v1701_v16  ;;  %v1840_v56 = vsub.f32 %v5456_v62, %v1835_v31  ;;  %v1841_v47 = vsub.f32 %v5465_v26, %v1835_v31  ;;  %2143 = vmatprep.subr.bf16.mxu0 %v4209_v45  ;;  %v4212_v39 = vld [vmem:[#allocation10 + $0x264] ss:$16 sps:$4 sm:$0xff]   ;;  %v4221_v32 = vld [vmem:[#allocation10 + $0x28c] ss:$16 sps:$4 sm:$0xff]   ;;  %v4216_v16 = vld [vmem:[#allocation10 + $0x280] ss:$16 sps:$4 sm:$0xff]  }
 0x6ff   :  { %v1838_v60 = vsub.f32 %v1836_v36, %v1837_v42  ;;  %v4218_v31 = vld [vmem:[#allocation10 + $0x284] ss:$16 sps:$4 sm:$0xff]   ;;  %v4219_v36 = vld [vmem:[#allocation10 + $0x288] ss:$16 sps:$4 sm:$0xff]  }
 0x700   :  { %1705 = vmatpush1.bf16.msra.mxu1 %v1700_v5  ;;  %v4224_v42 = vld [vmem:[#allocation10 + $0x2a4] ss:$16 sps:$4 sm:$0xff]   ;;  %v4225_v5 = vld [vmem:[#allocation10 + $0x2a8] ss:$16 sps:$4 sm:$0xff]  }
 0x701   :  { %v4397_v1 = vpop.eup %4396  ;;  %v1843_v23 = vadd.f32 1e-05, %v1838_v60  ;;  %2144 = vmatpush1.bf16.msra.mxu0 %v4207_v37  ;;  %v4228_v60 = vld [vmem:[#allocation10 + $0x2c0] ss:$16 sps:$4 sm:$0xff]  }
 0x702   :  { %v1698_v33 = vmul.f32 %v4397_v1, %v1666_v49  ;;  %2145 = vmatprep.subr.bf16.mxu0 %v4215_v19  ;;  %v4231_v49 = vld [vmem:[#allocation10 + $0x2c8] ss:$16 sps:$4 sm:$0xff]  }
 0x703   :  { %v4399_v50 = vpop.eup %4398  ;;  %4400 = vrsqrt.f32 %v1843_v23  ;;  %v4239_v23 = vld [vmem:[#allocation10 + $0x2ec] ss:$16 sps:$4 sm:$0xff]  }
 0x704   :  { %v1699_v54 = vmul.f32 %v4399_v50, %v1670_v11  ;;  %v1703_v28 = vpack.c.bf16 %v4399_v50, %v4397_v1  ;;  %v4236_v1 = vld [vmem:[#allocation10 + $0x2e4] ss:$16 sps:$4 sm:$0xff]   ;;  %v4237_v11 = vld [vmem:[#allocation10 + $0x2e8] ss:$16 sps:$4 sm:$0xff]  }
 0x705   :  { %2146 = vmatpush1.bf16.msra.mxu0 %v4213_v30  ;;  %v4242_v50 = vld [vmem:[#allocation13 + $0x104] ss:$8 sps:$4 sm:$0xff]  }
 0x706   :  { %v1702_v35 = vpack.c.bf16 %v1699_v54, %v1698_v33  ;;  %1706 = vmatprep.subr.bf16.mxu1 %v1703_v28  ;;  %2147 = vmatprep.subr.bf16.mxu0 %v4221_v32  ;;  %v4234_v33 = vld [vmem:[#allocation10 + $0x2e0] ss:$16 sps:$4 sm:$0xff]  }
 0x708   :  { %1707 = vmatpush1.bf16.msra.mxu1 %v1702_v35 }
 0x709   :  { %2096 = vmatprep.subr.bf16.mxu1 %v4194_v12  ;;  %2148 = vmatpush1.bf16.msra.mxu0 %v4219_v36 }
 0x70b   :  { %3727 = vmatmul.mubr.msk.bf16.vlgmr.msra.gmra.mrb[16].mxu1 %vm877_vm1, %v5385_v15 }
 0x70c   :  { %2128 = vmatprep.mubr.bf16.mxu1 %v4852_v44  ;;  %2097 = vmatpush1.bf16.msra.mxu1 %v4192_v58  ;;  %v1241_v58 = vrot.slane %v5415_v34, %v5345_v6 }
 0x70d   :  { %v4401_v63 = vpop.eup %4400  ;;  %2098 = vmatprep.subr.bf16.mxu1 %v4200_v59 }
 0x70e   :  { %v5484_v62 = vmul.f32 %v4401_v63, %v1842_v43  ;;  %v5486_v17 = vmul.f32 %v4401_v63, %v1839_v46  ;;  %v5488_v26 = vmul.f32 %v4401_v63, %v1840_v56  ;;  %v5490_v29 = vmul.f32 %v4401_v63, %v1841_v47  ;;  %v4227_v43 = vld [vmem:[#allocation10 + $0x2ac] ss:$16 sps:$4 sm:$0xff]   ;;  %v4222_v46 = vld [vmem:[#allocation10 + $0x2a0] ss:$16 sps:$4 sm:$0xff]   ;;  %v4230_v56 = vld [vmem:[#allocation10 + $0x2c4] ss:$16 sps:$4 sm:$0xff]  }
 0x70f   :  { %2149 = vmatprep.subr.bf16.mxu0 %v4227_v43  ;;  %v4233_v47 = vld [vmem:[#allocation10 + $0x2cc] ss:$16 sps:$4 sm:$0xff]   ;;  %v1457_v9 = vadd.f32 %v5427_v14, %v1241_v58 }
 0x710   :  { %2099 = vmatpush1.bf16.msra.mxu1 %v4198_v18  ;;  %2150 = vmatpush1.bf16.msra.mxu0 %v4225_v5  ;;  %v1453_v18 = vadd.f32 %v5421_v2, %v1241_v58 }
 0x711   :  { %2100 = vmatprep.subr.bf16.mxu1 %v4206_v13  ;;  %2151 = vmatprep.subr.bf16.mxu0 %v4233_v47 }
 0x714   :  { %2101 = vmatpush1.bf16.msra.mxu1 %v4204_v20  ;;  %2152 = vmatpush1.bf16.msra.mxu0 %v4231_v49 }
 0x715   :  { %2102 = vmatprep.subr.bf16.mxu1 %v4212_v39  ;;  %2153 = vmatprep.subr.bf16.mxu0 %v4239_v23 }
 0x718   :  { %2103 = vmatpush1.bf16.msra.mxu1 %v4210_v27  ;;  %2154 = vmatpush1.bf16.msra.mxu0 %v4237_v11 }
 0x719   :  { %2104 = vmatprep.subr.bf16.mxu1 %v4218_v31 }
 0x71c   :  { %2105 = vmatpush1.bf16.msra.mxu1 %v4216_v16 }
 0x71d   :  { %2106 = vmatprep.subr.bf16.mxu1 %v4224_v42 }
 0x720   :  { %2107 = vmatpush1.bf16.msra.mxu1 %v4222_v46 }
 0x721   :  { %2108 = vmatprep.subr.bf16.mxu1 %v4230_v56 }
 0x724   :  { %2109 = vmatpush1.bf16.msra.mxu1 %v4228_v60 }
 0x725   :  { %2110 = vmatprep.subr.bf16.mxu1 %v4236_v1 }
 0x728   :  { %2111 = vmatpush1.bf16.msra.mxu1 %v4234_v33 }
 0x729   :  { %2297 = vmatprep.subr.bf16.mxu1 %v4242_v50 }
 0x7de   :  { %v1738_v54 = vpop.f32.mrb[16].mxu1 }
 0x7df   :  { %v1740_v28 = vpop.f32.mrb[17].mxu1 }
 0x7e0   :  { %v1747_v35 = vadd.f32 1e-06, %v1740_v28  ;;  %v1742_v63 = vpop.f32.mrb[18].mxu1  ;;  %v3728_v28 = vld [vmem:[#allocation16 + $0x1] ss:$0 sm:$0xff] }
 0x7e1   :  { %v1744_v12 = vpop.f32.mrb[19].mxu1 }
 0x7e2   :  { %4402 = vrcp.f32 %v1747_v35  ;;  %v1748_v52 = vadd.f32 1e-06, %v1744_v12  ;;  %v3729_v12 = vld [vmem:[#allocation17 + $0x1] ss:$0 sm:$0xff] }
 0x7e4   :  { %4404 = vrcp.f32 %v1748_v52 }
 0x7ec   :  { %v4403_v57 = vpop.eup %4402 }
 0x7ed   :  { %v1751_v59 = vmul.f32 %v4403_v57, %v1738_v54 }
 0x7ee   :  { %v4405_v8 = vpop.eup %4404 }
 0x7ef   :  { %v1753_v13 = vadd.f32 %v1751_v59, %v1453_v18  ;;  %v1752_v45 = vmul.f32 %v4405_v8, %v1742_v63 }
 0x7f1   :  { %v1755_v20 = vmul.f32 %v1753_v13, %v5341_v3  ;;  %v1754_v37 = vadd.f32 %v1752_v45, %v1457_v9  ;;  %v4240_v45 = vld [vmem:[#allocation13 + $0x100] ss:$8 sps:$4 sm:$0xff]  }
 0x7f3   :  { %v1756_v39 = vmul.f32 %v1754_v37, %v5343_v4  ;;  %v1772_v19 = vmul.f32 %v1755_v20, %v1755_v20  ;;  %v4245_v37 = vld [vmem:[#allocation13 + $0x114] ss:$8 sps:$4 sm:$0xff]  }
 0x7f5   :  { %v1765_v27 = vadd.f32 %v1756_v39, %v1755_v20  ;;  %v1773_v30 = vmul.f32 %v1756_v39, %v1756_v39 }
 0x7f7   :  { %v1766_v31 = vrot.slane %v1765_v27, 4  ;;  %v1774_v32 = vadd.f32 %v1773_v30, %v1772_v19  ;;  %v5506_v19 = vld [vmem:[#allocation5] sm:$0xff]   ;;  %v4249_v30 = vld [vmem:[#allocation13 + $0x130] ss:$8 sps:$4 sm:$0xff]  }
 0x7f9   :  { %v1767_v34 = vadd.f32 %v1766_v31, %v1765_v27  ;;  %v1775_v16 = vrot.slane %v1774_v32, 4  ;;  %v4251_v27 = vld [vmem:[#allocation13 + $0x134] ss:$8 sps:$4 sm:$0xff]   ;;  %v4254_v31 = vld [vmem:[#allocation13 + $0x144] ss:$8 sps:$4 sm:$0xff]  }
 0x7fb   :  { %v1768_v36 = vrot.slane %v1767_v34, 2  ;;  %v1776_v2 = vadd.f32 %v1775_v16, %v1774_v32  ;;  %v4252_v32 = vld [vmem:[#allocation13 + $0x140] ss:$8 sps:$4 sm:$0xff]   ;;  %v4255_v16 = vld [vmem:[#allocation13 + $0x150] ss:$8 sps:$4 sm:$0xff]  }
 0x7fd   :  { %v1769_v42 = vadd.f32 %v1768_v36, %v1767_v34  ;;  %v1777_v43 = vrot.slane %v1776_v2, 2  ;;  %v4257_v34 = vld [vmem:[#allocation13 + $0x154] ss:$8 sps:$4 sm:$0xff]   ;;  %v4260_v36 = vld [vmem:[#allocation13 + $0x164] ss:$8 sps:$4 sm:$0xff]  }
 0x7ff   :  { %v1778_v46 = vadd.f32 %v1777_v43, %v1776_v2  ;;  %v1770_v14 = vrot.slane %v1769_v42, 1  ;;  %v4258_v2 = vld [vmem:[#allocation13 + $0x160] ss:$8 sps:$4 sm:$0xff]   ;;  %v4261_v43 = vld [vmem:[#allocation13 + $0x170] ss:$8 sps:$4 sm:$0xff]  }
 0x801   :  { %v1779_v5 = vrot.slane %v1778_v46, 1  ;;  %v1771_v56 = vadd.f32 %v1770_v14, %v1769_v42  ;;  %v4263_v42 = vld [vmem:[#allocation13 + $0x174] ss:$8 sps:$4 sm:$0xff]   ;;  %v5511_v14 = vld [vmem:[#allocation11 + $0x8] sm:$0xf] }
 0x803   :  { %v1780_v47 = vadd.f32 %v1779_v5, %v1778_v46  ;;  %v1781_v60 = vmul.f32 0.0625, %v1771_v56  ;;  %v3730_v46 = vld [vmem:[#allocation19 + $0x1] ss:$0 sm:$0xff] }
 0x804   :  { %v1855_v5 = vmul.f32 %v3730_v46, %v5486_v17  ;;  %v1856_v56 = vmul.f32 %v3730_v46, %v5488_v26 }
 0x805   :  { %v1782_v49 = vmul.f32 0.0625, %v1780_v47  ;;  %v1783_v1 = vmul.f32 %v1781_v60, %v1781_v60  ;;  %v1785_v23 = vsub.f32 %v1755_v20, %v1781_v60  ;;  %v1786_v33 = vsub.f32 %v1756_v39, %v1781_v60  ;;  %v4243_v39 = vld [vmem:[#allocation13 + $0x110] ss:$8 sps:$4 sm:$0xff]   ;;  %v3731_v60 = vld [vmem:[#allocation20 + $0x1] ss:$0 sm:$0xff] }
 0x806   :  { %v1927_v47 = vrot.slane %v5511_v14, %v5302_v22  ;;  %v1866_v26 = vadd.f32 %v3731_v60, %v1856_v56 }
 0x807   :  { %v1784_v11 = vsub.f32 %v1782_v49, %v1783_v1 }
 0x809   :  { %v1787_v50 = vadd.f32 1e-05, %v1784_v11 }
 0x80b   :  { %4406 = vrsqrt.f32 %v1787_v50 }
 0x815   :  { %v4407_v54 = vpop.eup %4406 }
 0x816   :  { %v1789_v35 = vmul.f32 %v4407_v54, %v1785_v23  ;;  %v1790_v63 = vmul.f32 %v4407_v54, %v1786_v33  ;;  %v1923_v23 = vrot.slane %v5511_v14, %v5306_v24  ;;  %v1931_v33 = vrot.slane %v5511_v14, %v5308_v25 }
 0x818   :  { %v1797_v52 = vmul.f32 %v3728_v28, %v1789_v35  ;;  %v1798_v58 = vmul.f32 %v3728_v28, %v1790_v63  ;;  %v1865_v28 = vadd.f32 %v3731_v60, %v1855_v5 }
 0x81a   :  { %v1805_v57 = vadd.f32 %v3729_v12, %v1797_v52  ;;  %v1806_v18 = vadd.f32 %v3729_v12, %v1798_v58 }
 0x81c   :  { %v1807_v59 = vmax.f32 %v1805_v57, 0.0  ;;  %v1808_v8 = vmax.f32 %v1806_v18, 0.0 }
 0x81e   :  { %v5499_v9 = vadd.f32 %v1807_v59, %v5405_v38  ;;  %v5502_v13 = vadd.f32 %v1808_v8, %v5408_v41  ;;  %v4248_v38 = vld [vmem:[#allocation13 + $0x124] ss:$8 sps:$4 sm:$0xff]   ;;  %v4246_v41 = vld [vmem:[#allocation13 + $0x120] ss:$8 sps:$4 sm:$0xff]  }
 0x820   :  { %v1879_v20 = vpack.c.bf16 %v5502_v13, %v5499_v9 }
 0x822   :  { %2129 = vmatmul.mubr.bf16.vlgmr.msra.gmra.mrb[20].mxu1 %v1879_v20  ;;  %2172 = vmatmul.mubr.bf16.vlgmr.msra.gmra.mrb[24].mxu0 %v1879_v20  ;;  %v1858_v20 = vmul.f32 %v3730_v46, %v5484_v62 }
 0x823   :  { %2298 = vmatpush1.bf16.msra.mxu1 %v4240_v45  ;;  %3780 = vmatprep.mubr.msk.bf16.mxu1 %vm877_vm1, %v5506_v19  ;;  %v1857_v45 = vmul.f32 %v3730_v46, %v5490_v29 }
 0x824   :  { %2299 = vmatprep.subr.bf16.mxu1 %v4245_v37  ;;  %2414 = vmatprep.mubr.bf16.mxu0 %v4852_v44 }
 0x827   :  { %2300 = vmatpush1.bf16.msra.mxu1 %v4243_v39 }
 0x828   :  { %2301 = vmatprep.subr.bf16.mxu1 %v4248_v38  ;;  %v1869_v38 = vmax.f32 %v1865_v28, 0.0 }
 0x82b   :  { %2302 = vmatpush1.bf16.msra.mxu1 %v4246_v41  ;;  %v1870_v41 = vmax.f32 %v1866_v26, 0.0 }
 0x82c   :  { %2303 = vmatprep.subr.bf16.mxu1 %v4251_v27  ;;  %v5529_v27 = vadd.f32 %v1869_v38, %v5433_v61 }
 0x82f   :  { %2304 = vmatpush1.bf16.msra.mxu1 %v4249_v30  ;;  %v5532_v30 = vadd.f32 %v1870_v41, %v5436_v48 }
 0x830   :  { %2305 = vmatprep.subr.bf16.mxu1 %v4254_v31  ;;  %v1867_v31 = vadd.f32 %v3731_v60, %v1857_v45 }
 0x831   :  { %v2282_v62 = vpack.c.bf16 %v5532_v30, %v5529_v27 }
 0x832   :  { %v1871_v29 = vmax.f32 %v1867_v31, 0.0 }
 0x833   :  { %2306 = vmatpush1.bf16.msra.mxu1 %v4252_v32  ;;  %v1868_v32 = vadd.f32 %v3731_v60, %v1858_v20 }
 0x834   :  { %2307 = vmatprep.subr.bf16.mxu1 %v4257_v34  ;;  %v5541_v61 = vadd.f32 %v1871_v29, %v5443_v51 }
 0x835   :  { %v1872_v34 = vmax.f32 %v1868_v32, 0.0 }
 0x837   :  { %2308 = vmatpush1.bf16.msra.mxu1 %v4255_v16  ;;  %v5536_v16 = vld [vmem:[#allocation5 + $0x8] sm:$0xff]   ;;  %v5544_v48 = vadd.f32 %v1872_v34, %v5446_v53 }
 0x838   :  { %2309 = vmatprep.subr.bf16.mxu1 %v4260_v36 }
 0x839   :  { %v2283_v36 = vpack.c.bf16 %v5544_v48, %v5541_v61 }
 0x83b   :  { %2310 = vmatpush1.bf16.msra.mxu1 %v4258_v2  ;;  %v2285_v2 = vld [vmem:[#allocation14 + $0x4] sm:$0x3] }
 0x83c   :  { %2311 = vmatprep.subr.bf16.mxu1 %v4263_v42  ;;  %v2290_v42 = vrot.slane %v2285_v2, %v5345_v6 }
 0x83f   :  { %2312 = vmatpush1.bf16.msra.mxu1 %v4261_v43 }
 0x8f5   :  { %v5517_v49 = vpop.f32.mrb[20].mxu1  ;;  %v2173_v1 = vpop.f32.mrb[24].mxu0 }
 0x8f6   :  { %v2132_v11 = vpop.f32.mrb[21].mxu1  ;;  %v2175_v50 = vpop.f32.mrb[25].mxu0  ;;  %v2174_v35 = vadd.f32 %v2173_v1, %v1927_v47 }
 0x8f7   :  { %v5523_v54 = vpop.f32.mrb[22].mxu1  ;;  %v2177_v17 = vpop.f32.mrb[26].mxu0  ;;  %v2133_v58 = vadd.f32 %v2132_v11, %v1923_v23  ;;  %v2176_v57 = vadd.f32 %v2175_v50, %v1931_v33 }
 0x8f8   :  { %v2178_v63 = vadd.f32 %v2177_v17, %v1927_v47  ;;  %v2136_v12 = vpop.f32.mrb[23].mxu1  ;;  %v2179_v52 = vpop.f32.mrb[27].mxu0 }
 0x8f9   :  { %v2137_v18 = vadd.f32 %v2136_v12, %v1923_v23  ;;  %v2180_v59 = vadd.f32 %v2179_v52, %v1931_v33 }
 0x8fa   :  { %v2199_v8 = vpack.c.bf16 %v2178_v63, %v2174_v35 }
 0x8fb   :  { %v2200_v37 = vpack.c.bf16 %v2137_v18, %v2133_v58  ;;  %v2201_v39 = vpack.c.bf16 %v2180_v59, %v2176_v57 }
 0x8fd   :  { %2313 = vmatprep.subr.bf16.mxu1 %v2200_v37 }
 0x8fe   :  { %2314 = vmatpush1.bf16.msra.mxu1 %v2199_v8 }
 0x8ff   :  { %2315 = vmatprep.subr.bf16.mxu1 %v4853_v55 }
 0x902   :  { %2316 = vmatpush1.bf16.msra.mxu1 %v2201_v39 }
 0x905   :  { %2330 = vmatmul.mubr.bf16.vlgmr.msra.gmra.mrb[24].mxu1 %v2282_v62 }
 0x906   :  { %3781 = vmatprep.mubr.msk.bf16.mxu1 %vm877_vm1, %v5536_v16 }
 0x90d   :  { %2340 = vmatmul.mubr.bf16.gmra.mrb[28].mxu1 %v2283_v36  ;;  %v2294_v36 = vrot.slane %v2285_v2, %v5306_v24 }
 0x90e   :  { %2849 = vmatprep.mubr.bf16.mxu1 %v4852_v44 }
 0x9d8   :  { %v2331_v43 = vpop.f32.mrb[24].mxu1 }
 0x9d9   :  { %v2332_v46 = vadd.f32 %v2331_v43, %v2290_v42  ;;  %v2333_v5 = vpop.f32.mrb[25].mxu1 }
 0x9da   :  { %v2335_v56 = vpop.f32.mrb[26].mxu1 }
 0x9db   :  { %v3782_v47 = vmul.f32 -1.442695, %v2332_v46  ;;  %v5551_v51 = vmul.f32 %v2332_v46, %v5347_v7  ;;  %v2336_v60 = vadd.f32 %v2335_v56, %v2290_v42  ;;  %v2337_v53 = vpop.f32.mrb[27].mxu1 }
 0x9dd   :  { %4408 = vpow2.f32 %v3782_v47  ;;  %v3783_v1 = vmul.f32 -1.442695, %v2336_v60  ;;  %v5554_v23 = vmul.f32 %v2336_v60, %v5350_v10  ;;  %v2500_v33 = vmul.f32 %v5551_v51, %v5551_v51 }
 0x9df   :  { %4410 = vpow2.f32 %v3783_v1  ;;  %v2491_v11 = vadd.f32 %v5554_v23, %v5551_v51  ;;  %v2501_v50 = vmul.f32 %v5554_v23, %v5554_v23 }
 0x9e0   :  { %v2341_v17 = vpop.f32.mrb[28].mxu1 }
 0x9e1   :  { %v2504_v7 = vadd.f32 %v2501_v50, %v2500_v33  ;;  %v2342_v28 = vadd.f32 %v2341_v17, %v2290_v42  ;;  %v2343_v26 = vpop.f32.mrb[29].mxu1  ;;  %v2334_v33 = vadd.f32 %v2333_v5, %v2294_v36 }
 0x9e2   :  { %v2345_v35 = vpop.f32.mrb[30].mxu1 }
 0x9e3   :  { %v3784_v63 = vmul.f32 -1.442695, %v2342_v28  ;;  %v5563_v12 = vmul.f32 %v2342_v28, %v5358_v21  ;;  %v2346_v10 = vadd.f32 %v2345_v35, %v2290_v42  ;;  %v2347_v52 = vpop.f32.mrb[31].mxu1  ;;  %v2338_v28 = vadd.f32 %v2337_v53, %v2294_v36 }
 0x9e5   :  { %4412 = vpow2.f32 %v3784_v63  ;;  %v2492_v58 = vadd.f32 %v2491_v11, %v5563_v12  ;;  %v2502_v57 = vmul.f32 %v5563_v12, %v5563_v12  ;;  %v3785_v18 = vmul.f32 -1.442695, %v2346_v10 }
 0x9e6   :  { %v5569_v59 = vmul.f32 %v2346_v10, %v5369_v40 }
 0x9e7   :  { %v4409_v8 = vpop.eup %4408  ;;  %v2505_v45 = vadd.f32 %v2504_v7, %v2502_v57  ;;  %4414 = vpow2.f32 %v3785_v18 }
 0x9e8   :  { %v2362_v20 = vadd.f32 1.0, %v4409_v8  ;;  %v2493_v37 = vadd.f32 %v2492_v58, %v5569_v59  ;;  %v2503_v21 = vmul.f32 %v5569_v59, %v5569_v59 }
 0x9e9   :  { %v4411_v39 = vpop.eup %4410 }
 0x9ea   :  { %4416 = vrcp.f32 %v2362_v20  ;;  %v2363_v38 = vadd.f32 1.0, %v4411_v39  ;;  %v2494_v41 = vrot.slane %v2493_v37, 4  ;;  %v2506_v31 = vadd.f32 %v2505_v45, %v2503_v21 }
 0x9eb   :  { %v2344_v39 = vadd.f32 %v2343_v26, %v2294_v36 }
 0x9ec   :  { %4418 = vrcp.f32 %v2363_v38  ;;  %v2495_v32 = vadd.f32 %v2494_v41, %v2493_v37  ;;  %v2507_v62 = vrot.slane %v2506_v31, 4 }
 0x9ee   :  { %v2496_v29 = vrot.slane %v2495_v32, 2  ;;  %v2508_v40 = vadd.f32 %v2507_v62, %v2506_v31  ;;  %v2348_v31 = vadd.f32 %v2347_v52, %v2294_v36 }
 0x9ef   :  { %v4413_v34 = vpop.eup %4412 }
 0x9f0   :  { %v2364_v42 = vadd.f32 1.0, %v4413_v34  ;;  %v2497_v43 = vadd.f32 %v2496_v29, %v2495_v32  ;;  %v2509_v46 = vrot.slane %v2508_v40, 2 }
 0x9f1   :  { %v4415_v56 = vpop.eup %4414 }
 0x9f2   :  { %4420 = vrcp.f32 %v2364_v42  ;;  %v2365_v47 = vadd.f32 1.0, %v4415_v56  ;;  %v2498_v60 = vrot.slane %v2497_v43, 1  ;;  %v2510_v1 = vadd.f32 %v2509_v46, %v2508_v40  ;;  %v3790_v42 = vld [vmem:[#allocation20 + $0x2] ss:$0 sm:$0xff] }
 0x9f4   :  { %v4417_v11 = vpop.eup %4416  ;;  %4422 = vrcp.f32 %v2365_v47  ;;  %v2499_v50 = vadd.f32 %v2498_v60, %v2497_v43  ;;  %v2511_v17 = vrot.slane %v2510_v1, 1 }
 0x9f5   :  { %v2374_v7 = vmul.f32 %v4417_v11, %v2334_v33 }
 0x9f6   :  { %v4419_v35 = vpop.eup %4418  ;;  %v2512_v63 = vadd.f32 %v2511_v17, %v2510_v1  ;;  %v2513_v10 = vmul.f32 0.03125, %v2499_v50 }
 0x9f7   :  { %v2375_v58 = vmul.f32 %v4419_v35, %v2338_v28  ;;  %v2379_v2 = vpack.c.bf16 %v4419_v35, %v4417_v11 }
 0x9f8   :  { %v2514_v57 = vmul.f32 0.03125, %v2512_v63  ;;  %v2515_v18 = vmul.f32 %v2513_v10, %v2513_v10  ;;  %v2520_v8 = vsub.f32 %v5569_v59, %v2513_v10  ;;  %v2517_v45 = vsub.f32 %v5551_v51, %v2513_v10 }
 0x9f9   :  { %v2378_v20 = vpack.c.bf16 %v2375_v58, %v2374_v7  ;;  %2382 = vmatprep.subr.bf16.mxu0 %v2379_v2  ;;  %v2518_v5 = vsub.f32 %v5554_v23, %v2513_v10  ;;  %v2519_v37 = vsub.f32 %v5563_v12, %v2513_v10  ;;  %v3789_v23 = vld [vmem:[#allocation19 + $0x2] ss:$0 sm:$0xff]  ;;  %v4266_v2 = vld [vmem:[#allocation10 + $0x304] ss:$16 sps:$4 sm:$0xff]  }
 0x9fa   :  { %v2516_v21 = vsub.f32 %v2514_v57, %v2515_v18  ;;  %v4269_v57 = vld [vmem:[#allocation10 + $0x30c] ss:$16 sps:$4 sm:$0xff]   ;;  %v4264_v18 = vld [vmem:[#allocation10 + $0x300] ss:$16 sps:$4 sm:$0xff]  }
 0x9fb   :  { %2383 = vmatpush1.bf16.msra.mxu0 %v2378_v20  ;;  %2817 = vmatprep.subr.bf16.mxu1 %v4269_v57  ;;  %v4281_v20 = vld [vmem:[#allocation10 + $0x34c] ss:$16 sps:$4 sm:$0xff]  }
 0x9fc   :  { %v4421_v53 = vpop.eup %4420  ;;  %v2521_v38 = vadd.f32 1e-05, %v2516_v21  ;;  %v4284_v21 = vld [vmem:[#allocation10 + $0x364] ss:$16 sps:$4 sm:$0xff]  }
 0x9fd   :  { %v2376_v41 = vmul.f32 %v4421_v53, %v2344_v39  ;;  %v4287_v39 = vld [vmem:[#allocation10 + $0x36c] ss:$16 sps:$4 sm:$0xff]  }
 0x9fe   :  { %v4423_v32 = vpop.eup %4422  ;;  %4424 = vrsqrt.f32 %v2521_v38  ;;  %v4285_v38 = vld [vmem:[#allocation10 + $0x368] ss:$16 sps:$4 sm:$0xff]  }
 0x9ff   :  { %v2377_v62 = vmul.f32 %v4423_v32, %v2348_v31  ;;  %v2381_v29 = vpack.c.bf16 %v4423_v32, %v4421_v53  ;;  %v4282_v53 = vld [vmem:[#allocation10 + $0x360] ss:$16 sps:$4 sm:$0xff]   ;;  %v4293_v31 = vld [vmem:[#allocation10 + $0x38c] ss:$16 sps:$4 sm:$0xff]  }
 0xa00   :  { %v4288_v32 = vld [vmem:[#allocation10 + $0x380] ss:$16 sps:$4 sm:$0xff]  }
 0xa01   :  { %v2380_v59 = vpack.c.bf16 %v2377_v62, %v2376_v41  ;;  %2384 = vmatprep.subr.bf16.mxu0 %v2381_v29  ;;  %v4290_v41 = vld [vmem:[#allocation10 + $0x384] ss:$16 sps:$4 sm:$0xff]   ;;  %v4291_v62 = vld [vmem:[#allocation10 + $0x388] ss:$16 sps:$4 sm:$0xff]  }
 0xa02   :  { %v4296_v29 = vld [vmem:[#allocation10 + $0x3a4] ss:$16 sps:$4 sm:$0xff]  }
 0xa03   :  { %2385 = vmatpush1.bf16.msra.mxu0 %v2380_v59  ;;  %v4299_v59 = vld [vmem:[#allocation10 + $0x3ac] ss:$16 sps:$4 sm:$0xff]  }
 0xa04   :  { %2774 = vmatprep.subr.bf16.mxu0 %v4266_v2 }
 0xa06   :  { %3786 = vmatmul.mubr.msk.bf16.vlgmr.msra.gmra.mrb[28].mxu0 %vm877_vm1, %v5385_v15 }
 0xa07   :  { %2806 = vmatprep.mubr.bf16.mxu0 %v4852_v44  ;;  %2775 = vmatpush1.bf16.msra.mxu0 %v4264_v18 }
 0xa08   :  { %v4425_v51 = vpop.eup %4424 }
 0xa09   :  { %v2526_v26 = vmul.f32 %v4425_v51, %v2520_v8  ;;  %v2523_v12 = vmul.f32 %v4425_v51, %v2517_v45  ;;  %v2524_v40 = vmul.f32 %v4425_v51, %v2518_v5  ;;  %v2525_v34 = vmul.f32 %v4425_v51, %v2519_v37  ;;  %v4273_v8 = vld [vmem:[#allocation10 + $0x328] ss:$16 sps:$4 sm:$0xff]   ;;  %v4275_v45 = vld [vmem:[#allocation10 + $0x32c] ss:$16 sps:$4 sm:$0xff]   ;;  %v4276_v5 = vld [vmem:[#allocation10 + $0x340] ss:$16 sps:$4 sm:$0xff]  }
 0xa0a   :  { %v4279_v37 = vld [vmem:[#allocation10 + $0x348] ss:$16 sps:$4 sm:$0xff]   ;;  %v4294_v51 = vld [vmem:[#allocation10 + $0x3a0] ss:$16 sps:$4 sm:$0xff]  }
 0xa0b   :  { %v2533_v52 = vmul.f32 %v3789_v23, %v2523_v12  ;;  %v2534_v36 = vmul.f32 %v3789_v23, %v2524_v40  ;;  %v2535_v43 = vmul.f32 %v3789_v23, %v2525_v34  ;;  %v2536_v46 = vmul.f32 %v3789_v23, %v2526_v26  ;;  %v4297_v23 = vld [vmem:[#allocation10 + $0x3a8] ss:$16 sps:$4 sm:$0xff]   ;;  %v4302_v26 = vld [vmem:[#allocation10 + $0x3c4] ss:$16 sps:$4 sm:$0xff]   ;;  %v4305_v12 = vld [vmem:[#allocation10 + $0x3cc] ss:$16 sps:$4 sm:$0xff]  }
 0xa0c   :  { %v4300_v40 = vld [vmem:[#allocation10 + $0x3c0] ss:$16 sps:$4 sm:$0xff]   ;;  %v4303_v34 = vld [vmem:[#allocation10 + $0x3c8] ss:$16 sps:$4 sm:$0xff]  }
 0xa0d   :  { %v2543_v56 = vadd.f32 %v3790_v42, %v2533_v52  ;;  %v2544_v47 = vadd.f32 %v3790_v42, %v2534_v36  ;;  %v2545_v60 = vadd.f32 %v3790_v42, %v2535_v43  ;;  %v2546_v1 = vadd.f32 %v3790_v42, %v2536_v46  ;;  %v4308_v42 = vld [vmem:[#allocation10 + $0x3e4] ss:$16 sps:$4 sm:$0xff]   ;;  %v4311_v52 = vld [vmem:[#allocation10 + $0x3ec] ss:$16 sps:$4 sm:$0xff]   ;;  %v4306_v36 = vld [vmem:[#allocation10 + $0x3e0] ss:$16 sps:$4 sm:$0xff]  }
 0xa0e   :  { %v4309_v43 = vld [vmem:[#allocation10 + $0x3e8] ss:$16 sps:$4 sm:$0xff]   ;;  %v4314_v46 = vld [vmem:[#allocation13 + $0x184] ss:$8 sps:$4 sm:$0xff]  }
 0xa0f   :  { %v2547_v33 = vmax.f32 %v2543_v56, 0.0  ;;  %v2548_v11 = vmax.f32 %v2544_v47, 0.0  ;;  %v2549_v50 = vmax.f32 %v2545_v60, 0.0  ;;  %v2550_v17 = vmax.f32 %v2546_v1, 0.0 }
 0xa11   :  { %v5583_v7 = vadd.f32 %v2547_v33, %v5529_v27  ;;  %v5586_v28 = vadd.f32 %v2548_v11, %v5532_v30  ;;  %v5589_v35 = vadd.f32 %v2549_v50, %v5541_v61  ;;  %v5592_v63 = vadd.f32 %v2550_v17, %v5544_v48  ;;  %v4267_v27 = vld [vmem:[#allocation10 + $0x308] ss:$16 sps:$4 sm:$0xff]   ;;  %v4270_v30 = vld [vmem:[#allocation10 + $0x320] ss:$16 sps:$4 sm:$0xff]   ;;  %v4272_v61 = vld [vmem:[#allocation10 + $0x324] ss:$16 sps:$4 sm:$0xff]  }
 0xa12   :  { %2818 = vmatpush1.bf16.msra.mxu1 %v4267_v27  ;;  %v4278_v48 = vld [vmem:[#allocation10 + $0x344] ss:$16 sps:$4 sm:$0xff]   ;;  %2776 = vmatprep.subr.bf16.mxu0 %v4272_v61  ;;  %v1919_v50 = vrot.slane %v5511_v14, %v5345_v6 }
 0xa13   :  { %v2960_v10 = vpack.c.bf16 %v5586_v28, %v5583_v7  ;;  %v2961_v58 = vpack.c.bf16 %v5592_v63, %v5589_v35  ;;  %2819 = vmatprep.subr.bf16.mxu1 %v4275_v45  ;;  %2777 = vmatpush1.bf16.msra.mxu0 %v4270_v30 }
 0xa14   :  { %2778 = vmatprep.subr.bf16.mxu0 %v4278_v48  ;;  %v2131_v2 = vadd.f32 %v5517_v49, %v1919_v50  ;;  %v2135_v27 = vadd.f32 %v5523_v54, %v1919_v50 }
 0xa16   :  { %2820 = vmatpush1.bf16.msra.mxu1 %v4273_v8 }
 0xa17   :  { %2821 = vmatprep.subr.bf16.mxu1 %v4281_v20  ;;  %2779 = vmatpush1.bf16.msra.mxu0 %v4276_v5 }
 0xa18   :  { %2780 = vmatprep.subr.bf16.mxu0 %v4284_v21 }
 0xa1a   :  { %2822 = vmatpush1.bf16.msra.mxu1 %v4279_v37 }
 0xa1b   :  { %2823 = vmatprep.subr.bf16.mxu1 %v4287_v39  ;;  %2781 = vmatpush1.bf16.msra.mxu0 %v4282_v53 }
 0xa1c   :  { %2782 = vmatprep.subr.bf16.mxu0 %v4290_v41 }
 0xa1e   :  { %2824 = vmatpush1.bf16.msra.mxu1 %v4285_v38 }
 0xa1f   :  { %2825 = vmatprep.subr.bf16.mxu1 %v4293_v31  ;;  %2783 = vmatpush1.bf16.msra.mxu0 %v4288_v32 }
 0xa20   :  { %2784 = vmatprep.subr.bf16.mxu0 %v4296_v29 }
 0xa22   :  { %2826 = vmatpush1.bf16.msra.mxu1 %v4291_v62 }
 0xa23   :  { %2827 = vmatprep.subr.bf16.mxu1 %v4299_v59  ;;  %2785 = vmatpush1.bf16.msra.mxu0 %v4294_v51 }
 0xa24   :  { %2786 = vmatprep.subr.bf16.mxu0 %v4302_v26 }
 0xa26   :  { %2828 = vmatpush1.bf16.msra.mxu1 %v4297_v23 }
 0xa27   :  { %2829 = vmatprep.subr.bf16.mxu1 %v4305_v12  ;;  %2787 = vmatpush1.bf16.msra.mxu0 %v4300_v40 }
 0xa28   :  { %2788 = vmatprep.subr.bf16.mxu0 %v4308_v42 }
 0xa2a   :  { %2830 = vmatpush1.bf16.msra.mxu1 %v4303_v34 }
 0xa2b   :  { %2831 = vmatprep.subr.bf16.mxu1 %v4311_v52  ;;  %2789 = vmatpush1.bf16.msra.mxu0 %v4306_v36  ;;  %v3787_v36 = vld [vmem:[#allocation16 + $0x2] ss:$0 sm:$0xff] }
 0xa2c   :  { %2975 = vmatprep.subr.bf16.mxu0 %v4314_v46 }
 0xa2e   :  { %2832 = vmatpush1.bf16.msra.mxu1 %v4309_v43 }
 0xad9   :  { %v2416_v56 = vpop.f32.mrb[28].mxu0 }
 0xada   :  { %v2418_v47 = vpop.f32.mrb[29].mxu0 }
 0xadb   :  { %v2425_v60 = vadd.f32 1e-06, %v2418_v47  ;;  %v2420_v1 = vpop.f32.mrb[30].mxu0 }
 0xadc   :  { %v2422_v33 = vpop.f32.mrb[31].mxu0 }
 0xadd   :  { %4426 = vrcp.f32 %v2425_v60  ;;  %v2426_v11 = vadd.f32 1e-06, %v2422_v33 }
 0xadf   :  { %4428 = vrcp.f32 %v2426_v11 }
 0xae7   :  { %v4427_v17 = vpop.eup %4426 }
 0xae8   :  { %v2429_v57 = vmul.f32 %v4427_v17, %v2416_v56  ;;  %v3788_v56 = vld [vmem:[#allocation17 + $0x2] ss:$0 sm:$0xff] }
 0xae9   :  { %v4429_v18 = vpop.eup %4428 }
 0xaea   :  { %v2431_v30 = vadd.f32 %v2429_v57, %v2131_v2  ;;  %v2430_v61 = vmul.f32 %v4429_v18, %v2420_v1  ;;  %v4312_v57 = vld [vmem:[#allocation13 + $0x180] ss:$8 sps:$4 sm:$0xff]  }
 0xaec   :  { %v2433_v8 = vmul.f32 %v2431_v30, %v5341_v3  ;;  %v2432_v45 = vadd.f32 %v2430_v61, %v2135_v27  ;;  %v4317_v27 = vld [vmem:[#allocation13 + $0x194] ss:$8 sps:$4 sm:$0xff]   ;;  %v4315_v30 = vld [vmem:[#allocation13 + $0x190] ss:$8 sps:$4 sm:$0xff]   ;;  %v4320_v61 = vld [vmem:[#allocation13 + $0x1a4] ss:$8 sps:$4 sm:$0xff]  }
 0xaee   :  { %v2434_v48 = vmul.f32 %v2432_v45, %v5343_v4  ;;  %v2450_v20 = vmul.f32 %v2433_v8, %v2433_v8  ;;  %v4326_v45 = vld [vmem:[#allocation13 + $0x1c4] ss:$8 sps:$4 sm:$0xff]  }
 0xaf0   :  { %v2443_v5 = vadd.f32 %v2434_v48, %v2433_v8  ;;  %v2451_v37 = vmul.f32 %v2434_v48, %v2434_v48 }
 0xaf2   :  { %v2444_v21 = vrot.slane %v2443_v5, 4  ;;  %v2452_v39 = vadd.f32 %v2451_v37, %v2450_v20  ;;  %v4329_v20 = vld [vmem:[#allocation13 + $0x1d4] ss:$8 sps:$4 sm:$0xff]   ;;  %v4330_v37 = vld [vmem:[#allocation13 + $0x1e0] ss:$8 sps:$4 sm:$0xff]  }
 0xaf4   :  { %v2445_v14 = vadd.f32 %v2444_v21, %v2443_v5  ;;  %v2453_v53 = vrot.slane %v2452_v39, 4  ;;  %v4327_v5 = vld [vmem:[#allocation13 + $0x1d0] ss:$8 sps:$4 sm:$0xff]  }
 0xaf5   :  { %v4333_v21 = vld [vmem:[#allocation13 + $0x1f0] ss:$8 sps:$4 sm:$0xff]  }
 0xaf6   :  { %v2446_v38 = vrot.slane %v2445_v14, 2  ;;  %v2454_v49 = vadd.f32 %v2453_v53, %v2452_v39  ;;  %v5615_v39 = vld [vmem:[#allocation11 + $0xc] sm:$0xf] }
 0xaf8   :  { %v2447_v41 = vadd.f32 %v2446_v38, %v2445_v14  ;;  %v2455_v31 = vrot.slane %v2454_v49, 2  ;;  %v2605_v14 = vrot.slane %v5615_v39, %v5302_v22 }
 0xafa   :  { %v2456_v32 = vadd.f32 %v2455_v31, %v2454_v49  ;;  %v2448_v54 = vrot.slane %v2447_v41, 1  ;;  %v2601_v49 = vrot.slane %v5615_v39, %v5306_v24 }
 0xafc   :  { %v2457_v62 = vrot.slane %v2456_v32, 1  ;;  %v2449_v29 = vadd.f32 %v2448_v54, %v2447_v41  ;;  %v2609_v41 = vrot.slane %v5615_v39, %v5308_v25  ;;  %v2963_v25 = vld [vmem:[#allocation14 + $0x6] sm:$0x3] }
 0xafe   :  { %v2458_v59 = vadd.f32 %v2457_v62, %v2456_v32  ;;  %v2459_v51 = vmul.f32 0.0625, %v2449_v29 }
 0xb00   :  { %v2460_v23 = vmul.f32 0.0625, %v2458_v59  ;;  %v2461_v26 = vmul.f32 %v2459_v51, %v2459_v51  ;;  %v2463_v12 = vsub.f32 %v2433_v8, %v2459_v51  ;;  %v2464_v40 = vsub.f32 %v2434_v48, %v2459_v51  ;;  %v4321_v8 = vld [vmem:[#allocation13 + $0x1b0] ss:$8 sps:$4 sm:$0xff]   ;;  %v4324_v48 = vld [vmem:[#allocation13 + $0x1c0] ss:$8 sps:$4 sm:$0xff]  }
 0xb02   :  { %v2462_v34 = vsub.f32 %v2460_v23, %v2461_v26 }
 0xb04   :  { %v2465_v42 = vadd.f32 1e-05, %v2462_v34 }
 0xb06   :  { %4430 = vrsqrt.f32 %v2465_v42 }
 0xb10   :  { %v4431_v52 = vpop.eup %4430 }
 0xb11   :  { %v2467_v43 = vmul.f32 %v4431_v52, %v2463_v12  ;;  %v2468_v46 = vmul.f32 %v4431_v52, %v2464_v40 }
 0xb13   :  { %v2475_v47 = vmul.f32 %v3787_v36, %v2467_v43  ;;  %v2476_v60 = vmul.f32 %v3787_v36, %v2468_v46  ;;  %v2968_v36 = vrot.slane %v2963_v25, %v5345_v6 }
 0xb15   :  { %v2483_v1 = vadd.f32 %v3788_v56, %v2475_v47  ;;  %v2484_v33 = vadd.f32 %v3788_v56, %v2476_v60 }
 0xb17   :  { %v2485_v11 = vmax.f32 %v2483_v1, 0.0  ;;  %v2486_v50 = vmax.f32 %v2484_v33, 0.0 }
 0xb19   :  { %v5605_v17 = vadd.f32 %v2485_v11, %v5499_v9  ;;  %v5608_v2 = vadd.f32 %v2486_v50, %v5502_v13  ;;  %v4318_v9 = vld [vmem:[#allocation13 + $0x1a0] ss:$8 sps:$4 sm:$0xff]   ;;  %v4323_v13 = vld [vmem:[#allocation13 + $0x1b4] ss:$8 sps:$4 sm:$0xff]  }
 0xb1b   :  { %v2557_v18 = vpack.c.bf16 %v5608_v2, %v5605_v17 }
 0xb1d   :  { %2807 = vmatmul.mubr.bf16.vlgmr.msra.gmra.mrb[32].mxu0 %v2557_v18  ;;  %2850 = vmatmul.mubr.bf16.vlgmr.msra.gmra.mrb[32].mxu1 %v2557_v18 }
 0xb1e   :  { %2976 = vmatpush1.bf16.msra.mxu0 %v4312_v57  ;;  %3839 = vmatprep.mubr.msk.bf16.mxu0 %vm877_vm1, %v5506_v19  ;;  %v4332_v19 = vld [vmem:[#allocation13 + $0x1e4] ss:$8 sps:$4 sm:$0xff]  }
 0xb1f   :  { %2977 = vmatprep.subr.bf16.mxu0 %v4317_v27  ;;  %3092 = vmatprep.mubr.bf16.mxu1 %v4852_v44  ;;  %v4335_v44 = vld [vmem:[#allocation13 + $0x1f4] ss:$8 sps:$4 sm:$0xff]  }
 0xb22   :  { %2978 = vmatpush1.bf16.msra.mxu0 %v4315_v30 }
 0xb23   :  { %2979 = vmatprep.subr.bf16.mxu0 %v4320_v61 }
 0xb26   :  { %2980 = vmatpush1.bf16.msra.mxu0 %v4318_v9  ;;  %v2972_v9 = vrot.slane %v2963_v25, %v5306_v24 }
 0xb27   :  { %2981 = vmatprep.subr.bf16.mxu0 %v4323_v13 }
 0xb2a   :  { %2982 = vmatpush1.bf16.msra.mxu0 %v4321_v8 }
 0xb2b   :  { %2983 = vmatprep.subr.bf16.mxu0 %v4326_v45 }
 0xb2e   :  { %2984 = vmatpush1.bf16.msra.mxu0 %v4324_v48 }
 0xb2f   :  { %2985 = vmatprep.subr.bf16.mxu0 %v4329_v20 }
 0xb32   :  { %2986 = vmatpush1.bf16.msra.mxu0 %v4327_v5 }
 0xb33   :  { %2987 = vmatprep.subr.bf16.mxu0 %v4332_v19 }
 0xb36   :  { %2988 = vmatpush1.bf16.msra.mxu0 %v4330_v37 }
 0xb37   :  { %2989 = vmatprep.subr.bf16.mxu0 %v4335_v44 }
 0xb3a   :  { %2990 = vmatpush1.bf16.msra.mxu0 %v4333_v21 }
 0xbf0   :  { %v5619_v53 = vpop.f32.mrb[32].mxu0  ;;  %v2851_v38 = vpop.f32.mrb[32].mxu1 }
 0xbf1   :  { %v2810_v31 = vpop.f32.mrb[33].mxu0  ;;  %v2853_v32 = vpop.f32.mrb[33].mxu1  ;;  %v2852_v29 = vadd.f32 %v2851_v38, %v2605_v14 }
 0xbf2   :  { %v5625_v54 = vpop.f32.mrb[34].mxu0  ;;  %v2855_v62 = vpop.f32.mrb[34].mxu1  ;;  %v2811_v26 = vadd.f32 %v2810_v31, %v2601_v49  ;;  %v2854_v22 = vadd.f32 %v2853_v32, %v2609_v41 }
 0xbf3   :  { %v2856_v59 = vadd.f32 %v2855_v62, %v2605_v14  ;;  %v2814_v51 = vpop.f32.mrb[35].mxu0  ;;  %v2857_v23 = vpop.f32.mrb[35].mxu1 }
 0xbf4   :  { %v2815_v12 = vadd.f32 %v2814_v51, %v2601_v49  ;;  %v2858_v40 = vadd.f32 %v2857_v23, %v2609_v41 }
 0xbf5   :  { %v2877_v34 = vpack.c.bf16 %v2856_v59, %v2852_v29 }
 0xbf6   :  { %v2878_v42 = vpack.c.bf16 %v2815_v12, %v2811_v26  ;;  %v2879_v52 = vpack.c.bf16 %v2858_v40, %v2854_v22  ;;  %v2597_v40 = vrot.slane %v5615_v39, %v5345_v6 }
 0xbf8   :  { %2991 = vmatprep.subr.bf16.mxu0 %v2878_v42 }
 0xbf9   :  { %2992 = vmatpush1.bf16.msra.mxu0 %v2877_v34 }
 0xbfa   :  { %2993 = vmatprep.subr.bf16.mxu0 %v4853_v55 }
 0xbfd   :  { %2994 = vmatpush1.bf16.msra.mxu0 %v2879_v52 }
 0xbfe   :  { %3962 = vmatprep.subr.bf16.mxu0 %v4850_v0 }
 0xc00   :  { %3008 = vmatmul.mubr.bf16.vlgmr.msra.gmra.mrb[36].mxu0 %v2960_v10 }
 0xc01   :  { %3840 = vmatprep.mubr.msk.bf16.mxu0 %vm877_vm1, %v5536_v16 }
 0xc08   :  { %3018 = vmatmul.mubr.bf16.gmra.mrb[40].mxu0 %v2961_v58 }
 0xc09   :  { %3978 = vmatprep.mubr.msk.bf16.mxu0 %vm4851_vm0, %v4850_v0 }
 0xcd3   :  { %v3009_v43 = vpop.f32.mrb[36].mxu0 }
 0xcd4   :  { %v3010_v46 = vadd.f32 %v3009_v43, %v2968_v36  ;;  %v3011_v56 = vpop.f32.mrb[37].mxu0 }
 0xcd5   :  { %v3013_v47 = vpop.f32.mrb[38].mxu0  ;;  %v3012_v48 = vadd.f32 %v3011_v56, %v2972_v9 }
 0xcd6   :  { %v3841_v60 = vmul.f32 -1.442695, %v3010_v46  ;;  %v3014_v7 = vadd.f32 %v3013_v47, %v2968_v36  ;;  %v3015_v28 = vpop.f32.mrb[39].mxu0 }
 0xcd7   :  { %v3016_v19 = vadd.f32 %v3015_v28, %v2972_v9 }
 0xcd8   :  { %4432 = vpow2.f32 %v3841_v60  ;;  %v3842_v10 = vmul.f32 -1.442695, %v3014_v7 }
 0xcda   :  { %4434 = vpow2.f32 %v3842_v10 }
 0xcdb   :  { %v3019_v16 = vpop.f32.mrb[40].mxu0 }
 0xcdc   :  { %v3020_v1 = vadd.f32 %v3019_v16, %v2968_v36  ;;  %v3021_v35 = vpop.f32.mrb[41].mxu0 }
 0xcdd   :  { %v3023_v63 = vpop.f32.mrb[42].mxu0  ;;  %v3022_v38 = vadd.f32 %v3021_v35, %v2972_v9 }
 0xcde   :  { %v3843_v58 = vmul.f32 -1.442695, %v3020_v1  ;;  %v3024_v33 = vadd.f32 %v3023_v63, %v2968_v36  ;;  %v3025_v11 = vpop.f32.mrb[43].mxu0 }
 0xcdf   :  { %v3026_v31 = vadd.f32 %v3025_v11, %v2972_v9  ;;  %v3846_v9 = vld [vmem:[#allocation16 + $0x3] ss:$0 sm:$0xff] }
 0xce0   :  { %4436 = vpow2.f32 %v3843_v58  ;;  %v3844_v50 = vmul.f32 -1.442695, %v3024_v33 }
 0xce2   :  { %v4433_v57 = vpop.eup %4432  ;;  %4438 = vpow2.f32 %v3844_v50 }
 0xce3   :  { %v3040_v18 = vadd.f32 1.0, %v4433_v57 }
 0xce4   :  { %v4435_v27 = vpop.eup %4434 }
 0xce5   :  { %4440 = vrcp.f32 %v3040_v18  ;;  %v3041_v30 = vadd.f32 1.0, %v4435_v27 }
 0xce7   :  { %4442 = vrcp.f32 %v3041_v30 }
 0xcea   :  { %v4437_v61 = vpop.eup %4436 }
 0xceb   :  { %v3042_v13 = vadd.f32 1.0, %v4437_v61 }
 0xcec   :  { %v4439_v8 = vpop.eup %4438 }
 0xced   :  { %4444 = vrcp.f32 %v3042_v13  ;;  %v3043_v45 = vadd.f32 1.0, %v4439_v8 }
 0xcef   :  { %v4441_v20 = vpop.eup %4440  ;;  %4446 = vrcp.f32 %v3043_v45  ;;  %v3847_v45 = vld [vmem:[#allocation17 + $0x3] ss:$0 sm:$0xff] }
 0xcf0   :  { %v3052_v5 = vmul.f32 %v4441_v20, %v3012_v48 }
 0xcf1   :  { %v4443_v37 = vpop.eup %4442 }
 0xcf2   :  { %v3053_v44 = vmul.f32 %v4443_v37, %v3016_v19  ;;  %v3057_v21 = vpack.c.bf16 %v4443_v37, %v4441_v20 }
 0xcf4   :  { %v3056_v14 = vpack.c.bf16 %v3053_v44, %v3052_v5  ;;  %3060 = vmatprep.subr.bf16.mxu1 %v3057_v21 }
 0xcf6   :  { %3061 = vmatpush1.bf16.msra.mxu1 %v3056_v14 }
 0xcf7   :  { %v4445_v49 = vpop.eup %4444 }
 0xcf8   :  { %v3054_v41 = vmul.f32 %v4445_v49, %v3022_v38 }
 0xcf9   :  { %v4447_v24 = vpop.eup %4446 }
 0xcfa   :  { %v3055_v32 = vmul.f32 %v4447_v24, %v3026_v31  ;;  %v3059_v62 = vpack.c.bf16 %v4447_v24, %v4445_v49  ;;  %v3163_v49 = vld [vmem:[#allocation7] sm:$0x3]  ;;  %v4337_v31 = vld [vmem:[%s5763_s19 + $0x8] sm:$0xff]  }
 0xcfb   :  { %v4340_v24 = vld [vmem:[%s5763_s19 + $0x20] sm:$0xff]  }
 0xcfc   :  { %v3058_v29 = vpack.c.bf16 %v3055_v32, %v3054_v41  ;;  %3062 = vmatprep.subr.bf16.mxu1 %v3059_v62  ;;  %v4336_v41 = vld [vmem:[%s5763_s19] sm:$0xff]   ;;  %v4341_v32 = vld [vmem:[%s5763_s19 + $0x28] sm:$0xff]   ;;  %v4342_v62 = vld [vmem:[%s5763_s19 + $0x30] sm:$0xff]  }
 0xcfe   :  { %3063 = vmatpush1.bf16.msra.mxu1 %v3058_v29  ;;  %v4343_v29 = vld [vmem:[%s5763_s19 + $0x38] sm:$0xff]  }
 0xcff   :  { %4002 = vmatprep.subr.bf16.mxu1 %v4853_v55  ;;  %v2809_v55 = vadd.f32 %v5619_v53, %v2597_v40 }
 0xd01   :  { %3845 = vmatmul.mubr.msk.bf16.vlgmr.msra.gmra.mrb[36].mxu1 %vm877_vm1, %v5385_v15  ;;  %v2813_v15 = vadd.f32 %v5625_v54, %v2597_v40 }
 0xd02   :  { %3939 = vmatprep.mubr.msk.f32.mxu1 %vm4851_vm0, %v4850_v0 }
 0xdd4   :  { %v3094_v59 = vpop.f32.mrb[36].mxu1 }
 0xdd5   :  { %v3096_v51 = vpop.f32.mrb[37].mxu1 }
 0xdd6   :  { %v3103_v23 = vadd.f32 1e-06, %v3096_v51  ;;  %v3098_v26 = vpop.f32.mrb[38].mxu1  ;;  %v4345_v51 = vld [vmem:[#allocation23 + $0x8] sm:$0xff]  }
 0xdd7   :  { %v3100_v22 = vpop.f32.mrb[39].mxu1 }
 0xdd8   :  { %4448 = vrcp.f32 %v3103_v23  ;;  %v3104_v12 = vadd.f32 1e-06, %v3100_v22  ;;  %v4346_v23 = vld [vmem:[#allocation23 + $0x10] sm:$0xff]   ;;  %v4348_v22 = vld [vmem:[#allocation23 + $0x20] sm:$0xff]  }
 0xdda   :  { %4450 = vrcp.f32 %v3104_v12  ;;  %v4349_v12 = vld [vmem:[#allocation23 + $0x28] sm:$0xff]  }
 0xde2   :  { %v4449_v34 = vpop.eup %4448 }
 0xde3   :  { %v3107_v42 = vmul.f32 %v4449_v34, %v3094_v59  ;;  %v4344_v59 = vld [vmem:[#allocation23] sm:$0xff]  }
 0xde4   :  { %v4451_v52 = vpop.eup %4450  ;;  %3963 = vmatpush3.bf16.msra.mxu0 %v4344_v59 }
 0xde5   :  { %v3109_v25 = vadd.f32 %v3107_v42, %v2809_v55  ;;  %v3108_v36 = vmul.f32 %v4451_v52, %v3098_v26  ;;  %3964 = vmatprep.subr.bf16.mxu0 %v4850_v0  ;;  %v4347_v26 = vld [vmem:[#allocation23 + $0x18] sm:$0xff]   ;;  %v4350_v42 = vld [vmem:[#allocation23 + $0x30] sm:$0xff]  }
 0xde6   :  { %v4351_v52 = vld [vmem:[#allocation23 + $0x38] sm:$0xff]  }
 0xde7   :  { %v3111_v43 = vmul.f32 %v3109_v25, %v5341_v3  ;;  %v3110_v46 = vadd.f32 %v3108_v36, %v2813_v15  ;;  %v4352_v15 = vld [vmem:[%s5767_s23] sm:$0xff]   ;;  %v4353_v25 = vld [vmem:[%s5767_s23 + $0x8] sm:$0xff]   ;;  %v4354_v36 = vld [vmem:[%s5767_s23 + $0x10] sm:$0xff]  }
 0xde8   :  { %3965 = vmatpush3.bf16.msra.mxu0 %v4345_v51 }
 0xde9   :  { %v3112_v56 = vmul.f32 %v3110_v46, %v5343_v4  ;;  %v3124_v47 = vmul.f32 %v3111_v43, %v3111_v43  ;;  %3966 = vmatprep.subr.bf16.mxu0 %v4850_v0  ;;  %v4356_v46 = vld [vmem:[%s5767_s23 + $0x20] sm:$0xff]  }
 0xdeb   :  { %v3117_v60 = vadd.f32 %v3112_v56, %v3111_v43  ;;  %v3125_v7 = vmul.f32 %v3112_v56, %v3112_v56 }
 0xdec   :  { %3967 = vmatpush3.bf16.msra.mxu0 %v4346_v23 }
 0xded   :  { %v3118_v28 = vrot.slane %v3117_v60, 4  ;;  %v3126_v10 = vadd.f32 %v3125_v7, %v3124_v47  ;;  %3968 = vmatprep.subr.bf16.mxu0 %v4850_v0  ;;  %v3849_v47 = vld [vmem:[#allocation22] ss:$0 sm:$0xff] }
 0xdef   :  { %v3119_v6 = vadd.f32 %v3118_v28, %v3117_v60  ;;  %v3127_v39 = vrot.slane %v3126_v10, 4 }
 0xdf0   :  { %3969 = vmatpush3.bf16.msra.mxu0 %v4347_v26 }
 0xdf1   :  { %v3120_v16 = vrot.slane %v3119_v6, 2  ;;  %v3128_v53 = vadd.f32 %v3127_v39, %v3126_v10  ;;  %3970 = vmatprep.subr.bf16.mxu0 %v4850_v0 }
 0xdf3   :  { %v3121_v1 = vadd.f32 %v3120_v16, %v3119_v6  ;;  %v3129_v35 = vrot.slane %v3128_v53, 2 }
 0xdf4   :  { %3971 = vmatpush3.bf16.msra.mxu0 %v4348_v22 }
 0xdf5   :  { %v3130_v63 = vadd.f32 %v3129_v35, %v3128_v53  ;;  %v3122_v54 = vrot.slane %v3121_v1, 1  ;;  %3972 = vmatprep.subr.bf16.mxu0 %v4850_v0  ;;  %v4358_v53 = vld [vmem:[%s5767_s23 + $0x30] sm:$0xff]   ;;  %v3858_v35 = vld [vmem:[#allocation25] ss:$0 sm:$0xff] }
 0xdf7   :  { %v3131_v58 = vrot.slane %v3130_v63, 1  ;;  %v3123_v33 = vadd.f32 %v3122_v54, %v3121_v1  ;;  %v4359_v1 = vld [vmem:[%s5767_s23 + $0x38] sm:$0xff]  }
 0xdf8   :  { %3973 = vmatpush3.bf16.msra.mxu0 %v4349_v12 }
 0xdf9   :  { %v3132_v11 = vadd.f32 %v3131_v58, %v3130_v63  ;;  %v3133_v3 = vmul.f32 0.0625, %v3123_v33  ;;  %3974 = vmatprep.subr.bf16.mxu0 %v4850_v0 }
 0xdfb   :  { %v3134_v50 = vmul.f32 0.0625, %v3132_v11  ;;  %v3135_v57 = vmul.f32 %v3133_v3, %v3133_v3  ;;  %v3137_v4 = vsub.f32 %v3111_v43, %v3133_v3  ;;  %v3138_v18 = vsub.f32 %v3112_v56, %v3133_v3  ;;  %v4355_v43 = vld [vmem:[%s5767_s23 + $0x18] sm:$0xff]   ;;  %v4357_v56 = vld [vmem:[%s5767_s23 + $0x28] sm:$0xff]   ;;  %s4786_s23 = scalar_lea.vmem %s3584_s11, 32 }
 0xdfc   :  { %3975 = vmatpush3.bf16.msra.mxu0 %v4350_v42  ;;  %p4787_p8 = scmp.ne.s32.totalorder %s3584_s11, %s4786_s23  ;;  %p4792_p10 = scmp.lt.s32.totalorder %s4786_s23, %s4786_s23 }
 0xdfd   :  { %v3136_v27 = vsub.f32 %v3134_v50, %v3135_v57  ;;  %3976 = vmatprep.subr.bf16.mxu0 %v4850_v0  ;;  %v3867_v57 = vld [vmem:[%s5801_s20] ss:$0 sm:$0xff] }
 0xdfe   :  { %p4793_p11 = por %p4792_p10, %p4791_p9 }
 0xdff   :  { %v3139_v30 = vadd.f32 1e-05, %v3136_v27 }
 0xe00   :  { %3977 = vmatpush3.bf16.msra.mxu0 %v4351_v52  ;;  %p4794_p12 = pnand %p4793_p11, %p4787_p8 }
 0xe01   :  { %4452 = vrsqrt.f32 %v3139_v30 }
 0xe0b   :  { %v4453_v61 = vpop.eup %4452 }
 0xe0c   :  { %v3141_v13 = vmul.f32 %v4453_v61, %v3137_v4  ;;  %v3142_v8 = vmul.f32 %v4453_v61, %v3138_v18 }
 0xe0e   :  { %v3149_v48 = vmul.f32 %v3846_v9, %v3141_v13  ;;  %v3150_v20 = vmul.f32 %v3846_v9, %v3142_v8 }
 0xe10   :  { %v3157_v5 = vadd.f32 %v3847_v45, %v3149_v48  ;;  %v3158_v19 = vadd.f32 %v3847_v45, %v3150_v20 }
 0xe12   :  { %v3159_v37 = vmax.f32 %v3157_v5, 0.0  ;;  %v3160_v44 = vmax.f32 %v3158_v19, 0.0 }
 0xe14   :  { %v3161_v21 = vadd.f32 %v3159_v37, %v5605_v17  ;;  %v3162_v14 = vadd.f32 %v3160_v44, %v5608_v2  ;;  %v4338_v17 = vld [vmem:[%s5763_s19 + $0x10] sm:$0xff]   ;;  %v4339_v2 = vld [vmem:[%s5763_s19 + $0x18] sm:$0xff]  }
 0xe16   :  { %v4003_v38 = vpack.c.bf16 %v3162_v14, %v3161_v21 }
 0xe18   :  { %4004 = vmatpush3.bf16.msra.mxu1 %v4003_v38 }
 0xe19   :  { %3942 = vmatprep.subr.bf16.mxu1 %v4850_v0 }
 0xe1b   :  { %3940 = vmatmul.mubr.msk.f32.vlgmr.msra.gmra.mrb[40].mxu1 %vm3164_vm2, %v3163_v49 }
 0xe1c   :  { %3943 = vmatpush3.bf16.msra.mxu1 %v4336_v41  ;;  %3958 = vmatprep.mubr.msk.bf16.mxu1 %vm4851_vm0, %v4850_v0 }
 0xe1d   :  { %3944 = vmatprep.subr.bf16.mxu1 %v4850_v0 }
 0xe20   :  { %3945 = vmatpush3.bf16.msra.mxu1 %v4337_v31 }
 0xe21   :  { %3946 = vmatprep.subr.bf16.mxu1 %v4850_v0 }
 0xe24   :  { %3947 = vmatpush3.bf16.msra.mxu1 %v4338_v17 }
 0xe25   :  { %3948 = vmatprep.subr.bf16.mxu1 %v4850_v0 }
 0xe28   :  { %3949 = vmatpush3.bf16.msra.mxu1 %v4339_v2 }
 0xe29   :  { %3950 = vmatprep.subr.bf16.mxu1 %v4850_v0 }
 0xe2c   :  { %3951 = vmatpush3.bf16.msra.mxu1 %v4340_v24 }
 0xe2d   :  { %3952 = vmatprep.subr.bf16.mxu1 %v4850_v0 }
 0xe30   :  { %3953 = vmatpush3.bf16.msra.mxu1 %v4341_v32 }
 0xe31   :  { %3954 = vmatprep.subr.bf16.mxu1 %v4850_v0 }
 0xe34   :  { %3955 = vmatpush3.bf16.msra.mxu1 %v4342_v62 }
 0xe35   :  { %3956 = vmatprep.subr.bf16.mxu1 %v4850_v0 }
 0xe38   :  { %3957 = vmatpush3.bf16.msra.mxu1 %v4343_v29 }
 0xe39   :  { %3982 = vmatprep.subr.bf16.mxu1 %v4850_v0 }
 0xeee   :  { %v3234_v40 = vpop.f32.mrb[40].mxu1 }
 0xeef   :  { %v3238_v34 = vpack.c.bf16 %v3234_v40, %v3234_v40  ;;  %v3941_v55 = vpop.f32.mrb[41].mxu1 }
 0xef1   :  { %3959 = vmatmul.mubr.bf16.vlgmr.msra.gmra.mrb[44].mxu1 %v3238_v34 }
 0xef2   :  { %3998 = vmatprep.mubr.msk.bf16.mxu1 %vm4851_vm0, %v4850_v0  ;;  %3983 = vmatpush3.bf16.msra.mxu1 %v4352_v15 }
 0xef3   :  { %3984 = vmatprep.subr.bf16.mxu1 %v4850_v0 }
 0xef6   :  { %3985 = vmatpush3.bf16.msra.mxu1 %v4353_v25 }
 0xef7   :  { %3986 = vmatprep.subr.bf16.mxu1 %v4850_v0 }
 0xefa   :  { %3987 = vmatpush3.bf16.msra.mxu1 %v4354_v36 }
 0xefb   :  { %3988 = vmatprep.subr.bf16.mxu1 %v4850_v0 }
 0xefe   :  { %3989 = vmatpush3.bf16.msra.mxu1 %v4355_v43 }
 0xeff   :  { %3990 = vmatprep.subr.bf16.mxu1 %v4850_v0 }
 0xf02   :  { %3991 = vmatpush3.bf16.msra.mxu1 %v4356_v46 }
 0xf03   :  { %3992 = vmatprep.subr.bf16.mxu1 %v4850_v0 }
 0xf06   :  { %3993 = vmatpush3.bf16.msra.mxu1 %v4357_v56 }
 0xf07   :  { %3994 = vmatprep.subr.bf16.mxu1 %v4850_v0 }
 0xf0a   :  { %3995 = vmatpush3.bf16.msra.mxu1 %v4358_v53 }
 0xf0b   :  { %3996 = vmatprep.subr.bf16.mxu1 %v4850_v0 }
 0xf0e   :  { %3997 = vmatpush3.bf16.msra.mxu1 %v4359_v1 }
 0xfc4   :  { %v3344_v60 = vpop.f32.mrb[44].mxu1 }
 0xfc5   :  { %v3345_v7 = vadd.f32 %v3849_v47, %v3344_v60  ;;  %v3960_v28 = vpop.f32.mrb[45].mxu1 }
 0xfc6   :  { %v3347_v10 = vpop.f32.mrb[46].mxu1 }
 0xfc7   :  { %v3350_v6 = vmax.f32 %v3345_v7, 0.0  ;;  %v3961_v39 = vpop.f32.mrb[47].mxu1 }
 0xfc9   :  { %v3351_v16 = vpack.c.bf16 %v3350_v6, %v3350_v6 }
 0xfcb   :  { %3979 = vmatmul.mubr.bf16.vlgmr.msra.gmra.mrb[44].mxu0 %v3351_v16 }
0x109e   :  { %v3457_v63 = vpop.f32.mrb[44].mxu0 }
0x109f   :  { %v3458_v54 = vadd.f32 %v3858_v35, %v3457_v63  ;;  %v3980_v58 = vpop.f32.mrb[45].mxu0 }
0x10a0   :  { %v3460_v33 = vpop.f32.mrb[46].mxu0 }
0x10a1   :  { %v3463_v11 = vmax.f32 %v3458_v54, 0.0  ;;  %v3981_v3 = vpop.f32.mrb[47].mxu0 }
0x10a3   :  { %v3464_v50 = vpack.c.bf16 %v3463_v11, %v3463_v11 }
0x10a5   :  { %3999 = vmatmul.mubr.bf16.vlgmr.msra.gmra.mrb[48].mxu1 %v3464_v50 }
0x1178   :  { %v3570_v0 = vpop.f32.mrb[48].mxu1 }
0x1179   :  { %v3571_v4 = vadd.f32 %v3867_v57, %v3570_v0  ;;  %v4000_v18 = vpop.f32.mrb[49].mxu1 }
0x117a   :  { %v3573_v27 = vpop.f32.mrb[50].mxu1 }
0x117b   :  { %3576 = vst [vmem:[#allocation26] sm:$0x3] %v3571_v4  ;;  %v4001_v30 = vpop.f32.mrb[51].mxu1 }
0x117c   :  { %4797 = shalt.err (!%p4794_p12)
}
0x117d   :  { %s5802_s15 = sld [smem:[#allocation47_spill]] }
0x1183   :  { %s4798_s25 = scalar_lea.hbm %s5802_s15, 32 }
0x1184   :  { %p4799_p13 = scmp.ne.s32.totalorder %s5802_s15, %s4798_s25  ;;  %p4802_p0 = scmp.lt.u32.totalorder %s4798_s25, %s5802_s15 }
0x1186   :  { %p4804_p1 = pnand %p4802_p0, %p4799_p13 }
0x1188   :  { %4807 = shalt.err (!%p4804_p1)
}
0x1189   :  { %3586 = dma.vmem_to_hbm [thread:$0]  %s3584_s11, 32, %s5802_s15, [#allocation4]  }
0x118a   :  { %4824 = dma.done.wait [#allocation4], 32  }
0x118b   :  { %4825 = vsyncadd [#allocation4], 4294967264 }
0x118c   :  { %3590 = vsyncpa [#allocation3], 1 }
0x118d   :  { %3591 = vsyncpa [#allocation6], 1 }
0x118e   :  { %3592 = vsyncpa [#allocation9], 1 }
0x118f   :  { %3593 = vsyncpa [#allocation12], 1 }
0x1190   :  { %3594 = vsyncpa [#allocation15], 1 }
0x1191   :  { %3595 = vsyncpa [#allocation18], 1 }
0x1192   :  { %3596 = vsyncpa [#allocation21], 1 }
0x1193   :  { %3597 = vsyncpa [#allocation24], 1 }
0x1194   :  { %3598 = vsyncpa [#allocation4], 1 }

</bundles_post_ra>
